<compile_context>
chip_gen: v7x
topology: tpu7x:2x2x1
jax: 0.10.0
libtpu: 0.0.40
codegen_flags: <defaults>
</compile_context>

<pallas_src>
import math

import jax
import jax.numpy as jnp
from jax.experimental import pallas as pl
from jax.experimental.pallas import tpu as pltpu

_SQRT_HALF = 0.7071067811865476  # 1/sqrt(2)

_ROW_TILE = 256                      # review: >=256 rows per grid step
_WEIGHT_RESIDENT_BUDGET = 24 << 20   # bytes of (double-buffered) weight blocks in VMEM


# ------------------------------------------------------------------ math helpers
def _erf(x):
    """erf approximation (Abramowitz & Stegun 7.1.26, max abs err ~1.5e-7).

    Built from exp/mul/add/where + an EUP approximate reciprocal only, so it is
    guaranteed to lower on the TPU VPU/EUP and the divide does not occupy a
    VALU slot.  Accuracy is far inside bf16 I/O rounding error.
    """
    a1, a2, a3, a4, a5 = (0.254829592, -0.284496736, 1.421413741,
                          -1.453152027, 1.061405429)
    p = 0.3275911
    ax = jnp.abs(x)
    t = pl.reciprocal(1.0 + p * ax, approx=True)   # EUP vrcp, not a VALU divide
    poly = ((((a5 * t + a4) * t + a3) * t + a2) * t + a1) * t
    y = 1.0 - poly * jnp.exp(-ax * ax)
    return jnp.where(x >= 0.0, y, -y)


def _gelu_exact(x):
    # Exact (erf-based) GELU, matching nn.GELU() default (approximate='none').
    return 0.5 * x * (1.0 + _erf(x * _SQRT_HALF))


# ------------------------------------------------------------------------ kernel
def _mlp_kernel(x_ref, w1_ref, b1_ref, w2_ref, b2_ref, o_ref, acc_ref):
    """One (row-tile, hidden-chunk) step of the fused MLP.

    grid = (rows, hidden_chunks); the hidden axis is a reduction over fc2.

    x_ref  : (tm, Din)    bf16  input rows (batch*seq flattened)
    w1_ref : (Din, tdh)   bf16  fc1 weight chunk, stored transposed (W1^T)
    b1_ref : (1, tdh)     f32   fc1 bias chunk
    w2_ref : (tdh, Dout)  bf16  fc2 weight chunk, stored transposed (W2^T)
    b2_ref : (1, Dout)    f32   fc2 bias
    o_ref  : (tm, Dout)   bf16  output rows (written on the last hidden chunk)
    acc_ref: (tm, Dout)   f32   VMEM accumulator scratch
    """
    k = pl.program_id(1)

    @pl.when(k == 0)
    def _init():
        acc_ref[...] = jnp.zeros_like(acc_ref)

    # fc1 on the MXU, f32 accumulation.  Any input cast happens in-kernel.
    x = x_ref[...].astype(w1_ref.dtype)
    h = jnp.dot(x, w1_ref[...], preferred_element_type=jnp.float32)
    # f32 epilogue: bias + exact GELU.  drop1 (p=0) and norm (Identity) no-ops.
    h = _gelu_exact(h + b1_ref[...])
    # Partial fc2 product for this hidden chunk, accumulated in f32.
    acc_ref[...] += jnp.dot(h.astype(w2_ref.dtype), w2_ref[...],
                            preferred_element_type=jnp.float32)

    @pl.when(k == pl.num_programs(1) - 1)
    def _finalize():
        # fc2 bias, then drop2 (no-op); emit bf16 (lane-dense, half writeback).
        o_ref[...] = (acc_ref[...] + b2_ref[...]).astype(o_ref.dtype)


# ----------------------------------------------------------------- tiling helpers
def _row_tile(m):
    """Fixed 256-row tile; clamp (multiple of 8) for small inputs."""
    if m >= _ROW_TILE:
        return _ROW_TILE
    if m >= 8:
        return (m // 8) * 8
    return m


def _hidden_tile(d_in, d_hidden, d_out, w_bytes):
    """Full-resident weights when they fit the VMEM budget (incl. the pipeline's
    second buffer copy); otherwise stream d_hidden in chunks.  The chunk must
    divide d_hidden exactly because it is a reduction axis."""
    def footprint(tdh):
        return (d_in * tdh + tdh * d_out) * w_bytes * 2  # x2: double buffering
    if footprint(d_hidden) <= _WEIGHT_RESIDENT_BUDGET:
        return d_hidden
    for tdh in (4096, 2048, 1024, 512, 256, 128):
        if tdh < d_hidden and d_hidden % tdh == 0 \
                and footprint(tdh) <= _WEIGHT_RESIDENT_BUDGET:
            return tdh
    return d_hidden  # fall back: keep resident and rely on the vmem limit


def _vmem_limit_bytes(tm, d_in, tdh, d_out, x_bytes, w_bytes, out_bytes):
    """Size the scoped VMEM limit from the actual tiles (conservative: assumes
    every pipelined block is double-buffered), capped so it also fits v7x."""
    dbl = 2
    est = (tm * d_in * x_bytes * dbl          # x row tile
           + d_in * tdh * w_bytes * dbl       # W1 chunk
           + tdh * 4 * dbl                    # fc1 bias chunk
           + tdh * d_out * w_bytes * dbl      # W2 chunk
           + d_out * 4 * dbl                  # fc2 bias
           + tm * d_out * out_bytes * dbl     # output tile
           + tm * d_out * 4                   # f32 accumulator scratch
           + tm * tdh * (4 + w_bytes))        # in-kernel fc1 activation temporaries
    est = int(est * 1.25) + (2 << 20)         # compiler scratch / alignment headroom
    # >= the smallest default scoped limit, <= ~48 MiB (v7x has 64 MiB physical).
    return max(16 << 20, min(est, 48 << 20))


# ----------------------------------------------------------------------- wrapper
@jax.jit
def mlp_forward(x, params):
    """x: (..., in_features) -> (..., out_features) in the weights' dtype (bf16)."""
    w1, b1, w2, b2 = params["w1"], params["b1"], params["w2"], params["b2"]
    d_in, d_hidden = w1.shape
    d_out = w2.shape[1]
    out_dtype = w1.dtype  # bf16 activations out: halves HBM writeback vs f32

    lead = x.shape[:-1]
    m = 1
    for s in lead:
        m *= s

    x_bytes = jnp.dtype(x.dtype).itemsize
    w_bytes = jnp.dtype(w1.dtype).itemsize
    out_bytes = jnp.dtype(out_dtype).itemsize

    tm = _row_tile(m)
    tdh = _hidden_tile(d_in, d_hidden, d_out, w_bytes)
    grid = (pl.cdiv(m, tm), d_hidden // tdh)   # rows parallel, hidden reduction last

    x2 = x.reshape(m, d_in)                    # metadata-only; no dtype pass in HBM

    out = pl.pallas_call(
        _mlp_kernel,
        out_shape=jax.ShapeDtypeStruct((m, d_out), out_dtype),
        grid=grid,
        in_specs=[
            pl.BlockSpec((tm, d_in), lambda i, k: (i, 0)),     # row tile of x (constant over k)
            pl.BlockSpec((d_in, tdh), lambda i, k: (0, k)),    # W1^T chunk
            pl.BlockSpec((1, tdh), lambda i, k: (0, k)),       # fc1 bias chunk
            pl.BlockSpec((tdh, d_out), lambda i, k: (k, 0)),   # W2^T chunk
            pl.BlockSpec((1, d_out), lambda i, k: (0, 0)),     # fc2 bias
        ],
        out_specs=pl.BlockSpec((tm, d_out), lambda i, k: (i, 0)),
        scratch_shapes=[pltpu.VMEM((tm, d_out), jnp.float32)],
        compiler_params=pltpu.CompilerParams(
            dimension_semantics=("parallel", "arbitrary"),
            vmem_limit_bytes=_vmem_limit_bytes(tm, d_in, tdh, d_out,
                                               x_bytes, w_bytes, out_bytes),
        ),
    )(x2, w1, b1, w2, b2)
    return out.reshape(*lead, d_out)


# -------------------------------------------------------------------- test setup
def make_params(key, in_features, hidden_features, out_features,
                weight_dtype=jnp.bfloat16):
    """Deterministic synthetic Linear parameters (nn.Linear-style init).

    Weights are stored ONCE in bf16 at init (no per-forward cast pass) and in
    the transposed (in, out) layout so the matmul output's last dim is the
    lane-dense feature axis.  Biases stay f32 for the f32 epilogue.
    """
    k1, k2, k3, k4 = jax.random.split(key, 4)
    s1 = 1.0 / math.sqrt(in_features)
    s2 = 1.0 / math.sqrt(hidden_features)
    return {
        "w1": jax.random.uniform(k1, (in_features, hidden_features),
                                 jnp.float32, -s1, s1).astype(weight_dtype),
        "b1": jax.random.uniform(k2, (1, hidden_features), jnp.float32, -s1, s1),
        "w2": jax.random.uniform(k3, (hidden_features, out_features),
                                 jnp.float32, -s2, s2).astype(weight_dtype),
        "b2": jax.random.uniform(k4, (1, out_features), jnp.float32, -s2, s2),
    }


def _reference(x, params):
    """Pure-JAX reference with the same bf16 quantization points as the kernel."""
    cd = params["w1"].dtype
    xc = x.astype(cd).astype(jnp.float32)
    w1 = params["w1"].astype(jnp.float32)
    w2 = params["w2"].astype(jnp.float32)
    h = xc @ w1 + params["b1"]
    h = jax.nn.gelu(h, approximate=False)        # drop1 / norm(Identity) are no-ops
    h = h.astype(cd).astype(jnp.float32)
    out = h @ w2 + params["b2"]                  # drop2 is a no-op
    return out.astype(cd)


if __name__ == "__main__":
    key = jax.random.PRNGKey(0)
    kx, kp = jax.random.split(key)

    B, N = 2, 64                               # batch, sequence length
    D_IN, D_HIDDEN, D_OUT = 128, 512, 128      # lane-dense feature dims (x128)

    x = jax.random.normal(kx, (B, N, D_IN), jnp.float32).astype(jnp.bfloat16)
    params = make_params(kp, D_IN, D_HIDDEN, D_OUT)

    out = mlp_forward(x, params)
    out = jax.block_until_ready(out)
    assert out.shape == (B, N, D_OUT)
    assert out.dtype == jnp.bfloat16

    ref = _reference(x.reshape(-1, D_IN), params).reshape(B, N, D_OUT)
    max_err = float(jnp.max(jnp.abs(out.astype(jnp.float32) -
                                    ref.astype(jnp.float32))))
    assert max_err < 3e-2, f"mismatch vs reference: {max_err}"

    print("KERNEL_OK")
</pallas_src>

<mosaic_0001>
module attributes {stable_mosaic.version = 11 : i64} {
  func.func @_mlp_kernel(%arg0: i32, %arg1: i32, %arg2: memref<128x128xbf16, #tpu.memory_space<vmem>>, %arg3: memref<128x512xbf16, #tpu.memory_space<vmem>>, %arg4: memref<1x512xf32, #tpu.memory_space<vmem>>, %arg5: memref<512x128xbf16, #tpu.memory_space<vmem>>, %arg6: memref<1x128xf32, #tpu.memory_space<vmem>>, %arg7: memref<128x128xbf16, #tpu.memory_space<vmem>>, %arg8: memref<128x128xf32, #tpu.memory_space<vmem>>) attributes {dimension_semantics = [#tpu.dimension_semantics<parallel>, #tpu.dimension_semantics<arbitrary>], iteration_bounds = array<i64: 1, 1>, scalar_prefetch = 0 : i64, scratch_operands = 1 : i64, tpu.core_type = #tpu.core_type<tc>, window_params = [{transform_indices = @transform_0, window_bounds = array<i64: 128, 128>}, {transform_indices = @transform_1, window_bounds = array<i64: 128, 512>}, {transform_indices = @transform_2, window_bounds = array<i64: 1, 512>}, {transform_indices = @transform_3, window_bounds = array<i64: 512, 128>}, {pipeline_mode = #tpu.pipeline_mode<synchronous>, transform_indices = @transform_4, window_bounds = array<i64: 1, 128>}, {transform_indices = @transform_5, window_bounds = array<i64: 128, 128>}]} {
    %c0_i32 = arith.constant 0 : i32
    %0 = arith.cmpi eq, %arg1, %c0_i32 : i32
    %1 = arith.extui %0 : i1 to i32
    %c0_i32_0 = arith.constant 0 : i32
    %2 = arith.cmpi ne, %1, %c0_i32_0 : i32
    scf.if %2 {
      %cst_29 = arith.constant 0.000000e+00 : f32
      %57 = vector.broadcast %cst_29 : f32 to vector<128x128xf32>
      %c0_30 = arith.constant 0 : index
      %c0_31 = arith.constant 0 : index
      %58 = vector.load %arg8[%c0_30, %c0_31] : memref<128x128xf32, #tpu.memory_space<vmem>>, vector<128x128xf32>
      tpu.vector_store %arg8[%c0_30, %c0_31], %57 {strides = array<i32>} : memref<128x128xf32, #tpu.memory_space<vmem>>, vector<128x128xf32>,
    } else {
    }
    %c0 = arith.constant 0 : index
    %c0_1 = arith.constant 0 : index
    %3 = vector.load %arg2[%c0, %c0_1] : memref<128x128xbf16, #tpu.memory_space<vmem>>, vector<128x128xbf16>
    %c0_2 = arith.constant 0 : index
    %c0_3 = arith.constant 0 : index
    %4 = vector.load %arg3[%c0_2, %c0_3] : memref<128x512xbf16, #tpu.memory_space<vmem>>, vector<128x512xbf16>
    %cst = arith.constant dense<0.000000e+00> : vector<128x512xf32>
    %5 = tpu.matmul %3, %4, %cst {dimension_numbers = #tpu.dot_dimension_numbers<[1], [0], [0], [1], [0, 0, 1, 1], [], []>} : vector<128x128xbf16>, vector<128x512xbf16>, vector<128x512xf32> -> vector<128x512xf32>
    %c0_4 = arith.constant 0 : index
    %c0_5 = arith.constant 0 : index
    %6 = vector.load %arg4[%c0_4, %c0_5] : memref<1x512xf32, #tpu.memory_space<vmem>>, vector<1x512xf32>
    %7 = vector.broadcast %6 : vector<1x512xf32> to vector<128x512xf32>
    %8 = arith.addf %5, %7 : vector<128x512xf32>
    %cst_6 = arith.constant 5.000000e-01 : f32
    %9 = vector.broadcast %cst_6 : f32 to vector<128x512xf32>
    %10 = arith.mulf %9, %8 : vector<128x512xf32>
    %cst_7 = arith.constant 0.707106769 : f32
    %11 = vector.broadcast %cst_7 : f32 to vector<128x512xf32>
    %12 = arith.mulf %8, %11 : vector<128x512xf32>
    %13 = math.absf %12 : vector<128x512xf32>
    %cst_8 = arith.constant 0.327591091 : f32
    %14 = vector.broadcast %cst_8 : f32 to vector<128x512xf32>
    %15 = arith.mulf %14, %13 : vector<128x512xf32>
    %cst_9 = arith.constant 1.000000e+00 : f32
    %16 = vector.broadcast %cst_9 : f32 to vector<128x512xf32>
    %17 = arith.addf %16, %15 : vector<128x512xf32>
    %18 = tpu.reciprocal %17 {approx = true} : vector<128x512xf32> -> vector<128x512xf32>
    %cst_10 = arith.constant 1.06140542 : f32
    %19 = vector.broadcast %cst_10 : f32 to vector<128x512xf32>
    %20 = arith.mulf %19, %18 : vector<128x512xf32>
    %cst_11 = arith.constant -1.45315206 : f32
    %21 = vector.broadcast %cst_11 : f32 to vector<128x512xf32>
    %22 = arith.addf %20, %21 : vector<128x512xf32>
    %23 = arith.mulf %22, %18 : vector<128x512xf32>
    %cst_12 = arith.constant 1.42141378 : f32
    %24 = vector.broadcast %cst_12 : f32 to vector<128x512xf32>
    %25 = arith.addf %23, %24 : vector<128x512xf32>
    %26 = arith.mulf %25, %18 : vector<128x512xf32>
    %cst_13 = arith.constant -0.284496725 : f32
    %27 = vector.broadcast %cst_13 : f32 to vector<128x512xf32>
    %28 = arith.addf %26, %27 : vector<128x512xf32>
    %29 = arith.mulf %28, %18 : vector<128x512xf32>
    %cst_14 = arith.constant 0.254829586 : f32
    %30 = vector.broadcast %cst_14 : f32 to vector<128x512xf32>
    %31 = arith.addf %29, %30 : vector<128x512xf32>
    %32 = arith.mulf %31, %18 : vector<128x512xf32>
    %cst_15 = arith.constant 0.000000e+00 : f32
    %33 = vector.broadcast %cst_15 : f32 to vector<128x512xf32>
    %34 = arith.subf %33, %13 : vector<128x512xf32>
    %35 = arith.mulf %34, %13 : vector<128x512xf32>
    %36 = math.exp %35 : vector<128x512xf32>
    %37 = arith.mulf %32, %36 : vector<128x512xf32>
    %cst_16 = arith.constant 1.000000e+00 : f32
    %38 = vector.broadcast %cst_16 : f32 to vector<128x512xf32>
    %39 = arith.subf %38, %37 : vector<128x512xf32>
    %cst_17 = arith.constant 0.000000e+00 : f32
    %40 = vector.broadcast %cst_17 : f32 to vector<128x512xf32>
    %41 = arith.cmpf oge, %12, %40 : vector<128x512xf32>
    %cst_18 = arith.constant 0.000000e+00 : f32
    %42 = vector.broadcast %cst_18 : f32 to vector<128x512xf32>
    %43 = arith.subf %42, %39 : vector<128x512xf32>
    %44 = arith.select %41, %39, %43 : vector<128x512xi1>, vector<128x512xf32>
    %cst_19 = arith.constant 1.000000e+00 : f32
    %45 = vector.broadcast %cst_19 : f32 to vector<128x512xf32>
    %46 = arith.addf %45, %44 : vector<128x512xf32>
    %47 = arith.mulf %10, %46 : vector<128x512xf32>
    %c0_20 = arith.constant 0 : index
    %c0_21 = arith.constant 0 : index
    %48 = vector.load %arg8[%c0_20, %c0_21] : memref<128x128xf32, #tpu.memory_space<vmem>>, vector<128x128xf32>
    %49 = arith.truncf %47 : vector<128x512xf32> to vector<128x512xbf16>
    %c0_22 = arith.constant 0 : index
    %c0_23 = arith.constant 0 : index
    %50 = vector.load %arg5[%c0_22, %c0_23] : memref<512x128xbf16, #tpu.memory_space<vmem>>, vector<512x128xbf16>
    %cst_24 = arith.constant dense<0.000000e+00> : vector<128x128xf32>
    %51 = tpu.matmul %49, %50, %cst_24 {dimension_numbers = #tpu.dot_dimension_numbers<[1], [0], [0], [1], [0, 0, 1, 1], [], []>} : vector<128x512xbf16>, vector<512x128xbf16>, vector<128x128xf32> -> vector<128x128xf32>
    %52 = arith.addf %48, %51 : vector<128x128xf32>
    %c0_25 = arith.constant 0 : index
    %c0_26 = arith.constant 0 : index
    %53 = vector.load %arg8[%c0_25, %c0_26] : memref<128x128xf32, #tpu.memory_space<vmem>>, vector<128x128xf32>
    tpu.vector_store %arg8[%c0_25, %c0_26], %52 {strides = array<i32>} : memref<128x128xf32, #tpu.memory_space<vmem>>, vector<128x128xf32>,
    %c0_i32_27 = arith.constant 0 : i32
    %54 = arith.cmpi eq, %arg1, %c0_i32_27 : i32
    %55 = arith.extui %54 : i1 to i32
    %c0_i32_28 = arith.constant 0 : i32
    %56 = arith.cmpi ne, %55, %c0_i32_28 : i32
    scf.if %56 {
      %c0_29 = arith.constant 0 : index
      %c0_30 = arith.constant 0 : index
      %57 = vector.load %arg8[%c0_29, %c0_30] : memref<128x128xf32, #tpu.memory_space<vmem>>, vector<128x128xf32>
      %c0_31 = arith.constant 0 : index
      %c0_32 = arith.constant 0 : index
      %58 = vector.load %arg6[%c0_31, %c0_32] : memref<1x128xf32, #tpu.memory_space<vmem>>, vector<1x128xf32>
      %59 = vector.broadcast %58 : vector<1x128xf32> to vector<128x128xf32>
      %60 = arith.addf %57, %59 : vector<128x128xf32>
      %61 = arith.truncf %60 : vector<128x128xf32> to vector<128x128xbf16>
      %c0_33 = arith.constant 0 : index
      %c0_34 = arith.constant 0 : index
      %62 = vector.load %arg7[%c0_33, %c0_34] : memref<128x128xbf16, #tpu.memory_space<vmem>>, vector<128x128xbf16>
      tpu.vector_store %arg7[%c0_33, %c0_34], %61 {strides = array<i32>} : memref<128x128xbf16, #tpu.memory_space<vmem>>, vector<128x128xbf16>,
    } else {
    }
    return
  }
  func.func @transform_0(%arg0: i32, %arg1: i32) -> (i32, i32) {
    %c0_i32 = arith.constant 0 : i32
    %c0_i32_0 = arith.constant 0 : i32
    return %arg0, %c0_i32 : i32, i32
  }
  func.func @transform_1(%arg0: i32, %arg1: i32) -> (i32, i32) {
    %c0_i32 = arith.constant 0 : i32
    %c0_i32_0 = arith.constant 0 : i32
    return %c0_i32, %arg1 : i32, i32
  }
  func.func @transform_2(%arg0: i32, %arg1: i32) -> (i32, i32) {
    %c0_i32 = arith.constant 0 : i32
    %c0_i32_0 = arith.constant 0 : i32
    return %c0_i32, %arg1 : i32, i32
  }
  func.func @transform_3(%arg0: i32, %arg1: i32) -> (i32, i32) {
    %c0_i32 = arith.constant 0 : i32
    %c0_i32_0 = arith.constant 0 : i32
    return %arg1, %c0_i32 : i32, i32
  }
  func.func @transform_4(%arg0: i32, %arg1: i32) -> (i32, i32) {
    %c0_i32 = arith.constant 0 : i32
    %c0_i32_0 = arith.constant 0 : i32
    %c0_i32_1 = arith.constant 0 : i32
    return %c0_i32, %c0_i32_0 : i32, i32
  }
  func.func @transform_5(%arg0: i32, %arg1: i32) -> (i32, i32) {
    %c0_i32 = arith.constant 0 : i32
    %c0_i32_0 = arith.constant 0 : i32
    return %arg0, %c0_i32 : i32, i32
  }
}

</mosaic_0001>

<bundles_post_ra>
// kernel: mlp_forward.1
= control target key start
LH: loop header
LB: loop body
LE: loop exit
PB: predicated region body
PF: predicated region fallthrough
CT: control target
= control target key end

     0   :  { %10 = vsyncpa [#allocation4], 0  ;;  %s5782_s0 = inlined_call_operand.hbm [shape: bf16[128,128], index: 0, kind: input, shape index: {}]   ;;  %s5783_s1 = inlined_call_operand.hbm [shape: bf16[128,512], index: 1, kind: input, shape index: {}]   ;;  %s5784_s2 = inlined_call_operand.vmem [shape: f32[1,512], index: 2, kind: input, shape index: {}]   ;;  %s5785_s3 = inlined_call_operand.hbm [shape: bf16[512,128], index: 3, kind: input, shape index: {}]   ;;  %s5786_s4 = inlined_call_operand.vmem [shape: f32[1,128], index: 4, kind: input, shape index: {}]   ;;  %s5787_s5 = inlined_call_operand.hbm [shape: bf16[128,128], index: 5, kind: output, shape index: {}]  }
   0x1   :  { %11 = vsyncpa [#allocation7], 0 }
   0x2   :  { %12 = vsyncpa [#allocation5], 0  ;;  %s3648_s18 = smov [#allocation6]   ;;  %s3554_s22 = scalar_lea.hbm %s5783_s1, 4096 }
   0x3   :  { %s30_s19 = sshll.u32 %s3648_s18, 4  ;;  %p3555_p0 = scmp.ne.s32.totalorder %s5783_s1, %s3554_s22  ;;  %s31_s19 = int_to_ptr.vmem [resolvable:$true] %s30_s19 }
   0x4   :  { %p3558_p1 = scmp.lt.u32.totalorder %s3554_s22, %s5783_s1 }
   0x6   :  { %p3560_p2 = pnand %p3558_p1, %p3555_p0 }
   0x8   :  { %3563 = shalt.err (!%p3560_p2)
}
   0x9   :  { %s3564_s27 = scalar_lea.vmem %s31_s19, 4096  ;;  %p3569_p4 = scmp.lt.s32.totalorder %s31_s19, %s31_s19 }
   0xa   :  { %p3565_p3 = scmp.ne.s32.totalorder %s31_s19, %s3564_s27  ;;  %p3570_p5 = scmp.lt.s32.totalorder %s3564_s27, %s3564_s27 }
   0xc   :  { %p3571_p6 = por %p3570_p5, %p3569_p4 }
   0xe   :  { %p3572_p7 = pnand %p3571_p6, %p3565_p3 }
  0x10   :  { %3575 = shalt.err (!%p3572_p7)
}
  0x11   :  { %s3649_s28 = smov 256   ;;  %s3650_s29 = smov 16  }
  0x12   :  { %36 = dma.hbm_to_vmem [thread:$0]  %s5783_s1, 4096, %s31_s19, [#allocation7], %s3649_s28, %s3649_s28, %s3650_s29  }
  0x13   :  { %s3651_s7 = smov [#allocation3]   ;;  %s3576_s11 = scalar_lea.hbm %s5782_s0, 1024 }
  0x14   :  { %s18_s8 = sshll.u32 %s3651_s7, 4  ;;  %p3577_p8 = scmp.ne.s32.totalorder %s5782_s0, %s3576_s11  ;;  %s19_s8 = int_to_ptr.vmem [resolvable:$true] %s18_s8 }
  0x15   :  { %p3580_p9 = scmp.lt.u32.totalorder %s3576_s11, %s5782_s0 }
  0x17   :  { %p3582_p10 = pnand %p3580_p9, %p3577_p8 }
  0x19   :  { %3585 = shalt.err (!%p3582_p10)
}
  0x1a   :  { %s3586_s16 = scalar_lea.vmem %s19_s8, 1024  ;;  %p3591_p12 = scmp.lt.s32.totalorder %s19_s8, %s19_s8 }
  0x1b   :  { %p3587_p11 = scmp.ne.s32.totalorder %s19_s8, %s3586_s16  ;;  %p3592_p13 = scmp.lt.s32.totalorder %s3586_s16, %s3586_s16 }
  0x1d   :  { %p3593_p0 = por %p3592_p13, %p3591_p12 }
  0x1f   :  { %p3594_p1 = pnand %p3593_p0, %p3587_p11 }
  0x21   :  { %3597 = shalt.err (!%p3594_p1)
}
  0x22   :  { %s3652_s1 = smov 64   ;;  %s3653_s17 = smov 4  }
  0x23   :  { %24 = dma.hbm_to_vmem [thread:$0]  %s5782_s0, 1024, %s19_s8, [#allocation4], %s3652_s1, %s3652_s1, %s3653_s17  }
  0x24   :  { %s3654_s20 = smov [#allocation8]   ;;  %s3598_s24 = scalar_lea.hbm %s5785_s3, 4096 }
  0x25   :  { %s44_s21 = sshll.u32 %s3654_s20, 4  ;;  %p3599_p2 = scmp.ne.s32.totalorder %s5785_s3, %s3598_s24  ;;  %s45_s21 = int_to_ptr.vmem [resolvable:$true] %s44_s21 }
  0x26   :  { %p3602_p3 = scmp.lt.u32.totalorder %s3598_s24, %s5785_s3 }
  0x28   :  { %p3604_p4 = pnand %p3602_p3, %p3599_p2 }
  0x2a   :  { %3607 = shalt.err (!%p3604_p4)
}
  0x2b   :  { %s3608_s29 = scalar_lea.vmem %s45_s21, 4096  ;;  %p3613_p6 = scmp.lt.s32.totalorder %s45_s21, %s45_s21 }
  0x2c   :  { %p3609_p5 = scmp.ne.s32.totalorder %s45_s21, %s3608_s29  ;;  %p3614_p7 = scmp.lt.s32.totalorder %s3608_s29, %s3608_s29 }
  0x2e   :  { %p3615_p8 = por %p3614_p7, %p3613_p6 }
  0x30   :  { %p3616_p9 = pnand %p3615_p8, %p3609_p5 }
  0x32   :  { %3619 = shalt.err (!%p3616_p9)
}
  0x33   :  { %50 = dma.hbm_to_vmem [thread:$0]  %s5785_s3, 4096, %s45_s21, [#allocation7], %s3652_s1, %s3652_s1, %s3653_s17  }
  0x34   :  { %3642 = dma.done.wait [#allocation4], 1024  }
  0x35   :  { %3643 = vsyncadd [#allocation4], 4294966272 }
  0x36   :  { %3644 = dma.done.wait [#allocation7], 8192  }
  0x37   :  { %3645 = vsyncadd [#allocation7], 4294959104  ;;  %v3655_v0 = vmov 0   ;;  %v3210_v1 = vld [vmem:[#allocation6 + $0x4] ss:$16 sps:$4 sm:$0xff]   ;;  %v3259_v38 = vld [vmem:[#allocation3 + $0x8] sm:$0xff]   ;;  %v133_v53 = vlaneseq }
  0x38   :  { %393 = vmatprep.mubr.bf16.mxu0 %v3655_v0  ;;  %506 = vmatprep.mubr.bf16.mxu1 %v3655_v0  ;;  %v3212_v2 = vld [vmem:[#allocation6 + $0xc] ss:$16 sps:$4 sm:$0xff]   ;;  %v3214_v3 = vld [vmem:[#allocation6] ss:$16 sps:$4 sm:$0xff]   ;;  %v3215_v4 = vld [vmem:[#allocation6 + $0x8] ss:$16 sps:$4 sm:$0xff]  }
  0x39   :  { %361 = vmatprep.subr.bf16.mxu0 %v3210_v1  ;;  %474 = vmatprep.subr.bf16.mxu1 %v3212_v2  ;;  %v3216_v5 = vld [vmem:[#allocation6 + $0x24] ss:$16 sps:$4 sm:$0xff]   ;;  %v3218_v6 = vld [vmem:[#allocation6 + $0x2c] ss:$16 sps:$4 sm:$0xff]   ;;  %v3220_v7 = vld [vmem:[#allocation6 + $0x20] ss:$16 sps:$4 sm:$0xff]  }
  0x3a   :  { %362 = vmatpush1.bf16.msra.mxu0 %v3214_v3  ;;  %475 = vmatpush1.bf16.msra.mxu1 %v3215_v4  ;;  %v3221_v8 = vld [vmem:[#allocation6 + $0x28] ss:$16 sps:$4 sm:$0xff]   ;;  %v3222_v9 = vld [vmem:[#allocation6 + $0x44] ss:$16 sps:$4 sm:$0xff]   ;;  %v3224_v10 = vld [vmem:[#allocation6 + $0x4c] ss:$16 sps:$4 sm:$0xff]  }
  0x3b   :  { %363 = vmatprep.subr.bf16.mxu0 %v3216_v5  ;;  %476 = vmatprep.subr.bf16.mxu1 %v3218_v6  ;;  %v3226_v11 = vld [vmem:[#allocation6 + $0x40] ss:$16 sps:$4 sm:$0xff]   ;;  %v3227_v12 = vld [vmem:[#allocation6 + $0x48] ss:$16 sps:$4 sm:$0xff]   ;;  %v3228_v13 = vld [vmem:[#allocation6 + $0x64] ss:$16 sps:$4 sm:$0xff]  }
  0x3c   :  { %v3230_v14 = vld [vmem:[#allocation6 + $0x6c] ss:$16 sps:$4 sm:$0xff]   ;;  %v3232_v15 = vld [vmem:[#allocation6 + $0x60] ss:$16 sps:$4 sm:$0xff]   ;;  %v3233_v16 = vld [vmem:[#allocation6 + $0x68] ss:$16 sps:$4 sm:$0xff]  }
  0x3d   :  { %v3234_v17 = vld [vmem:[#allocation6 + $0x84] ss:$16 sps:$4 sm:$0xff]   ;;  %v3236_v18 = vld [vmem:[#allocation6 + $0x8c] ss:$16 sps:$4 sm:$0xff]   ;;  %v3238_v19 = vld [vmem:[#allocation6 + $0x80] ss:$16 sps:$4 sm:$0xff]  }
  0x3e   :  { %364 = vmatpush1.bf16.msra.mxu0 %v3220_v7  ;;  %477 = vmatpush1.bf16.msra.mxu1 %v3221_v8  ;;  %v3239_v20 = vld [vmem:[#allocation6 + $0x88] ss:$16 sps:$4 sm:$0xff]   ;;  %v3240_v21 = vld [vmem:[#allocation6 + $0xa4] ss:$16 sps:$4 sm:$0xff]   ;;  %v3242_v22 = vld [vmem:[#allocation6 + $0xac] ss:$16 sps:$4 sm:$0xff]  }
  0x3f   :  { %365 = vmatprep.subr.bf16.mxu0 %v3222_v9  ;;  %478 = vmatprep.subr.bf16.mxu1 %v3224_v10  ;;  %v3244_v23 = vld [vmem:[#allocation6 + $0xa0] ss:$16 sps:$4 sm:$0xff]   ;;  %v3245_v24 = vld [vmem:[#allocation6 + $0xa8] ss:$16 sps:$4 sm:$0xff]   ;;  %v3246_v25 = vld [vmem:[#allocation6 + $0xc4] ss:$16 sps:$4 sm:$0xff]  }
  0x40   :  { %v3248_v26 = vld [vmem:[#allocation6 + $0xcc] ss:$16 sps:$4 sm:$0xff]   ;;  %v3250_v27 = vld [vmem:[#allocation6 + $0xc0] ss:$16 sps:$4 sm:$0xff]   ;;  %v3251_v28 = vld [vmem:[#allocation6 + $0xc8] ss:$16 sps:$4 sm:$0xff]  }
  0x41   :  { %v3252_v29 = vld [vmem:[#allocation6 + $0xe4] ss:$16 sps:$4 sm:$0xff]   ;;  %v3254_v30 = vld [vmem:[#allocation6 + $0xec] ss:$16 sps:$4 sm:$0xff]   ;;  %v3256_v31 = vld [vmem:[#allocation6 + $0xe0] ss:$16 sps:$4 sm:$0xff]  }
  0x42   :  { %366 = vmatpush1.bf16.msra.mxu0 %v3226_v11  ;;  %479 = vmatpush1.bf16.msra.mxu1 %v3227_v12  ;;  %v3257_v32 = vld [vmem:[#allocation6 + $0xe8] ss:$16 sps:$4 sm:$0xff]   ;;  %v3258_v33 = vld [vmem:[#allocation3] sm:$0xff]   ;;  %v3260_v39 = vld [vmem:[#allocation3 + $0x10] sm:$0xff]   ;;  %v134_v54 = vshrl.u32 %v133_v53, 7 }
  0x43   :  { %367 = vmatprep.subr.bf16.mxu0 %v3228_v13  ;;  %480 = vmatprep.subr.bf16.mxu1 %v3230_v14  ;;  %v3266_v34 = vld [vmem:[#allocation8 + $0x40] sm:$0xff]   ;;  %v3261_v40 = vld [vmem:[#allocation3 + $0x18] sm:$0xff]   ;;  %v3263_v42 = vld [vmem:[#allocation3 + $0x28] sm:$0xff]  }
  0x44   :  { %v3267_v35 = vld [vmem:[#allocation8 + $0xc0] sm:$0xff]   ;;  %v3264_v43 = vld [vmem:[#allocation3 + $0x30] sm:$0xff]   ;;  %v3265_v44 = vld [vmem:[#allocation3 + $0x38] sm:$0xff]   ;;  %v135_v55 = vsub.s32 0, %v134_v54  ;;  %v143_v56 = vsub.s32 2, %v134_v54  ;;  %v139_v60 = vsub.s32 1, %v134_v54 }
  0x45   :  { %v3268_v36 = vld [vmem:[#allocation8] sm:$0xff]   ;;  %v3270_v45 = vld [vmem:[#allocation8 + $0x48] sm:$0xff]   ;;  %v3274_v49 = vld [vmem:[#allocation8 + $0x50] sm:$0xff]   ;;  %v147_v63 = vsub.s32 3, %v134_v54 }
  0x46   :  { %368 = vmatpush1.bf16.msra.mxu0 %v3232_v15  ;;  %481 = vmatpush1.bf16.msra.mxu1 %v3233_v16  ;;  %v3269_v37 = vld [vmem:[#allocation8 + $0x80] sm:$0xff]   ;;  %v3271_v46 = vld [vmem:[#allocation8 + $0xc8] sm:$0xff]   ;;  %v3275_v50 = vld [vmem:[#allocation8 + $0xd0] sm:$0xff]  }
  0x47   :  { %369 = vmatprep.subr.bf16.mxu0 %v3234_v17  ;;  %482 = vmatprep.subr.bf16.mxu1 %v3236_v18  ;;  %v3262_v41 = vld [vmem:[#allocation3 + $0x20] sm:$0xff]   ;;  %v3272_v47 = vld [vmem:[#allocation8 + $0x8] sm:$0xff]   ;;  %v3276_v51 = vld [vmem:[#allocation8 + $0x10] sm:$0xff]  }
  0x48   :  { %v3273_v48 = vld [vmem:[#allocation8 + $0x88] sm:$0xff]   ;;  %v3277_v52 = vld [vmem:[#allocation8 + $0x90] sm:$0xff]   ;;  %v3278_v57 = vld [vmem:[#allocation8 + $0x58] sm:$0xff]  }
  0x49   :  { %v3279_v58 = vld [vmem:[#allocation8 + $0xd8] sm:$0xff]   ;;  %v131_v59 = vld [vmem:[%s5784_s2] sm:$0xf] }
  0x4a   :  { %370 = vmatpush1.bf16.msra.mxu0 %v3238_v19  ;;  %483 = vmatpush1.bf16.msra.mxu1 %v3239_v20  ;;  %v3748_v61 = vrot.slane %v131_v59, %v135_v55  ;;  %v3750_v62 = vrot.slane %v131_v59, %v143_v56  ;;  %v3760_v7 = vrot.slane %v131_v59, %v147_v63 }
  0x4b   :  { %371 = vmatprep.subr.bf16.mxu0 %v3240_v21  ;;  %484 = vmatprep.subr.bf16.mxu1 %v3242_v22 }
  0x4e   :  { %372 = vmatpush1.bf16.msra.mxu0 %v3244_v23  ;;  %485 = vmatpush1.bf16.msra.mxu1 %v3245_v24 }
  0x4f   :  { %373 = vmatprep.subr.bf16.mxu0 %v3246_v25  ;;  %486 = vmatprep.subr.bf16.mxu1 %v3248_v26 }
  0x52   :  { %374 = vmatpush1.bf16.msra.mxu0 %v3250_v27  ;;  %487 = vmatpush1.bf16.msra.mxu1 %v3251_v28 }
  0x53   :  { %375 = vmatprep.subr.bf16.mxu0 %v3252_v29  ;;  %488 = vmatprep.subr.bf16.mxu1 %v3254_v30 }
  0x56   :  { %376 = vmatpush1.bf16.msra.mxu0 %v3256_v31  ;;  %489 = vmatpush1.bf16.msra.mxu1 %v3257_v32 }
  0x57   :  { %3073 = vmatprep.subr.bf16.mxu0 %v3266_v34  ;;  %3137 = vmatprep.subr.bf16.mxu1 %v3267_v35 }
  0x59   :  { %394 = vmatmul.mubr.bf16.vlgmr.msra.gmra.mrb[0].mxu0 %v3258_v33  ;;  %507 = vmatmul.mubr.bf16.vlgmr.msra.gmra.mrb[0].mxu1 %v3258_v33 }
  0x5a   :  { %403 = vmatprep.mubr.bf16.mxu0 %v3655_v0  ;;  %516 = vmatprep.mubr.bf16.mxu1 %v3655_v0 }
  0x5b   :  { %3074 = vmatpush3.bf16.msra.mxu0 %v3268_v36  ;;  %3138 = vmatpush3.bf16.msra.mxu1 %v3269_v37  ;;  %v3280_v37 = vld [vmem:[#allocation8 + $0x18] sm:$0xff]  }
  0x5c   :  { %3075 = vmatprep.subr.bf16.mxu0 %v3270_v45  ;;  %3139 = vmatprep.subr.bf16.mxu1 %v3271_v46 }
  0x5f   :  { %3076 = vmatpush3.bf16.msra.mxu0 %v3272_v47  ;;  %3140 = vmatpush3.bf16.msra.mxu1 %v3273_v48 }
  0x60   :  { %3077 = vmatprep.subr.bf16.mxu0 %v3274_v49  ;;  %3141 = vmatprep.subr.bf16.mxu1 %v3275_v50 }
  0x61   :  { %404 = vmatmul.mubr.bf16.gmra.mrb[4].mxu0 %v3259_v38  ;;  %517 = vmatmul.mubr.bf16.gmra.mrb[4].mxu1 %v3259_v38 }
  0x62   :  { %413 = vmatprep.mubr.bf16.mxu0 %v3655_v0  ;;  %526 = vmatprep.mubr.bf16.mxu1 %v3655_v0 }
  0x63   :  { %3078 = vmatpush3.bf16.msra.mxu0 %v3276_v51  ;;  %3142 = vmatpush3.bf16.msra.mxu1 %v3277_v52 }
  0x64   :  { %3079 = vmatprep.subr.bf16.mxu0 %v3278_v57  ;;  %3143 = vmatprep.subr.bf16.mxu1 %v3279_v58 }
  0x67   :  { %3080 = vmatpush3.bf16.msra.mxu0 %v3280_v37 }
  0x69   :  { %414 = vmatmul.mubr.bf16.gmra.mrb[8].mxu0 %v3260_v39  ;;  %527 = vmatmul.mubr.bf16.gmra.mrb[8].mxu1 %v3260_v39 }
  0x6a   :  { %423 = vmatprep.mubr.bf16.mxu0 %v3655_v0  ;;  %536 = vmatprep.mubr.bf16.mxu1 %v3655_v0 }
  0x71   :  { %424 = vmatmul.mubr.bf16.gmra.mrb[12].mxu0 %v3261_v40  ;;  %537 = vmatmul.mubr.bf16.gmra.mrb[12].mxu1 %v3261_v40  ;;  %v3281_v40 = vld [vmem:[#allocation8 + $0x98] sm:$0xff]  }
  0x72   :  { %433 = vmatprep.mubr.bf16.mxu0 %v3655_v0  ;;  %546 = vmatprep.mubr.bf16.mxu1 %v3655_v0 }
  0x73   :  { %3144 = vmatpush3.bf16.msra.mxu1 %v3281_v40 }
  0x79   :  { %434 = vmatmul.mubr.bf16.gmra.mrb[16].mxu0 %v3262_v41  ;;  %547 = vmatmul.mubr.bf16.gmra.mrb[16].mxu1 %v3262_v41 }
  0x7a   :  { %443 = vmatprep.mubr.bf16.mxu0 %v3655_v0  ;;  %556 = vmatprep.mubr.bf16.mxu1 %v3655_v0 }
  0x81   :  { %444 = vmatmul.mubr.bf16.gmra.mrb[20].mxu0 %v3263_v42  ;;  %557 = vmatmul.mubr.bf16.gmra.mrb[20].mxu1 %v3263_v42 }
  0x82   :  { %453 = vmatprep.mubr.bf16.mxu0 %v3655_v0  ;;  %566 = vmatprep.mubr.bf16.mxu1 %v3655_v0 }
  0x89   :  { %454 = vmatmul.mubr.bf16.gmra.mrb[24].mxu0 %v3264_v43  ;;  %567 = vmatmul.mubr.bf16.gmra.mrb[24].mxu1 %v3264_v43 }
  0x8a   :  { %463 = vmatprep.mubr.bf16.mxu0 %v3655_v0  ;;  %576 = vmatprep.mubr.bf16.mxu1 %v3655_v0  ;;  %v3752_v0 = vrot.slane %v131_v59, %v139_v60 }
  0x91   :  { %464 = vmatmul.mubr.bf16.gmra.mrb[28].mxu0 %v3265_v44  ;;  %577 = vmatmul.mubr.bf16.gmra.mrb[28].mxu1 %v3265_v44 }
 0x12c   :  { %v395_v1 = vpop.f32.mrb[0].mxu0  ;;  %v508_v2 = vpop.f32.mrb[0].mxu1 }
 0x12d   :  { %v3755_v3 = vadd.f32 %v395_v1, %v3748_v61  ;;  %v3758_v4 = vadd.f32 %v508_v2, %v3750_v62  ;;  %v397_v5 = vpop.f32.mrb[1].mxu0  ;;  %v510_v6 = vpop.f32.mrb[1].mxu1 }
 0x12e   :  { %v399_v8 = vpop.f32.mrb[2].mxu0  ;;  %v512_v9 = vpop.f32.mrb[2].mxu1  ;;  %v3769_v12 = vadd.f32 %v397_v5, %v3752_v0  ;;  %v3774_v15 = vadd.f32 %v510_v6, %v3760_v7 }
 0x12f   :  { %v3763_v10 = vmul.f32 0.70710677, %v3755_v3  ;;  %v3766_v11 = vmul.f32 0.70710677, %v3758_v4  ;;  %v401_v21 = vpop.f32.mrb[3].mxu0  ;;  %v514_v22 = vpop.f32.mrb[3].mxu1  ;;  %v3788_v27 = vadd.f32 %v399_v8, %v3748_v61  ;;  %v3795_v30 = vadd.f32 %v512_v9, %v3750_v62 }
 0x130   :  { %v3777_v18 = vmul.f32 0.70710677, %v3769_v12  ;;  %v3780_v23 = vmul.f32 0.70710677, %v3774_v15  ;;  %v3805_v34 = vadd.f32 %v401_v21, %v3752_v0  ;;  %v3820_v43 = vadd.f32 %v514_v22, %v3760_v7 }
 0x131   :  { %v715_v13 = vand.u32 2147483647, %v3763_v10  ;;  %v717_v14 = vand.u32 2147483647, %v3766_v11  ;;  %v3802_v33 = vmul.f32 0.70710677, %v3788_v27 }
 0x132   :  { %v3785_v26 = vand.u32 2147483647, %v3777_v18  ;;  %v3812_v38 = vand.u32 2147483647, %v3780_v23  ;;  %v3815_v39 = vmul.f32 0.70710677, %v3795_v30 }
 0x133   :  { %v779_v16 = vmul.f32 0.3275911, %v715_v13  ;;  %v781_v17 = vmul.f32 0.3275911, %v717_v14  ;;  %v719_v42 = vand.u32 2147483647, %v3802_v33 }
 0x134   :  { %v405_v24 = vpop.f32.mrb[4].mxu0  ;;  %v3782_v25 = vpop.f32.mrb[4].mxu1  ;;  %v780_v41 = vmul.f32 0.3275911, %v3785_v26  ;;  %v1547_v44 = vsub.f32 0.0, %v715_v13  ;;  %v1549_v51 = vsub.f32 0.0, %v717_v14 }
 0x135   :  { %v843_v19 = vadd.f32 1.0, %v779_v16  ;;  %v845_v20 = vadd.f32 1.0, %v781_v17  ;;  %v3790_v28 = vpop.f32.mrb[5].mxu0  ;;  %v3792_v29 = vpop.f32.mrb[5].mxu1  ;;  %v721_v45 = vand.u32 2147483647, %v3815_v39  ;;  %v3859_v22 = vadd.f32 %v405_v24, %v3748_v61 }
 0x136   :  { %v3797_v31 = vpop.f32.mrb[6].mxu0  ;;  %v3799_v32 = vpop.f32.mrb[6].mxu1  ;;  %v783_v47 = vmul.f32 0.3275911, %v719_v42  ;;  %v3826_v48 = vmul.f32 0.70710677, %v3805_v34  ;;  %v1611_v60 = vmul.f32 %v1547_v44, %v715_v13  ;;  %v1613_v16 = vmul.f32 %v1549_v51, %v717_v14 }
 0x137   :  { %3298 = vrcp.f32 %v843_v19  ;;  %v3807_v35 = vpop.f32.mrb[7].mxu0  ;;  %v3809_v36 = vpop.f32.mrb[7].mxu1  ;;  %v782_v52 = vmul.f32 0.3275911, %v3812_v38  ;;  %v785_v53 = vmul.f32 0.3275911, %v721_v45 }
 0x138   :  { %3300 = vrcp.f32 %v845_v20  ;;  %v844_v55 = vadd.f32 1.0, %v780_v41  ;;  %v847_v56 = vadd.f32 1.0, %v783_v47  ;;  %v3836_v57 = vmul.f32 0.70710677, %v3820_v43 }
 0x139   :  { %v849_v63 = vadd.f32 1.0, %v785_v53  ;;  %v3849_v6 = vand.u32 2147483647, %v3826_v48  ;;  %v846_v13 = vadd.f32 1.0, %v782_v52  ;;  %v1675_v21 = vmul.f32 1.442695, %v1611_v60 }
 0x13a   :  { %3302 = vrcp.f32 %v847_v56  ;;  %v3856_v19 = vand.u32 2147483647, %v3836_v57  ;;  %v1679_v51 = vmul.f32 1.442695, %v1613_v16  ;;  %v1551_v52 = vsub.f32 0.0, %v719_v42 }
 0x13b   :  { %3304 = vrcp.f32 %v849_v63  ;;  %v784_v14 = vmul.f32 0.3275911, %v3849_v6  ;;  %v3872_v24 = vmul.f32 0.70710677, %v3859_v22  ;;  %vm1931_vm0 = vcmp.ge.f32.partialorder %v3763_v10, 0.0 }
 0x13c   :  { %v3823_v46 = vpop.f32.mrb[8].mxu0  ;;  %v3828_v49 = vpop.f32.mrb[8].mxu1  ;;  %3306 = vrcp.f32 %v844_v55  ;;  %v1553_v55 = vsub.f32 0.0, %v721_v45  ;;  %v786_v56 = vmul.f32 0.3275911, %v3856_v19  ;;  %vm1933_vm1 = vcmp.ge.f32.partialorder %v3766_v11, 0.0 }
 0x13d   :  { %v3830_v50 = vpop.f32.mrb[9].mxu0  ;;  %v3833_v54 = vpop.f32.mrb[9].mxu1  ;;  %3308 = vrcp.f32 %v846_v13  ;;  %vm1935_vm2 = vcmp.ge.f32.partialorder %v3802_v33, 0.0  ;;  %vm1937_vm3 = vcmp.ge.f32.partialorder %v3815_v39, 0.0  ;;  %v3950_v11 = vadd.f32 %v3790_v28, %v3752_v0 }
 0x13e   :  { %5824 = vst [vmem:[#allocation13_spill] sm:$0xff] %v3830_v50  ;;  %5825 = vst [vmem:[#allocation14_spill] sm:$0xff] %v3833_v54  ;;  %v3838_v58 = vpop.f32.mrb[10].mxu0  ;;  %v3840_v59 = vpop.f32.mrb[10].mxu1  ;;  %3310 = vpow2.f32 %v1675_v21  ;;  %vm1932_vm4 = vcmp.ge.f32.partialorder %v3777_v18, 0.0  ;;  %vm1934_vm5 = vcmp.ge.f32.partialorder %v3780_v23, 0.0 }
 0x13f   :  { %5826 = vst [vmem:[#allocation15_spill] sm:$0xff] %v3838_v58  ;;  %5827 = vst [vmem:[#allocation16_spill] sm:$0xff] %v3840_v59  ;;  %v3842_v1 = vpop.f32.mrb[11].mxu0  ;;  %v3844_v2 = vpop.f32.mrb[11].mxu1  ;;  %3312 = vpow2.f32 %v1679_v51  ;;  %v3282_v51 = vld [vmem:[#allocation8 + $0x60] sm:$0xff]   ;;  %v4081_v18 = vmul.f32 0.5, %v3805_v34 }
 0x140   :  { %5828 = vst [vmem:[#allocation17_spill] sm:$0xff] %v3842_v1  ;;  %5829 = vst [vmem:[#allocation18_spill] sm:$0xff] %v3844_v2  ;;  %3081 = vmatprep.subr.bf16.mxu0 %v3282_v51  ;;  %vm1936_vm6 = vcmp.ge.f32.partialorder %v3826_v48, 0.0  ;;  %vm1938_vm7 = vcmp.ge.f32.partialorder %v3836_v57, 0.0  ;;  %vm1939_vm8 = vcmp.ge.f32.partialorder %v3872_v24, 0.0 }
 0x141   :  { %v3846_v5 = vpop.eup %3298 }
 0x142   :  { %v3851_v8 = vpop.eup %3300  ;;  %v971_v9 = vmul.f32 1.0614054, %v3846_v5 }
 0x143   :  { %v973_v17 = vmul.f32 1.0614054, %v3851_v8 }
 0x144   :  { %v1035_v20 = vadd.f32 -1.4531521, %v971_v9  ;;  %v3861_v37 = vpop.f32.mrb[12].mxu0  ;;  %v3863_v40 = vpop.f32.mrb[12].mxu1  ;;  %v848_v9 = vadd.f32 1.0, %v784_v14 }
 0x145   :  { %5830 = vst [vmem:[#allocation19_spill] sm:$0xff] %v3861_v37  ;;  %5831 = vst [vmem:[#allocation20_spill] sm:$0xff] %v3863_v40  ;;  %v1037_v41 = vadd.f32 -1.4531521, %v973_v17  ;;  %v3866_v44 = vpop.f32.mrb[13].mxu0  ;;  %v3878_v16 = vpop.eup %3302  ;;  %v1617_v40 = vmul.f32 %v1553_v55, %v721_v45  ;;  %v850_v37 = vadd.f32 1.0, %v786_v56 }
 0x146   :  { %5832 = vst [vmem:[#allocation21_spill] sm:$0xff] %v3866_v44  ;;  %v1099_v47 = vmul.f32 %v3846_v5, %v1035_v20  ;;  %v3875_v17 = vand.u32 2147483647, %v3872_v24  ;;  %v1615_v44 = vmul.f32 %v1551_v52, %v719_v42  ;;  %v3881_v2 = vpop.eup %3304  ;;  %v975_v13 = vmul.f32 1.0614054, %v3878_v16  ;;  %v3283_v42 = vld [vmem:[#allocation8 + $0xe0] sm:$0xff]  }
 0x147   :  { %v1101_v53 = vmul.f32 %v3851_v8, %v1037_v41  ;;  %v3885_v14 = vpop.eup %3306  ;;  %3314 = vrcp.f32 %v848_v9  ;;  %v3889_v45 = vpop.f32.mrb[13].mxu1  ;;  %3145 = vmatprep.subr.bf16.mxu1 %v3283_v42 }
 0x148   :  { %v1163_v60 = vadd.f32 1.4214138, %v1099_v47  ;;  %v787_v21 = vmul.f32 0.3275911, %v3875_v17  ;;  %5833 = vst [vmem:[#allocation22_spill] sm:$0xff] %v3889_v45  ;;  %3316 = vrcp.f32 %v850_v37  ;;  %v3895_v54 = vpop.eup %3308 }
 0x149   :  { %v1165_v63 = vadd.f32 1.4214138, %v1101_v53  ;;  %v1683_v55 = vmul.f32 1.442695, %v1615_v44  ;;  %v972_v58 = vmul.f32 1.0614054, %v3885_v14  ;;  %v3311_v44 = vpop.eup %3310 }
 0x14a   :  { %v1227_v20 = vmul.f32 %v3846_v5, %v1163_v60  ;;  %v977_v60 = vmul.f32 1.0614054, %v3881_v2  ;;  %v974_v42 = vmul.f32 1.0614054, %v3895_v54 }
 0x14b   :  { %v1229_v41 = vmul.f32 %v3851_v8, %v1165_v63  ;;  %v1039_v63 = vadd.f32 -1.4531521, %v975_v13  ;;  %v851_v13 = vadd.f32 1.0, %v787_v21  ;;  %3318 = vpow2.f32 %v1683_v55 }
 0x14c   :  { %v1291_v47 = vadd.f32 -0.28449672, %v1227_v20  ;;  %v1041_v56 = vadd.f32 -1.4531521, %v977_v60  ;;  %v1687_v20 = vmul.f32 1.442695, %v1617_v40  ;;  %v3313_v60 = vpop.eup %3312 }
 0x14d   :  { %v1293_v53 = vadd.f32 -0.28449672, %v1229_v41  ;;  %v1103_v41 = vmul.f32 %v3878_v16, %v1039_v63  ;;  %v1036_v50 = vadd.f32 -1.4531521, %v972_v58 }
 0x14e   :  { %v1355_v1 = vmul.f32 %v3846_v5, %v1291_v47  ;;  %v1105_v47 = vmul.f32 %v3881_v2, %v1041_v56  ;;  %3320 = vpow2.f32 %v1687_v20 }
 0x14f   :  { %v1357_v52 = vmul.f32 %v3851_v8, %v1293_v53  ;;  %v1167_v53 = vadd.f32 1.4214138, %v1103_v41  ;;  %3322 = vrcp.f32 %v851_v13  ;;  %v1100_v56 = vmul.f32 %v3885_v14, %v1036_v50 }
 0x150   :  { %v1419_v59 = vadd.f32 0.2548296, %v1355_v1  ;;  %v1169_v1 = vadd.f32 1.4214138, %v1105_v47  ;;  %v1038_v41 = vadd.f32 -1.4531521, %v974_v42 }
 0x151   :  { %v1421_v9 = vadd.f32 0.2548296, %v1357_v52  ;;  %v1231_v37 = vmul.f32 %v3878_v16, %v1167_v53  ;;  %v587_v13 = vmul.f32 0.5, %v3755_v3  ;;  %v1550_v53 = vsub.f32 0.0, %v3812_v38 }
 0x152   :  { %v1483_v45 = vmul.f32 %v3846_v5, %v1419_v59  ;;  %v1233_v21 = vmul.f32 %v3881_v2, %v1169_v1  ;;  %v3902_v59 = vpop.eup %3314  ;;  %v1548_v5 = vsub.f32 0.0, %v3785_v26  ;;  %v589_v50 = vmul.f32 0.5, %v3758_v4 }
 0x153   :  { %v1485_v40 = vmul.f32 %v3851_v8, %v1421_v9  ;;  %v1295_v52 = vadd.f32 -0.28449672, %v1231_v37  ;;  %v3910_v47 = vpop.eup %3316  ;;  %v1164_v37 = vadd.f32 1.4214138, %v1100_v56  ;;  %v3928_v56 = vadd.f32 %v3782_v25, %v3750_v62 }
 0x154   :  { %v1803_v51 = vmul.f32 %v3311_v44, %v1483_v45  ;;  %v1297_v8 = vadd.f32 -0.28449672, %v1233_v21  ;;  %v3907_v45 = vpop.f32.mrb[14].mxu0  ;;  %v1612_v1 = vmul.f32 %v1548_v5, %v3785_v26  ;;  %v1102_v21 = vmul.f32 %v3895_v54, %v1038_v41 }
 0x155   :  { %v1805_v63 = vmul.f32 %v3313_v60, %v1485_v40  ;;  %v1359_v58 = vmul.f32 %v3878_v16, %v1295_v52  ;;  %5834 = vst [vmem:[#allocation23_spill] sm:$0xff] %v3907_v45  ;;  %v976_v40 = vmul.f32 1.0614054, %v3902_v59  ;;  %v3319_v42 = vpop.eup %3318  ;;  %v1614_v26 = vmul.f32 %v1550_v53, %v3812_v38  ;;  %v3945_v10 = vpop.f32.mrb[15].mxu0 }
 0x156   :  { %v1867_v55 = vsub.f32 1.0, %v1803_v51  ;;  %v1361_v9 = vmul.f32 %v3881_v2, %v1297_v8  ;;  %v978_v8 = vmul.f32 1.0614054, %v3910_v47  ;;  %v591_v41 = vmul.f32 0.5, %v3788_v27  ;;  %5836 = vst [vmem:[#allocation25_spill] sm:$0xff] %v3945_v10 }
 0x157   :  { %v1869_v20 = vsub.f32 1.0, %v1805_v63  ;;  %v1423_v44 = vadd.f32 0.2548296, %v1359_v58  ;;  %v3923_v58 = vpop.f32.mrb[14].mxu1  ;;  %v1228_v45 = vmul.f32 %v3885_v14, %v1164_v37  ;;  %v1166_v53 = vadd.f32 1.4214138, %v1102_v21 }
 0x158   :  { %v1425_v60 = vadd.f32 0.2548296, %v1361_v9  ;;  %v1995_v51 = vsub.f32 0.0, %v1867_v55  ;;  %5835 = vst [vmem:[#allocation24_spill] sm:$0xff] %v3923_v58  ;;  %v3321_v4 = vpop.eup %3320  ;;  %v1040_v9 = vadd.f32 -1.4531521, %v976_v40 }
 0x159   :  { %v1487_v63 = vmul.f32 %v3878_v16, %v1423_v44  ;;  %v1997_v3 = vsub.f32 0.0, %v1869_v20  ;;  %v3930_v16 = vpop.eup %3322  ;;  %v1677_v44 = vmul.f32 1.442695, %v1612_v1  ;;  %v1552_v37 = vsub.f32 0.0, %v3849_v6  ;;  %v3966_v10 = vpop.f32.mrb[15].mxu1 }
 0x15a   :  { %v1489_v52 = vmul.f32 %v3881_v2, %v1425_v60  ;;  %v593_v2 = vmul.f32 0.5, %v3795_v30  ;;  %v2059_v58 = vsel %vm1931_vm0, %v1867_v55, %v1995_v51  ;;  %v1104_v27 = vmul.f32 %v3902_v59, %v1040_v9  ;;  %5839 = vst [vmem:[#allocation28_spill] sm:$0xff] %v3966_v10 }
 0x15b   :  { %v1807_v5 = vmul.f32 %v3319_v42, %v1487_v63  ;;  %v2061_v25 = vsel %vm1933_vm1, %v1869_v20, %v1997_v3  ;;  %v1042_v63 = vadd.f32 -1.4531521, %v978_v8  ;;  %v979_v30 = vmul.f32 1.0614054, %v3930_v16 }
 0x15c   :  { %v1809_v60 = vmul.f32 %v3321_v4, %v1489_v52  ;;  %v3943_v42 = vmul.f32 0.70710677, %v3928_v56  ;;  %v2123_v55 = vadd.f32 1.0, %v2059_v58  ;;  %v2125_v20 = vadd.f32 1.0, %v2061_v25 }
 0x15d   :  { %v1871_v38 = vsub.f32 1.0, %v1807_v5  ;;  %v1292_v21 = vadd.f32 -0.28449672, %v1228_v45  ;;  %v1230_v52 = vmul.f32 %v3895_v54, %v1166_v53  ;;  %v1168_v5 = vadd.f32 1.4214138, %v1104_v27  ;;  %v3285_v45 = vld [vmem:[#allocation8 + $0xa0] sm:$0xff]  }
 0x15e   :  { %v1873_v40 = vsub.f32 1.0, %v1809_v60  ;;  %v3954_v3 = vand.u32 2147483647, %v3943_v42  ;;  %v1106_v39 = vmul.f32 %v3910_v47, %v1042_v63  ;;  %v1043_v9 = vadd.f32 -1.4531521, %v979_v30  ;;  %v3284_v60 = vld [vmem:[#allocation8 + $0x20] sm:$0xff]   ;;  %3146 = vmatpush3.bf16.msra.mxu1 %v3285_v45 }
 0x15f   :  { %v1999_v1 = vsub.f32 0.0, %v1871_v38  ;;  %v3958_v28 = vmul.f32 %v2123_v55, %v587_v13  ;;  %v3968_v53 = vmul.f32 %v2125_v20, %v589_v50  ;;  %3082 = vmatpush3.bf16.msra.mxu0 %v3284_v60  ;;  %v1356_v63 = vmul.f32 %v3885_v14, %v1292_v21  ;;  %v4006_v60 = vpop.f32.mrb[16].mxu0 }
 0x160   :  { %v2001_v33 = vsub.f32 0.0, %v1873_v40  ;;  %v1554_v30 = vsub.f32 0.0, %v3856_v19  ;;  %3324 = vpow2.f32 %v1677_v44  ;;  %v1294_v55 = vadd.f32 -0.28449672, %v1230_v52  ;;  %5842 = vst [vmem:[#allocation31_spill] sm:$0xff] %v4006_v60 }
 0x161   :  { %v2063_v51 = vsel %vm1935_vm2, %v1871_v38, %v1999_v1  ;;  %5837 = vst [vmem:[#allocation26_spill] sm:$0xff] %v3958_v28  ;;  %v789_v38 = vmul.f32 0.3275911, %v3954_v3  ;;  %v3964_v1 = vmul.f32 0.70710677, %v3950_v11  ;;  %5840 = vst [vmem:[#allocation29_spill] sm:$0xff] %v3968_v53  ;;  %v3987_v44 = vadd.f32 %v3792_v29, %v3760_v7 }
 0x162   :  { %v2127_v8 = vadd.f32 1.0, %v2063_v51  ;;  %v2065_v4 = vsel %vm1937_vm3, %v1873_v40, %v2001_v33  ;;  %v1681_v40 = vmul.f32 1.442695, %v1614_v26  ;;  %v1232_v26 = vmul.f32 %v3902_v59, %v1168_v5 }
 0x163   :  { %v2129_v58 = vadd.f32 1.0, %v2065_v4  ;;  %v1107_v33 = vmul.f32 %v3930_v16, %v1043_v9  ;;  %v853_v20 = vadd.f32 1.0, %v789_v38  ;;  %v3982_v51 = vand.u32 2147483647, %v3964_v1 }
 0x164   :  { %v3960_v25 = vmul.f32 %v2127_v8, %v591_v41  ;;  %v1616_v41 = vmul.f32 %v1552_v37, %v3849_v6  ;;  %3326 = vpow2.f32 %v1681_v40  ;;  %v1420_v21 = vadd.f32 0.2548296, %v1356_v63 }
 0x165   :  { %v3970_v27 = vmul.f32 %v2129_v58, %v593_v2  ;;  %v1170_v2 = vadd.f32 1.4214138, %v1106_v39  ;;  %v1618_v37 = vmul.f32 %v1554_v30, %v3856_v19  ;;  %v1358_v52 = vmul.f32 %v3895_v54, %v1294_v55 }
 0x166   :  { %5838 = vst [vmem:[#allocation27_spill] sm:$0xff] %v3960_v25  ;;  %v1685_v6 = vmul.f32 1.442695, %v1616_v41  ;;  %v1296_v8 = vadd.f32 -0.28449672, %v1232_v26  ;;  %v3992_v4 = vadd.f32 %v3797_v31, %v3748_v61  ;;  %v3996_v58 = vadd.f32 %v3799_v32, %v3750_v62  ;;  %v4012_v32 = vpop.f32.mrb[16].mxu1 }
 0x167   :  { %5841 = vst [vmem:[#allocation30_spill] sm:$0xff] %v3970_v27  ;;  %v1234_v5 = vmul.f32 %v3910_v47, %v1170_v2  ;;  %v1171_v39 = vadd.f32 1.4214138, %v1107_v33  ;;  %3328 = vrcp.f32 %v853_v20  ;;  %v788_v19 = vmul.f32 0.3275911, %v3982_v51  ;;  %5843 = vst [vmem:[#allocation32_spill] sm:$0xff] %v4012_v32 }
 0x168   :  { %v4001_v29 = vmul.f32 0.70710677, %v3987_v44  ;;  %v4004_v9 = vmul.f32 0.70710677, %v3992_v4  ;;  %v1555_v31 = vsub.f32 0.0, %v3875_v17  ;;  %v1484_v45 = vmul.f32 %v3885_v14, %v1420_v21 }
 0x169   :  { %v4010_v38 = vmul.f32 0.70710677, %v3996_v58  ;;  %v1422_v40 = vadd.f32 0.2548296, %v1358_v52  ;;  %v1360_v30 = vmul.f32 %v3902_v59, %v1296_v8  ;;  %3330 = vpow2.f32 %v1685_v6 }
 0x16a   :  { %v4016_v63 = vand.u32 2147483647, %v4001_v29  ;;  %v4019_v41 = vand.u32 2147483647, %v4004_v9  ;;  %v1298_v55 = vadd.f32 -0.28449672, %v1234_v5  ;;  %v3325_v2 = vpop.eup %3324  ;;  %v1235_v33 = vmul.f32 %v3930_v16, %v1171_v39 }
 0x16b   :  { %v1689_v26 = vmul.f32 1.442695, %v1618_v37  ;;  %v852_v20 = vadd.f32 1.0, %v788_v19  ;;  %v1619_v21 = vmul.f32 %v1555_v31, %v3875_v17  ;;  %v4027_v52 = vand.u32 2147483647, %v4010_v38 }
 0x16c   :  { %v790_v50 = vmul.f32 0.3275911, %v4016_v63  ;;  %v791_v14 = vmul.f32 0.3275911, %v4019_v41  ;;  %v1804_v53 = vmul.f32 %v3325_v2, %v1484_v45  ;;  %v1486_v8 = vmul.f32 %v3895_v54, %v1422_v40  ;;  %v4038_v2 = vpop.f32.mrb[17].mxu0 }
 0x16d   :  { %v4032_v37 = vadd.f32 %v3807_v35, %v3752_v0  ;;  %v1424_v5 = vadd.f32 0.2548296, %v1360_v30  ;;  %v1362_v39 = vmul.f32 %v3910_v47, %v1298_v55  ;;  %3332 = vpow2.f32 %v1689_v26  ;;  %5844 = vst [vmem:[#allocation33_spill] sm:$0xff] %v4038_v2  ;;  %v4106_v10 = vpop.f32.mrb[18].mxu0 }
 0x16e   :  { %v3327_v13 = vpop.eup %3326  ;;  %v854_v6 = vadd.f32 1.0, %v790_v50  ;;  %v1299_v19 = vadd.f32 -0.28449672, %v1235_v33  ;;  %3334 = vrcp.f32 %v852_v20  ;;  %v855_v27 = vadd.f32 1.0, %v791_v14  ;;  %5848 = vst [vmem:[#allocation37_spill] sm:$0xff] %v4106_v10 }
 0x16f   :  { %v1691_v31 = vmul.f32 1.442695, %v1619_v21  ;;  %v793_v45 = vmul.f32 0.3275911, %v4027_v52  ;;  %v1868_v54 = vsub.f32 1.0, %v1804_v53  ;;  %v1806_v50 = vmul.f32 %v3327_v13, %v1486_v8 }
 0x170   :  { %3336 = vrcp.f32 %v854_v6  ;;  %v4041_v35 = vmul.f32 0.70710677, %v4032_v37  ;;  %v1488_v40 = vmul.f32 %v3902_v59, %v1424_v5  ;;  %v1426_v30 = vadd.f32 0.2548296, %v1362_v39 }
 0x171   :  { %v4035_v17 = vpop.eup %3328  ;;  %v4046_v55 = vadd.f32 %v3809_v36, %v3760_v7  ;;  %v4050_v26 = vadd.f32 %v3823_v46, %v3748_v61  ;;  %v1363_v33 = vmul.f32 %v3930_v16, %v1299_v19  ;;  %3338 = vrcp.f32 %v855_v27 }
 0x172   :  { %v981_v20 = vmul.f32 1.0614054, %v4035_v17  ;;  %v4055_v53 = vand.u32 2147483647, %v4041_v35  ;;  %3340 = vpow2.f32 %v1691_v31  ;;  %v857_v59 = vadd.f32 1.0, %v793_v45 }
 0x173   :  { %v3331_v13 = vpop.eup %3330  ;;  %v4058_v14 = vmul.f32 0.70710677, %v4046_v55  ;;  %v1996_v36 = vsub.f32 0.0, %v1868_v54  ;;  %v1870_v21 = vsub.f32 1.0, %v1806_v50  ;;  %v4065_v5 = vmul.f32 0.70710677, %v4050_v26 }
 0x174   :  { %v792_v8 = vmul.f32 0.3275911, %v4055_v53  ;;  %v1808_v46 = vmul.f32 %v3331_v13, %v1488_v40  ;;  %v1490_v27 = vmul.f32 %v3910_v47, %v1426_v30  ;;  %v1427_v39 = vadd.f32 0.2548296, %v1363_v33 }
 0x175   :  { %5845 = vst [vmem:[#allocation34_spill] sm:$0xff] %v4058_v14  ;;  %v4062_v6 = vand.u32 2147483647, %v4058_v14  ;;  %5846 = vst [vmem:[#allocation35_spill] sm:$0xff] %v4065_v5  ;;  %v1045_v19 = vadd.f32 -1.4531521, %v981_v20  ;;  %3342 = vrcp.f32 %v857_v59  ;;  %v2060_v28 = vsel %vm1932_vm4, %v1868_v54, %v1996_v36 }
 0x176   :  { %v588_v45 = vmul.f32 0.5, %v3769_v12  ;;  %v1998_v40 = vsub.f32 0.0, %v1870_v21  ;;  %v856_v13 = vadd.f32 1.0, %v792_v8  ;;  %v590_v32 = vmul.f32 0.5, %v3774_v15  ;;  %v3286_v12 = vld [vmem:[#allocation8 + $0x68] sm:$0xff]  }
 0x177   :  { %v3333_v31 = vpop.eup %3332  ;;  %v794_v25 = vmul.f32 0.3275911, %v4062_v6  ;;  %v1872_v47 = vsub.f32 1.0, %v1808_v46  ;;  %v4078_v30 = vand.u32 2147483647, %v4065_v5  ;;  %v1491_v54 = vmul.f32 %v3930_v16, %v1427_v39  ;;  %3083 = vmatprep.subr.bf16.mxu0 %v3286_v12  ;;  %v3287_v36 = vld [vmem:[#allocation8 + $0xe8] sm:$0xff]  }
 0x178   :  { %v4070_v50 = vpop.eup %3334  ;;  %v1810_v33 = vmul.f32 %v3333_v31, %v1490_v27  ;;  %v1109_v20 = vmul.f32 %v4035_v17, %v1045_v19  ;;  %v2124_v59 = vadd.f32 1.0, %v2060_v28  ;;  %v4087_v15 = vmul.f32 0.5, %v3820_v43  ;;  %v4093_v16 = vpop.f32.mrb[17].mxu1  ;;  %3147 = vmatprep.subr.bf16.mxu1 %v3287_v36 }
 0x179   :  { %v980_v23 = vmul.f32 1.0614054, %v4070_v50  ;;  %v2062_v46 = vsel %vm1934_vm5, %v1870_v21, %v1998_v40  ;;  %3344 = vrcp.f32 %v856_v13  ;;  %v858_v27 = vadd.f32 1.0, %v794_v25  ;;  %5847 = vst [vmem:[#allocation36_spill] sm:$0xff] %v4093_v16 }
 0x17a   :  { %v4073_v2 = vpop.eup %3336  ;;  %v2000_v28 = vsub.f32 0.0, %v1872_v47  ;;  %v1557_v43 = vsub.f32 0.0, %v3954_v3  ;;  %v795_v19 = vmul.f32 0.3275911, %v4078_v30  ;;  %v4100_v31 = vadd.f32 %v3828_v49, %v3750_v62 }
 0x17b   :  { %v4090_v8 = vpop.eup %3338  ;;  %v982_v34 = vmul.f32 1.0614054, %v4073_v2  ;;  %v1874_v21 = vsub.f32 1.0, %v1810_v33  ;;  %v4103_v40 = vmul.f32 0.5, %v3859_v22  ;;  %v1173_v13 = vadd.f32 1.4214138, %v1109_v20 }
 0x17c   :  { %v3341_v39 = vpop.eup %3340  ;;  %v2126_v12 = vadd.f32 1.0, %v2062_v46  ;;  %v1044_v16 = vadd.f32 -1.4531521, %v980_v23  ;;  %v983_v60 = vmul.f32 1.0614054, %v4090_v8  ;;  %v4109_v5 = vmul.f32 0.5, %v3928_v56 }
 0x17d   :  { %v1811_v25 = vmul.f32 %v3341_v39, %v1491_v54  ;;  %v1046_v14 = vadd.f32 -1.4531521, %v982_v34  ;;  %3346 = vrcp.f32 %v858_v27  ;;  %v4112_v49 = vmul.f32 0.70710677, %v4100_v31 }
 0x17e   :  { %v4116_v22 = vmul.f32 %v2124_v59, %v588_v45  ;;  %v2064_v54 = vsel %vm1936_vm6, %v1872_v47, %v2000_v28  ;;  %v1621_v20 = vmul.f32 %v1557_v43, %v3954_v3  ;;  %v859_v23 = vadd.f32 1.0, %v795_v19 }
 0x17f   :  { %5849 = vst [vmem:[#allocation38_spill] sm:$0xff] %v4112_v49  ;;  %v4114_v33 = vpop.eup %3342  ;;  %v2002_v36 = vsub.f32 0.0, %v1874_v21  ;;  %v1875_v56 = vsub.f32 1.0, %v1811_v25  ;;  %v1556_v46 = vsub.f32 0.0, %v3982_v51  ;;  %v4124_v34 = vand.u32 2147483647, %v4112_v49 }
 0x180   :  { %5850 = vst [vmem:[#allocation39_spill] sm:$0xff] %v4116_v22  ;;  %v4126_v27 = vmul.f32 %v2126_v12, %v590_v32  ;;  %v1237_v45 = vmul.f32 %v4035_v17, %v1173_v13  ;;  %v1108_v59 = vmul.f32 %v4070_v50, %v1044_v16  ;;  %v1047_v48 = vadd.f32 -1.4531521, %v983_v60  ;;  %v4148_v49 = vpop.f32.mrb[18].mxu1 }
 0x181   :  { %v2128_v47 = vadd.f32 1.0, %v2064_v54  ;;  %v1110_v39 = vmul.f32 %v4073_v2, %v1046_v14  ;;  %v985_v3 = vmul.f32 1.0614054, %v4114_v33  ;;  %v797_v28 = vmul.f32 0.3275911, %v4124_v34  ;;  %5853 = vst [vmem:[#allocation42_spill] sm:$0xff] %v4148_v49 }
 0x182   :  { %5851 = vst [vmem:[#allocation40_spill] sm:$0xff] %v4126_v27  ;;  %v1695_v43 = vmul.f32 1.442695, %v1621_v20  ;;  %v4134_v19 = vmul.f32 0.5, %v3950_v11  ;;  %v1558_v25 = vsub.f32 0.0, %v4016_v63  ;;  %3348 = vrcp.f32 %v859_v23 }
 0x183   :  { %v4137_v32 = vpop.eup %3344  ;;  %v2066_v16 = vsel %vm1938_vm7, %v1874_v21, %v2002_v36  ;;  %v2003_v60 = vsub.f32 0.0, %v1875_v56  ;;  %v1620_v13 = vmul.f32 %v1556_v46, %v3982_v51  ;;  %v1559_v14 = vsub.f32 0.0, %v4019_v41  ;;  %v3288_v36 = vld [vmem:[#allocation8 + $0x28] sm:$0xff]  }
 0x184   :  { %v1301_v12 = vadd.f32 -0.28449672, %v1237_v45  ;;  %v1172_v54 = vadd.f32 1.4214138, %v1108_v59  ;;  %v1111_v20 = vmul.f32 %v4090_v8, %v1047_v48  ;;  %v861_v27 = vadd.f32 1.0, %v797_v28  ;;  %v3289_v46 = vld [vmem:[#allocation8 + $0xa8] sm:$0xff]   ;;  %3084 = vmatpush3.bf16.msra.mxu0 %v3288_v36 }
 0x185   :  { %v4145_v11 = vmul.f32 %v2128_v47, %v4081_v18  ;;  %v1174_v22 = vadd.f32 1.4214138, %v1110_v39  ;;  %v1049_v23 = vadd.f32 -1.4531521, %v985_v3  ;;  %v1561_v10 = vsub.f32 0.0, %v4027_v52  ;;  %3148 = vmatpush3.bf16.msra.mxu1 %v3289_v46 }
 0x186   :  { %v2130_v57 = vadd.f32 1.0, %v2066_v16  ;;  %3350 = vpow2.f32 %v1695_v43  ;;  %v1622_v51 = vmul.f32 %v1558_v25, %v4016_v63  ;;  %v984_v21 = vmul.f32 1.0614054, %v4137_v32  ;;  %v5854_v16 = vld [vmem:[#allocation13_spill] sm:$0xff] }
 0x187   :  { %5852 = vst [vmem:[#allocation41_spill] sm:$0xff] %v4145_v11  ;;  %v4152_v45 = vpop.eup %3346  ;;  %v2067_v18 = vsel %vm1939_vm8, %v1875_v56, %v2003_v60  ;;  %v1693_v59 = vmul.f32 1.442695, %v1620_v13  ;;  %v4157_v48 = vmul.f32 0.5, %v3987_v44  ;;  %v1623_v47 = vmul.f32 %v1559_v14, %v4019_v41 }
 0x188   :  { %v1365_v39 = vmul.f32 %v4035_v17, %v1301_v12  ;;  %v1236_v3 = vmul.f32 %v4070_v50, %v1172_v54  ;;  %v1175_v63 = vadd.f32 1.4214138, %v1111_v20  ;;  %3352 = vrcp.f32 %v861_v27 }
 0x189   :  { %v1238_v28 = vmul.f32 %v4073_v2, %v1174_v22  ;;  %v4164_v43 = vmul.f32 0.5, %v3992_v4  ;;  %v1113_v24 = vmul.f32 %v4114_v33, %v1049_v23  ;;  %v1625_v44 = vmul.f32 %v1561_v10, %v4027_v52 }
 0x18a   :  { %v1697_v56 = vmul.f32 1.442695, %v1622_v51  ;;  %v1048_v25 = vadd.f32 -1.4531521, %v984_v21  ;;  %v986_v41 = vmul.f32 1.0614054, %v4152_v45  ;;  %v4171_v60 = vadd.f32 %v5854_v16, %v3752_v0 }
 0x18b   :  { %v4174_v27 = vmul.f32 %v2130_v57, %v4087_v15  ;;  %v2131_v13 = vadd.f32 1.0, %v2067_v18  ;;  %v1699_v22 = vmul.f32 1.442695, %v1623_v47  ;;  %v4177_v4 = vmul.f32 0.5, %v3996_v58  ;;  %v4187_v58 = vpop.f32.mrb[19].mxu0 }
 0x18c   :  { %v4179_v14 = vpop.eup %3348  ;;  %v1429_v12 = vadd.f32 0.2548296, %v1365_v39  ;;  %v1300_v10 = vadd.f32 -0.28449672, %v1236_v3  ;;  %v1239_v52 = vmul.f32 %v4090_v8, %v1175_v63  ;;  %v1560_v54 = vsub.f32 0.0, %v4055_v53  ;;  %5856 = vst [vmem:[#allocation43_spill] sm:$0xff] %v4187_v58 }
 0x18d   :  { %5855 = vst [vmem:[#allocation13_spill] sm:$0xff] %v4174_v27  ;;  %3354 = vpow2.f32 %v1693_v59  ;;  %v1302_v20 = vadd.f32 -0.28449672, %v1238_v28  ;;  %v1177_v23 = vadd.f32 1.4214138, %v1113_v24  ;;  %v1112_v15 = vmul.f32 %v4137_v32, %v1048_v25 }
 0x18e   :  { %v1703_v51 = vmul.f32 1.442695, %v1625_v44  ;;  %3356 = vpow2.f32 %v1697_v56  ;;  %v1050_v57 = vadd.f32 -1.4531521, %v986_v41  ;;  %v4185_v21 = vmul.f32 0.70710677, %v4171_v60 }
 0x18f   :  { %3358 = vpow2.f32 %v1699_v22  ;;  %v4190_v36 = vmul.f32 0.5, %v4032_v37  ;;  %v1562_v46 = vsub.f32 0.0, %v4062_v6  ;;  %v987_v18 = vmul.f32 1.0614054, %v4179_v14 }
 0x190   :  { %v3351_v59 = vpop.eup %3350  ;;  %v1493_v47 = vmul.f32 %v4035_v17, %v1429_v12  ;;  %v1364_v39 = vmul.f32 %v4070_v50, %v1300_v10  ;;  %v1303_v3 = vadd.f32 -0.28449672, %v1239_v52  ;;  %v1624_v63 = vmul.f32 %v1560_v54, %v4055_v53  ;;  %v4211_v53 = vpop.f32.mrb[19].mxu1 }
 0x191   :  { %v4198_v28 = vmul.f32 %v2131_v13, %v4103_v40  ;;  %v1241_v24 = vmul.f32 %v4114_v33, %v1177_v23  ;;  %3360 = vpow2.f32 %v1703_v51  ;;  %v4202_v37 = vand.u32 2147483647, %v4185_v21  ;;  %5858 = vst [vmem:[#allocation45_spill] sm:$0xff] %v4211_v53 }
 0x192   :  { %v4204_v44 = vpop.eup %3352  ;;  %v1366_v56 = vmul.f32 %v4073_v2, %v1302_v20  ;;  %v1176_v25 = vadd.f32 1.4214138, %v1112_v15  ;;  %v4208_v17 = vmul.f32 0.5, %v4046_v55  ;;  %v1114_v41 = vmul.f32 %v4152_v45, %v1050_v57 }
 0x193   :  { %5857 = vst [vmem:[#allocation44_spill] sm:$0xff] %v4198_v28  ;;  %v1626_v40 = vmul.f32 %v1562_v46, %v4062_v6  ;;  %v4215_v16 = vmul.f32 0.5, %v4050_v26  ;;  %v1051_v13 = vadd.f32 -1.4531521, %v987_v18  ;;  %v796_v22 = vmul.f32 0.3275911, %v4202_v37 }
 0x194   :  { %v1813_v12 = vmul.f32 %v3351_v59, %v1493_v47  ;;  %v1428_v10 = vadd.f32 0.2548296, %v1364_v39  ;;  %v1367_v52 = vmul.f32 %v4090_v8, %v1303_v3  ;;  %v1701_v54 = vmul.f32 1.442695, %v1624_v63  ;;  %v5859_v26 = vld [vmem:[#allocation14_spill] sm:$0xff]  ;;  %v5860_v39 = vld [vmem:[#allocation15_spill] sm:$0xff] }
 0x195   :  { %v1305_v20 = vadd.f32 -0.28449672, %v1241_v24  ;;  %v1563_v55 = vsub.f32 0.0, %v4078_v30  ;;  %v989_v23 = vmul.f32 1.0614054, %v4204_v44  ;;  %v860_v51 = vadd.f32 1.0, %v796_v22 }
 0x196   :  { %v1430_v15 = vadd.f32 0.2548296, %v1366_v56  ;;  %v1240_v6 = vmul.f32 %v4137_v32, %v1176_v25  ;;  %v1178_v57 = vadd.f32 1.4214138, %v1114_v41  ;;  %v4224_v46 = vadd.f32 %v5859_v26, %v3760_v7 }
 0x197   :  { %v3355_v18 = vpop.eup %3354  ;;  %vm1941_vm9 = vcmp.ge.f32.partialorder %v3943_v42, 0.0  ;;  %v1705_v59 = vmul.f32 1.442695, %v1626_v40  ;;  %v1115_v47 = vmul.f32 %v4179_v14, %v1051_v13  ;;  %3362 = vrcp.f32 %v860_v51 }
 0x198   :  { %v4230_v3 = vadd.f32 %v5860_v39, %v3748_v61  ;;  %v3357_v63 = vpop.eup %3356  ;;  %v1877_v24 = vsub.f32 1.0, %v1813_v12  ;;  %v1492_v56 = vmul.f32 %v4070_v50, %v1428_v10  ;;  %v1431_v25 = vadd.f32 0.2548296, %v1367_v52  ;;  %v4243_v50 = vpop.f32.mrb[20].mxu0 }
 0x199   :  { %3364 = vpow2.f32 %v1701_v54  ;;  %v3359_v41 = vpop.eup %3358  ;;  %v1369_v22 = vmul.f32 %v4114_v33, %v1305_v20  ;;  %v1627_v26 = vmul.f32 %v1563_v55, %v4078_v30  ;;  %v1053_v28 = vadd.f32 -1.4531521, %v989_v23  ;;  %5862 = vst [vmem:[#allocation15_spill] sm:$0xff] %v4243_v50  ;;  %v4251_v20 = vpop.f32.mrb[20].mxu1 }
 0x19a   :  { %v4236_v40 = vmul.f32 0.70710677, %v4224_v46  ;;  %v1494_v13 = vmul.f32 %v4073_v2, %v1430_v15  ;;  %v1304_v51 = vadd.f32 -0.28449672, %v1240_v6  ;;  %v1242_v39 = vmul.f32 %v4152_v45, %v1178_v57  ;;  %5863 = vst [vmem:[#allocation46_spill] sm:$0xff] %v4251_v20 }
 0x19b   :  { %v4241_v12 = vmul.f32 0.70710677, %v4230_v3  ;;  %v3361_v10 = vpop.eup %3360  ;;  %3366 = vpow2.f32 %v1705_v59  ;;  %v1179_v52 = vadd.f32 1.4214138, %v1115_v47  ;;  %v4246_v54 = vmul.f32 0.5, %v4100_v31 }
 0x19c   :  { %v4249_v30 = vand.u32 2147483647, %v4236_v40  ;;  %v2005_v2 = vsub.f32 0.0, %v1877_v24  ;;  %v1812_v55 = vmul.f32 %v3355_v18, %v1492_v56  ;;  %v1495_v23 = vmul.f32 %v4090_v8, %v1431_v25  ;;  %v5864_v56 = vld [vmem:[#allocation16_spill] sm:$0xff] }
 0x19d   :  { %5861 = vst [vmem:[#allocation14_spill] sm:$0xff] %v4241_v12  ;;  %v4255_v15 = vand.u32 2147483647, %v4241_v12  ;;  %v1433_v6 = vadd.f32 0.2548296, %v1369_v22  ;;  %v1117_v59 = vmul.f32 %v4204_v44, %v1053_v28  ;;  %v1814_v31 = vmul.f32 %v3357_v63, %v1494_v13 }
 0x19e   :  { %v1707_v57 = vmul.f32 1.442695, %v1627_v26  ;;  %v798_v47 = vmul.f32 0.3275911, %v4249_v30  ;;  %v1368_v27 = vmul.f32 %v4137_v32, %v1304_v51  ;;  %v1306_v11 = vadd.f32 -0.28449672, %v1242_v39 }
 0x19f   :  { %v799_v50 = vmul.f32 0.3275911, %v4255_v15  ;;  %v1243_v20 = vmul.f32 %v4179_v14, %v1179_v52  ;;  %v1565_v18 = vsub.f32 0.0, %v4124_v34  ;;  %v4265_v25 = vadd.f32 %v5864_v56, %v3750_v62 }
 0x1a0   :  { %v862_v8 = vadd.f32 1.0, %v798_v47  ;;  %v2069_v28 = vsel %vm1941_vm9, %v1877_v24, %v2005_v2  ;;  %v1876_v22 = vsub.f32 1.0, %v1812_v55  ;;  %vm1940_vm10 = vcmp.ge.f32.partialorder %v3964_v1, 0.0 }
 0x1a1   :  { %v4270_v63 = vmul.f32 %v3359_v41, %v1495_v23  ;;  %v863_v26 = vadd.f32 1.0, %v799_v50  ;;  %v4272_v13 = vpop.eup %3362  ;;  %vm1942_vm11 = vcmp.ge.f32.partialorder %v4001_v29, 0.0  ;;  %v1497_v51 = vmul.f32 %v4114_v33, %v1433_v6  ;;  %v4280_v41 = vpop.f32.mrb[21].mxu0 }
 0x1a2   :  { %v1181_v39 = vadd.f32 1.4214138, %v1117_v59  ;;  %3368 = vrcp.f32 %v862_v8  ;;  %v4277_v52 = vmul.f32 0.70710677, %v4265_v25  ;;  %v1878_v42 = vsub.f32 1.0, %v1814_v31  ;;  %5866 = vst [vmem:[#allocation47_spill] sm:$0xff] %v4280_v41 }
 0x1a3   :  { %v3365_v47 = vpop.eup %3364  ;;  %v1432_v24 = vadd.f32 0.2548296, %v1368_v27  ;;  %v1370_v2 = vmul.f32 %v4152_v45, %v1306_v11  ;;  %3370 = vrcp.f32 %v863_v26  ;;  %v2133_v50 = vadd.f32 1.0, %v2069_v28  ;;  %v5867_v59 = vld [vmem:[#allocation17_spill] sm:$0xff]  ;;  %v5868_v11 = vld [vmem:[#allocation18_spill] sm:$0xff] }
 0x1a4   :  { %5865 = vst [vmem:[#allocation16_spill] sm:$0xff] %v4277_v52  ;;  %v1307_v55 = vadd.f32 -0.28449672, %v1243_v20  ;;  %v1629_v23 = vmul.f32 %v1565_v18, %v4124_v34  ;;  %v4284_v56 = vand.u32 2147483647, %v4277_v52  ;;  %v1879_v33 = vsub.f32 1.0, %v4270_v63 }
 0x1a5   :  { %v988_v6 = vmul.f32 1.0614054, %v4272_v13  ;;  %v4290_v31 = vadd.f32 %v5867_v59, %v3752_v0  ;;  %v4294_v27 = vadd.f32 %v5868_v11, %v3760_v7  ;;  %v3367_v8 = vpop.eup %3366  ;;  %v2004_v28 = vsub.f32 0.0, %v1876_v22 }
 0x1a6   :  { %v1817_v20 = vmul.f32 %v3361_v10, %v1497_v51  ;;  %v1245_v34 = vmul.f32 %v4204_v44, %v1181_v39  ;;  %v801_v18 = vmul.f32 0.3275911, %v4284_v56  ;;  %v2006_v26 = vsub.f32 0.0, %v1878_v42 }
 0x1a7   :  { %vm1943_vm12 = vcmp.ge.f32.partialorder %v4004_v9, 0.0  ;;  %v1496_v63 = vmul.f32 %v4137_v32, %v1432_v24  ;;  %v1434_v41 = vadd.f32 0.2548296, %v1370_v2  ;;  %v4301_v59 = vmul.f32 0.70710677, %v4290_v31  ;;  %v3290_v32 = vld [vmem:[#allocation8 + $0x70] sm:$0xff]  }
 0x1a8   :  { %v1371_v53 = vmul.f32 %v4179_v14, %v1307_v55  ;;  %v1711_v11 = vmul.f32 1.442695, %v1629_v23  ;;  %v865_v58 = vadd.f32 1.0, %v801_v18  ;;  %v4305_v49 = vmul.f32 0.70710677, %v4294_v27  ;;  %v3291_v23 = vld [vmem:[#allocation8 + $0xf0] sm:$0xff]   ;;  %3085 = vmatprep.subr.bf16.mxu0 %v3290_v32 }
 0x1a9   :  { %5869 = vst [vmem:[#allocation17_spill] sm:$0xff] %v4301_v59  ;;  %v2007_v10 = vsub.f32 0.0, %v1879_v33  ;;  %vm1945_vm13 = vcmp.ge.f32.partialorder %v4010_v38, 0.0  ;;  %3372 = vpow2.f32 %v1707_v57  ;;  %v1052_v51 = vadd.f32 -1.4531521, %v988_v6  ;;  %3149 = vmatprep.subr.bf16.mxu1 %v3291_v23 }
 0x1aa   :  { %v4309_v39 = vand.u32 2147483647, %v4301_v59  ;;  %v2068_v24 = vsel %vm1940_vm10, %v1876_v22, %v2004_v28  ;;  %v1881_v2 = vsub.f32 1.0, %v1817_v20  ;;  %v1309_v52 = vadd.f32 -0.28449672, %v1245_v34  ;;  %v4322_v59 = vpop.f32.mrb[21].mxu1 }
 0x1ab   :  { %v4314_v55 = vand.u32 2147483647, %v4305_v49  ;;  %v2070_v18 = vsel %vm1942_vm11, %v1878_v42, %v2006_v26  ;;  %v4318_v12 = vmul.f32 %v3365_v47, %v1496_v63  ;;  %v1498_v57 = vmul.f32 %v4152_v45, %v1434_v41  ;;  %5870 = vst [vmem:[#allocation18_spill] sm:$0xff] %v4322_v59  ;;  %v5871_v20 = vld [vmem:[#allocation19_spill] sm:$0xff] }
 0x1ac   :  { %v800_v6 = vmul.f32 0.3275911, %v4309_v39  ;;  %v4324_v1 = vpop.eup %3368  ;;  %v1435_v22 = vadd.f32 0.2548296, %v1371_v53  ;;  %3374 = vrcp.f32 %v865_v58  ;;  %v4329_v34 = vadd.f32 %v5871_v20, %v3748_v61 }
 0x1ad   :  { %v802_v28 = vmul.f32 0.3275911, %v4314_v55  ;;  %v4331_v29 = vpop.eup %3370  ;;  %v4334_v45 = vmul.f32 %v2133_v50, %v4109_v5  ;;  %v2132_v47 = vadd.f32 1.0, %v2068_v24  ;;  %v1116_v42 = vmul.f32 %v4272_v13, %v1052_v51 }
 0x1ae   :  { %v864_v41 = vadd.f32 1.0, %v800_v6  ;;  %v2009_v26 = vsub.f32 0.0, %v1881_v2  ;;  %v1373_v53 = vmul.f32 %v4204_v44, %v1309_v52  ;;  %3376 = vpow2.f32 %v1711_v11  ;;  %v5874_v6 = vld [vmem:[#allocation34_spill] sm:$0xff] }
 0x1af   :  { %5872 = vst [vmem:[#allocation19_spill] sm:$0xff] %v4334_v45  ;;  %v990_v58 = vmul.f32 1.0614054, %v4324_v1  ;;  %v2134_v63 = vadd.f32 1.0, %v2070_v18  ;;  %v4339_v32 = vmul.f32 %v3367_v8, %v1498_v57  ;;  %v991_v23 = vmul.f32 1.0614054, %v4331_v29 }
 0x1b0   :  { %v866_v20 = vadd.f32 1.0, %v802_v28  ;;  %v2071_v5 = vsel %vm1943_vm12, %v1879_v33, %v2007_v10  ;;  %v1880_v50 = vsub.f32 1.0, %v4318_v12  ;;  %v1499_v51 = vmul.f32 %v4179_v14, %v1435_v22  ;;  %v5873_v8 = vld [vmem:[#allocation20_spill] sm:$0xff] }
 0x1b1   :  { %v4347_v24 = vmul.f32 0.70710677, %v4329_v34  ;;  %vm1944_vm14 = vcmp.ge.f32.partialorder %v4041_v35, 0.0  ;;  %v1180_v52 = vadd.f32 1.4214138, %v1116_v42  ;;  %v1564_v11 = vsub.f32 0.0, %v4202_v37 }
 0x1b2   :  { %3378 = vrcp.f32 %v864_v41  ;;  %v4353_v18 = vadd.f32 %v5873_v8, %v3750_v62  ;;  %v2073_v9 = vsel %vm1945_vm13, %v1881_v2, %v2009_v26  ;;  %v1437_v33 = vadd.f32 0.2548296, %v1373_v53  ;;  %v4365_v42 = vpop.f32.mrb[22].mxu0 }
 0x1b3   :  { %v1054_v12 = vadd.f32 -1.4531521, %v990_v58  ;;  %v4358_v14 = vand.u32 2147483647, %v4347_v24  ;;  %v3373_v10 = vpop.eup %3372  ;;  %v1882_v57 = vsub.f32 1.0, %v4339_v32  ;;  %vm1946_vm15 = vcmp.ge.f32.partialorder %v5874_v6, 0.0 }
 0x1b4   :  { %v1055_v22 = vadd.f32 -1.4531521, %v991_v23  ;;  %3380 = vrcp.f32 %v866_v20  ;;  %v4363_v28 = vmul.f32 0.70710677, %v4353_v18  ;;  %5876 = vst [vmem:[#allocation34_spill] sm:$0xff] %v4365_v42  ;;  %v4368_v38 = vmul.f32 %v2132_v47, %v4134_v19 }
 0x1b5   :  { %v1819_v2 = vmul.f32 %v3373_v10, %v1499_v51  ;;  %v4371_v41 = vmul.f32 0.5, %v4171_v60  ;;  %v803_v26 = vmul.f32 0.3275911, %v4358_v14  ;;  %v2135_v53 = vadd.f32 1.0, %v2071_v5  ;;  %v5879_v10 = vld [vmem:[#allocation35_spill] sm:$0xff] }
 0x1b6   :  { %5875 = vst [vmem:[#allocation20_spill] sm:$0xff] %v4363_v28  ;;  %5877 = vst [vmem:[#allocation48_spill] sm:$0xff] %v4368_v38  ;;  %v2137_v58 = vadd.f32 1.0, %v2073_v9  ;;  %v1244_v32 = vmul.f32 %v4272_v13, %v1180_v52  ;;  %v4376_v23 = vand.u32 2147483647, %v4363_v28  ;;  %v4378_v20 = vpop.eup %3374  ;;  %v2008_v8 = vsub.f32 0.0, %v1880_v50 }
 0x1b7   :  { %v1628_v45 = vmul.f32 %v1564_v11, %v4202_v37  ;;  %v1118_v19 = vmul.f32 %v4324_v1, %v1054_v12  ;;  %v867_v47 = vadd.f32 1.0, %v803_v26  ;;  %v4383_v60 = vmul.f32 %v2134_v63, %v4157_v48 }
 0x1b8   :  { %v2010_v51 = vsub.f32 0.0, %v1882_v57  ;;  %vm1947_vm0 = vcmp.ge.f32.partialorder %v5879_v10, 0.0  ;;  %v1501_v5 = vmul.f32 %v4204_v44, %v1437_v33  ;;  %v1119_v52 = vmul.f32 %v4331_v29, %v1055_v22  ;;  %v3377_v9 = vpop.eup %3376  ;;  %v3292_v44 = vld [vmem:[#allocation8 + $0x30] sm:$0xff]  }
 0x1b9   :  { %5878 = vst [vmem:[#allocation49_spill] sm:$0xff] %v4383_v60  ;;  %v1883_v38 = vsub.f32 1.0, %v1819_v2  ;;  %v1566_v42 = vsub.f32 0.0, %v4249_v30  ;;  %v1567_v59 = vsub.f32 0.0, %v4255_v15  ;;  %v805_v37 = vmul.f32 0.3275911, %v4376_v23  ;;  %3086 = vmatpush3.bf16.msra.mxu0 %v3292_v44 }
 0x1ba   :  { %v4392_v11 = vmul.f32 %v2135_v53, %v4164_v43  ;;  %v4395_v48 = vmul.f32 %v2137_v58, %v4177_v4  ;;  %v1308_v63 = vadd.f32 -0.28449672, %v1244_v32  ;;  %v993_v12 = vmul.f32 1.0614054, %v4378_v20  ;;  %v3293_v33 = vld [vmem:[#allocation8 + $0xb0] sm:$0xff]   ;;  %v4400_v60 = vpop.f32.mrb[22].mxu1 }
 0x1bb   :  { %v2072_v22 = vsel %vm1944_vm14, %v1880_v50, %v2008_v8  ;;  %v1709_v2 = vmul.f32 1.442695, %v1628_v45  ;;  %v1182_v26 = vadd.f32 1.4214138, %v1118_v19  ;;  %3382 = vrcp.f32 %v867_v47  ;;  %5882 = vst [vmem:[#allocation51_spill] sm:$0xff] %v4400_v60  ;;  %3150 = vmatpush3.bf16.msra.mxu1 %v3293_v33  ;;  %v5883_v50 = vld [vmem:[#allocation21_spill] sm:$0xff] }
 0x1bc   :  { %5880 = vst [vmem:[#allocation35_spill] sm:$0xff] %v4392_v11  ;;  %5881 = vst [vmem:[#allocation50_spill] sm:$0xff] %v4395_v48  ;;  %v4402_v28 = vpop.eup %3378  ;;  %v1821_v43 = vmul.f32 %v3377_v9, %v1501_v5  ;;  %v4405_v53 = vmul.f32 0.5, %v4224_v46  ;;  %v1183_v4 = vadd.f32 1.4214138, %v1119_v52  ;;  %v869_v58 = vadd.f32 1.0, %v805_v37 }
 0x1bd   :  { %v2074_v32 = vsel %vm1946_vm15, %v1882_v57, %v2010_v51  ;;  %v2011_v35 = vsub.f32 0.0, %v1883_v38  ;;  %v1630_v45 = vmul.f32 %v1566_v42, %v4249_v30  ;;  %v4412_v8 = vadd.f32 %v5883_v50, %v3752_v0  ;;  %v5884_v9 = vld [vmem:[#allocation38_spill] sm:$0xff] }
 0x1be   :  { %v4414_v19 = vpop.eup %3380  ;;  %v2136_v47 = vadd.f32 1.0, %v2072_v22  ;;  %v1372_v46 = vmul.f32 %v4272_v13, %v1308_v63  ;;  %v1631_v5 = vmul.f32 %v1567_v59, %v4255_v15  ;;  %v1057_v52 = vadd.f32 -1.4531521, %v993_v12 }
 0x1bf   :  { %vm1949_vm1 = vcmp.ge.f32.partialorder %v5884_v9, 0.0  ;;  %3384 = vpow2.f32 %v1709_v2  ;;  %v1246_v57 = vmul.f32 %v4324_v1, %v1182_v26  ;;  %v4421_v6 = vmul.f32 0.5, %v4230_v3 }
 0x1c0   :  { %v992_v30 = vmul.f32 1.0614054, %v4402_v28  ;;  %v2138_v42 = vadd.f32 1.0, %v2074_v32  ;;  %v1885_v51 = vsub.f32 1.0, %v1821_v43  ;;  %v1247_v37 = vmul.f32 %v4331_v29, %v1183_v4 }
 0x1c1   :  { %3386 = vrcp.f32 %v869_v58  ;;  %v2075_v63 = vsel %vm1947_vm0, %v1883_v38, %v2011_v35  ;;  %v1713_v15 = vmul.f32 1.442695, %v1630_v45  ;;  %v994_v59 = vmul.f32 1.0614054, %v4414_v19  ;;  %v4442_v35 = vpop.f32.mrb[23].mxu0 }
 0x1c2   :  { %v4429_v12 = vmul.f32 0.70710677, %v4412_v8  ;;  %v1436_v44 = vadd.f32 0.2548296, %v1372_v46  ;;  %v1715_v33 = vmul.f32 1.442695, %v1631_v5  ;;  %v1121_v3 = vmul.f32 %v4378_v20, %v1057_v52 }
 0x1c3   :  { %v1569_v22 = vsub.f32 0.0, %v4284_v56  ;;  %v4434_v2 = vmul.f32 %v2136_v47, %v4190_v36  ;;  %v1310_v26 = vadd.f32 -0.28449672, %v1246_v57  ;;  %v1056_v43 = vadd.f32 -1.4531521, %v992_v30  ;;  %5887 = vst [vmem:[#allocation52_spill] sm:$0xff] %v4442_v35 }
 0x1c4   :  { %v4437_v10 = vand.u32 2147483647, %v4429_v12  ;;  %v4440_v38 = vmul.f32 %v2138_v42, %v4208_v17  ;;  %v2139_v4 = vadd.f32 1.0, %v2075_v63  ;;  %v2013_v58 = vsub.f32 0.0, %v1885_v51 }
 0x1c5   :  { %5885 = vst [vmem:[#allocation21_spill] sm:$0xff] %v4434_v2  ;;  %v1311_v32 = vadd.f32 -0.28449672, %v1247_v37  ;;  %v4444_v45 = vpop.eup %3382  ;;  %3388 = vpow2.f32 %v1713_v15  ;;  %v1568_v50 = vsub.f32 0.0, %v4309_v39  ;;  %v1058_v36 = vadd.f32 -1.4531521, %v994_v59 }
 0x1c6   :  { %5886 = vst [vmem:[#allocation38_spill] sm:$0xff] %v4440_v38  ;;  %v804_v47 = vmul.f32 0.3275911, %v4437_v10  ;;  %3390 = vpow2.f32 %v1715_v33  ;;  %v4449_v46 = vmul.f32 0.5, %v4265_v25  ;;  %v1185_v5 = vadd.f32 1.4214138, %v1121_v3 }
 0x1c7   :  { %v1633_v17 = vmul.f32 %v1569_v22, %v4284_v56  ;;  %v1500_v52 = vmul.f32 %v4272_v13, %v1436_v44  ;;  %v1374_v57 = vmul.f32 %v4324_v1, %v1310_v26  ;;  %v1120_v30 = vmul.f32 %v4402_v28, %v1056_v43  ;;  %v5888_v25 = vld [vmem:[#allocation22_spill] sm:$0xff]  ;;  %v4463_v33 = vpop.f32.mrb[23].mxu1 }
 0x1c8   :  { %v868_v42 = vadd.f32 1.0, %v804_v47  ;;  %v2077_v37 = vsel %vm1949_vm1, %v1885_v51, %v2013_v58  ;;  %v1375_v63 = vmul.f32 %v4331_v29, %v1311_v32  ;;  %v995_v15 = vmul.f32 1.0614054, %v4444_v45  ;;  %5889 = vst [vmem:[#allocation22_spill] sm:$0xff] %v4463_v33 }
 0x1c9   :  { %v4461_v59 = vadd.f32 %v5888_v25, %v3760_v7  ;;  %v3385_v56 = vpop.eup %3384  ;;  %v1632_v13 = vmul.f32 %v1568_v50, %v4309_v39  ;;  %v1122_v44 = vmul.f32 %v4414_v19, %v1058_v36  ;;  %v1570_v3 = vsub.f32 0.0, %v4314_v55 }
 0x1ca   :  { %3392 = vrcp.f32 %v868_v42  ;;  %v1249_v51 = vmul.f32 %v4378_v20, %v1185_v5  ;;  %v1719_v22 = vmul.f32 1.442695, %v1633_v17  ;;  %v4472_v26 = vmul.f32 0.5, %v4290_v31 }
 0x1cb   :  { %v4468_v9 = vpop.eup %3386  ;;  %v4475_v43 = vmul.f32 0.5, %v4294_v27  ;;  %v2141_v58 = vadd.f32 1.0, %v2077_v37  ;;  %v1820_v32 = vmul.f32 %v3385_v56, %v1500_v52  ;;  %v1438_v47 = vadd.f32 0.2548296, %v1374_v57 }
 0x1cc   :  { %v1184_v39 = vadd.f32 1.4214138, %v1120_v30  ;;  %v4478_v50 = vmul.f32 %v2139_v4, %v4215_v16  ;;  %v1439_v36 = vadd.f32 0.2548296, %v1375_v63  ;;  %v1059_v42 = vadd.f32 -1.4531521, %v995_v15 }
 0x1cd   :  { %v4481_v25 = vmul.f32 0.70710677, %v4461_v59  ;;  %v1717_v5 = vmul.f32 1.442695, %v1632_v13  ;;  %v1186_v17 = vadd.f32 1.4214138, %v1122_v44  ;;  %v1634_v31 = vmul.f32 %v1570_v3, %v4314_v55 }
 0x1ce   :  { %5890 = vst [vmem:[#allocation53_spill] sm:$0xff] %v4478_v50  ;;  %v997_v48 = vmul.f32 1.0614054, %v4468_v9  ;;  %vm1948_vm2 = vcmp.ge.f32.partialorder %v4185_v21, 0.0  ;;  %v1313_v27 = vadd.f32 -0.28449672, %v1249_v51  ;;  %3394 = vpow2.f32 %v1719_v22 }
 0x1cf   :  { %v1571_v52 = vsub.f32 0.0, %v4358_v14  ;;  %v4488_v16 = vand.u32 2147483647, %v4481_v25  ;;  %v3389_v4 = vpop.eup %3388  ;;  %v1884_v57 = vsub.f32 1.0, %v1820_v32  ;;  %v1502_v30 = vmul.f32 %v4324_v1, %v1438_v47  ;;  %v5891_v63 = vld [vmem:[#allocation23_spill] sm:$0xff] }
 0x1d0   :  { %v1248_v37 = vmul.f32 %v4402_v28, %v1184_v39  ;;  %v4494_v55 = vadd.f32 %v5891_v63, %v3748_v61  ;;  %v3391_v15 = vpop.eup %3390  ;;  %v1503_v56 = vmul.f32 %v4331_v29, %v1439_v36  ;;  %v4498_v13 = vmul.f32 0.5, %v4329_v34 }
 0x1d1   :  { %v1123_v44 = vmul.f32 %v4444_v45, %v1059_v42  ;;  %v806_v3 = vmul.f32 0.3275911, %v4488_v16  ;;  %3396 = vpow2.f32 %v1717_v5  ;;  %v1250_v51 = vmul.f32 %v4414_v19, %v1186_v17 }
 0x1d2   :  { %v1721_v1 = vmul.f32 1.442695, %v1634_v31  ;;  %v1061_v22 = vadd.f32 -1.4531521, %v997_v48  ;;  %v1377_v32 = vmul.f32 %v4378_v20, %v1313_v27  ;;  %v1635_v47 = vmul.f32 %v1571_v52, %v4358_v14  ;;  %v5892_v27 = vld [vmem:[#allocation24_spill] sm:$0xff] }
 0x1d3   :  { %v4506_v39 = vmul.f32 0.5, %v4353_v18  ;;  %v870_v29 = vadd.f32 1.0, %v806_v3  ;;  %v2012_v34 = vsub.f32 0.0, %v1884_v57  ;;  %v1822_v63 = vmul.f32 %v3389_v4, %v1502_v30 }
 0x1d4   :  { %v4508_v36 = vpop.eup %3392  ;;  %v1312_v42 = vadd.f32 -0.28449672, %v1248_v37  ;;  %v4511_v50 = vmul.f32 0.70710677, %v4494_v55  ;;  %v4513_v5 = vmul.f32 %v3391_v15, %v1503_v56  ;;  %v1187_v17 = vadd.f32 1.4214138, %v1123_v44 }
 0x1d5   :  { %v1573_v48 = vsub.f32 0.0, %v4376_v23  ;;  %v996_v31 = vmul.f32 1.0614054, %v4508_v36  ;;  %v1314_v14 = vadd.f32 -0.28449672, %v1250_v51  ;;  %v1125_v18 = vmul.f32 %v4468_v9, %v1061_v22  ;;  %v4529_v15 = vpop.f32.mrb[24].mxu0 }
 0x1d6   :  { %3398 = vrcp.f32 %v870_v29  ;;  %v4520_v52 = vadd.f32 %v5892_v27, %v3750_v62  ;;  %v4523_v4 = vmul.f32 %v2141_v58, %v4246_v54  ;;  %vm1950_vm3 = vcmp.ge.f32.partialorder %v4236_v40, 0.0  ;;  %5894 = vst [vmem:[#allocation24_spill] sm:$0xff] %v4529_v15  ;;  %v4531_v56 = vpop.f32.mrb[24].mxu1  ;;  %v5896_v58 = vld [vmem:[#allocation14_spill] sm:$0xff] }
 0x1d7   :  { %v1441_v30 = vadd.f32 0.2548296, %v1377_v32  ;;  %3400 = vpow2.f32 %v1721_v1  ;;  %v4527_v37 = vand.u32 2147483647, %v4511_v50  ;;  %5895 = vst [vmem:[#allocation54_spill] sm:$0xff] %v4531_v56  ;;  %v2076_v44 = vsel %vm1948_vm2, %v1884_v57, %v2012_v34 }
 0x1d8   :  { %5893 = vst [vmem:[#allocation23_spill] sm:$0xff] %v4523_v4  ;;  %v1886_v3 = vsub.f32 1.0, %v1822_v63  ;;  %v1376_v51 = vmul.f32 %v4402_v28, %v1312_v42  ;;  %v1723_v22 = vmul.f32 1.442695, %v1635_v47  ;;  %v3395_v54 = vpop.eup %3394  ;;  %vm1951_vm4 = vcmp.ge.f32.partialorder %v5896_v58, 0.0  ;;  %v5897_v42 = vld [vmem:[#allocation25_spill] sm:$0xff] }
 0x1d9   :  { %v1251_v32 = vmul.f32 %v4444_v45, %v1187_v17  ;;  %v1637_v1 = vmul.f32 %v1573_v48, %v4376_v23  ;;  %v1060_v29 = vadd.f32 -1.4531521, %v996_v31  ;;  %v807_v27 = vmul.f32 0.3275911, %v4527_v37  ;;  %v4599_v58 = vpop.f32.mrb[25].mxu1 }
 0x1da   :  { %v1887_v4 = vsub.f32 1.0, %v4513_v5  ;;  %v1378_v11 = vmul.f32 %v4414_v19, %v1314_v14  ;;  %v1189_v21 = vadd.f32 1.4214138, %v1125_v18  ;;  %v4543_v57 = vmul.f32 0.70710677, %v4520_v52 }
 0x1db   :  { %v2140_v34 = vadd.f32 1.0, %v2076_v44  ;;  %v1505_v47 = vmul.f32 %v4378_v20, %v1441_v30  ;;  %v871_v63 = vadd.f32 1.0, %v807_v27  ;;  %v4548_v17 = vadd.f32 %v5897_v42, %v3752_v0  ;;  %v3397_v23 = vpop.eup %3396  ;;  %v4556_v27 = vpop.f32.mrb[25].mxu0 }
 0x1dc   :  { %v2014_v48 = vsub.f32 0.0, %v1886_v3  ;;  %v1440_v31 = vadd.f32 0.2548296, %v1376_v51  ;;  %3402 = vpow2.f32 %v1723_v22  ;;  %v4551_v5 = vand.u32 2147483647, %v4543_v57  ;;  %5898 = vst [vmem:[#allocation14_spill] sm:$0xff] %v4556_v27 }
 0x1dd   :  { %v1315_v14 = vadd.f32 -0.28449672, %v1251_v32  ;;  %v1727_v18 = vmul.f32 1.442695, %v1637_v1  ;;  %v1124_v38 = vmul.f32 %v4508_v36, %v1060_v29  ;;  %3404 = vrcp.f32 %v871_v63  ;;  %v5900_v63 = vld [vmem:[#allocation28_spill] sm:$0xff]  ;;  %v4627_v15 = vpop.f32.mrb[26].mxu0 }
 0x1de   :  { %v2015_v44 = vsub.f32 0.0, %v1887_v4  ;;  %v1442_v2 = vadd.f32 0.2548296, %v1378_v11  ;;  %v1253_v20 = vmul.f32 %v4468_v9, %v1189_v21  ;;  %v809_v30 = vmul.f32 0.3275911, %v4551_v5  ;;  %5903 = vst [vmem:[#allocation28_spill] sm:$0xff] %v4599_v58 }
 0x1df   :  { %v4559_v42 = vmul.f32 %v2140_v34, %v4371_v41  ;;  %v4561_v51 = vmul.f32 %v3395_v54, %v1505_v47  ;;  %v4564_v22 = vmul.f32 0.5, %v4412_v8  ;;  %v4567_v32 = vmul.f32 0.70710677, %v4548_v17  ;;  %v3294_v54 = vld [vmem:[#allocation8 + $0x78] sm:$0xff]  }
 0x1e0   :  { %v4569_v1 = vpop.eup %3398  ;;  %v2078_v11 = vsel %vm1950_vm3, %v1886_v3, %v2014_v48  ;;  %v1504_v29 = vmul.f32 %v4402_v28, %v1440_v31  ;;  %v873_v21 = vadd.f32 1.0, %v809_v30  ;;  %v4576_v41 = vadd.f32 %v5900_v63, %v3760_v7  ;;  %v3295_v34 = vld [vmem:[#allocation8 + $0xf8] sm:$0xff]   ;;  %3087 = vmatprep.subr.bf16.mxu0 %v3294_v54 }
 0x1e1   :  { %5899 = vst [vmem:[#allocation25_spill] sm:$0xff] %v4559_v42  ;;  %v3401_v47 = vpop.eup %3400  ;;  %v1379_v8 = vmul.f32 %v4444_v45, %v1315_v14  ;;  %v1188_v42 = vadd.f32 1.4214138, %v1124_v38  ;;  %v1572_v27 = vsub.f32 0.0, %v4437_v10  ;;  %v4581_v56 = vand.u32 2147483647, %v4567_v32  ;;  %3151 = vmatprep.subr.bf16.mxu1 %v3295_v34 }
 0x1e2   :  { %v2079_v40 = vsel %vm1951_vm4, %v1887_v4, %v2015_v44  ;;  %v1506_v28 = vmul.f32 %v4414_v19, %v1442_v2  ;;  %v1317_v3 = vadd.f32 -0.28449672, %v1253_v20  ;;  %3406 = vrcp.f32 %v873_v21  ;;  %v5901_v30 = vld [vmem:[#allocation16_spill] sm:$0xff]  ;;  %v5902_v19 = vld [vmem:[#allocation31_spill] sm:$0xff] }
 0x1e3   :  { %v2142_v48 = vadd.f32 1.0, %v2078_v11  ;;  %v1889_v31 = vsub.f32 1.0, %v4561_v51  ;;  %vm1953_vm5 = vcmp.ge.f32.partialorder %v5901_v30, 0.0  ;;  %3408 = vpow2.f32 %v1727_v18 }
 0x1e4   :  { %v998_v38 = vmul.f32 1.0614054, %v4569_v1  ;;  %v4589_v14 = vmul.f32 %v3397_v23, %v1504_v29  ;;  %v808_v63 = vmul.f32 0.3275911, %v4581_v56  ;;  %v4593_v4 = vmul.f32 0.70710677, %v4576_v41 }
 0x1e5   :  { %v4597_v2 = vadd.f32 %v5902_v19, %v3748_v61  ;;  %v2143_v44 = vadd.f32 1.0, %v2079_v40  ;;  %v1443_v20 = vadd.f32 0.2548296, %v1379_v8  ;;  %v1252_v51 = vmul.f32 %v4508_v36, %v1188_v42  ;;  %v5905_v40 = vld [vmem:[#allocation17_spill] sm:$0xff] }
 0x1e6   :  { %v1636_v18 = vmul.f32 %v1572_v27, %v4437_v10  ;;  %v3403_v11 = vpop.eup %3402  ;;  %v1826_v23 = vmul.f32 %v3401_v47, %v1506_v28  ;;  %v1381_v29 = vmul.f32 %v4468_v9, %v1317_v3  ;;  %v872_v21 = vadd.f32 1.0, %v808_v63  ;;  %5907 = vst [vmem:[#allocation17_spill] sm:$0xff] %v4627_v15 }
 0x1e7   :  { %v4605_v54 = vand.u32 2147483647, %v4593_v4  ;;  %v4607_v34 = vpop.eup %3404  ;;  %v4610_v19 = vmul.f32 %v2142_v48, %v4405_v53  ;;  %v2017_v58 = vsub.f32 0.0, %v1889_v31  ;;  %vm1952_vm6 = vcmp.ge.f32.partialorder %v5905_v40, 0.0 }
 0x1e8   :  { %v1062_v8 = vadd.f32 -1.4531521, %v998_v38  ;;  %v4614_v42 = vmul.f32 0.70710677, %v4597_v2  ;;  %v1888_v10 = vsub.f32 1.0, %v4589_v14  ;;  %3410 = vrcp.f32 %v872_v21 }
 0x1e9   :  { %5904 = vst [vmem:[#allocation16_spill] sm:$0xff] %v4610_v19  ;;  %v999_v27 = vmul.f32 1.0614054, %v4607_v34  ;;  %v810_v47 = vmul.f32 0.3275911, %v4605_v54  ;;  %vm1954_vm7 = vcmp.ge.f32.partialorder %v4305_v49, 0.0  ;;  %v1507_v28 = vmul.f32 %v4444_v45, %v1443_v20 }
 0x1ea   :  { %v1316_v53 = vadd.f32 -0.28449672, %v1252_v51  ;;  %v1725_v3 = vmul.f32 1.442695, %v1636_v18  ;;  %v4622_v48 = vand.u32 2147483647, %v4614_v42  ;;  %v4625_v38 = vmul.f32 %v2143_v44, %v4421_v6 }
 0x1eb   :  { %v1890_v63 = vsub.f32 1.0, %v1826_v23  ;;  %v1445_v19 = vadd.f32 0.2548296, %v1381_v29  ;;  %v874_v14 = vadd.f32 1.0, %v810_v47  ;;  %v1126_v21 = vmul.f32 %v4569_v1, %v1062_v8  ;;  %v5908_v6 = vld [vmem:[#allocation32_spill] sm:$0xff] }
 0x1ec   :  { %5906 = vst [vmem:[#allocation31_spill] sm:$0xff] %v4625_v38  ;;  %v1574_v33 = vsub.f32 0.0, %v4488_v16  ;;  %v1063_v35 = vadd.f32 -1.4531521, %v999_v27  ;;  %v811_v45 = vmul.f32 0.3275911, %v4622_v48  ;;  %v4632_v20 = vpop.eup %3406  ;;  %v2081_v51 = vsel %vm1953_vm5, %v1889_v31, %v2017_v58 }
 0x1ed   :  { %v2016_v18 = vsub.f32 0.0, %v1888_v10  ;;  %3412 = vrcp.f32 %v874_v14  ;;  %v4638_v44 = vadd.f32 %v5908_v6, %v3750_v62  ;;  %v3296_v23 = vld [vmem:[#allocation8 + $0x38] sm:$0xff]   ;;  %v3409_v47 = vpop.eup %3408  ;;  %v4640_v8 = vmul.f32 %v3403_v11, %v1507_v28  ;;  %v4675_v6 = vpop.f32.mrb[26].mxu1 }
 0x1ee   :  { %v3297_v29 = vld [vmem:[#allocation8 + $0xb8] sm:$0xff]   ;;  %v1380_v27 = vmul.f32 %v4508_v36, %v1316_v53  ;;  %v1001_v38 = vmul.f32 1.0614054, %v4632_v20  ;;  %v875_v15 = vadd.f32 1.0, %v811_v45  ;;  %v2018_v60 = vsub.f32 0.0, %v1890_v63  ;;  %3088 = vmatpush3.bf16.msra.mxu0 %v3296_v23 }
 0x1ef   :  { %v1509_v30 = vmul.f32 %v4468_v9, %v1445_v19  ;;  %3414 = vpow2.f32 %v1725_v3  ;;  %v4646_v31 = vmul.f32 0.5, %v4461_v59  ;;  %3152 = vmatpush3.bf16.msra.mxu1 %v3297_v29  ;;  %v1190_v58 = vadd.f32 1.4214138, %v1126_v21 }
 0x1f0   :  { %v1638_v14 = vmul.f32 %v1574_v33, %v4488_v16  ;;  %v1127_v11 = vmul.f32 %v4607_v34, %v1063_v35  ;;  %3416 = vrcp.f32 %v875_v15  ;;  %v2145_v28 = vadd.f32 1.0, %v2081_v51  ;;  %v5910_v33 = vld [vmem:[#allocation33_spill] sm:$0xff] }
 0x1f1   :  { %v2080_v53 = vsel %vm1952_vm6, %v1888_v10, %v2016_v18  ;;  %v4653_v45 = vmul.f32 0.5, %v4494_v55  ;;  %v4656_v9 = vmul.f32 0.70710677, %v4638_v44  ;;  %v1891_v59 = vsub.f32 1.0, %v4640_v8  ;;  %5911 = vst [vmem:[#allocation33_spill] sm:$0xff] %v4675_v6 }
 0x1f2   :  { %vm1955_vm8 = vcmp.ge.f32.partialorder %v4347_v24, 0.0  ;;  %v1444_v19 = vadd.f32 0.2548296, %v1380_v27  ;;  %v1065_v3 = vadd.f32 -1.4531521, %v1001_v38  ;;  %v4662_v35 = vadd.f32 %v5910_v33, %v3752_v0  ;;  %v4664_v16 = vpop.eup %3410 }
 0x1f3   :  { %5909 = vst [vmem:[#allocation32_spill] sm:$0xff] %v4656_v9  ;;  %v2082_v15 = vsel %vm1954_vm7, %v1890_v63, %v2018_v60  ;;  %v4668_v55 = vmul.f32 %v3409_v47, %v1509_v30  ;;  %v1575_v40 = vsub.f32 0.0, %v4527_v37  ;;  %v4672_v10 = vand.u32 2147483647, %v4656_v9  ;;  %v5918_v9 = vld [vmem:[#allocation36_spill] sm:$0xff] }
 0x1f4   :  { %v2144_v21 = vadd.f32 1.0, %v2080_v53  ;;  %v1254_v51 = vmul.f32 %v4569_v1, %v1190_v58  ;;  %v1729_v38 = vmul.f32 1.442695, %v1638_v14  ;;  %v1191_v18 = vadd.f32 1.4214138, %v1127_v11  ;;  %v5915_v53 = vld [vmem:[#allocation20_spill] sm:$0xff] }
 0x1f5   :  { %v4678_v23 = vmul.f32 %v2145_v28, %v4449_v46  ;;  %v1000_v49 = vmul.f32 1.0614054, %v4664_v16  ;;  %v813_v60 = vmul.f32 0.3275911, %v4672_v10  ;;  %v4683_v63 = vmul.f32 0.70710677, %v4662_v35 }
 0x1f6   :  { %v2146_v29 = vadd.f32 1.0, %v2082_v15  ;;  %v2019_v47 = vsub.f32 0.0, %v1891_v59  ;;  %v1508_v8 = vmul.f32 %v4508_v36, %v1444_v19  ;;  %v1129_v27 = vmul.f32 %v4632_v20, %v1065_v3 }
 0x1f7   :  { %5912 = vst [vmem:[#allocation55_spill] sm:$0xff] %v4678_v23  ;;  %5913 = vst [vmem:[#allocation56_spill] sm:$0xff] %v4683_v63  ;;  %v4687_v30 = vpop.eup %3412  ;;  %v1893_v58 = vsub.f32 1.0, %v4668_v55  ;;  %v1639_v46 = vmul.f32 %v1575_v40, %v4527_v37  ;;  %v877_v14 = vadd.f32 1.0, %v813_v60  ;;  %v4692_v11 = vand.u32 2147483647, %v4683_v63 }
 0x1f8   :  { %v4695_v28 = vmul.f32 %v2144_v21, %v4472_v26  ;;  %vm1957_vm9 = vcmp.ge.f32.partialorder %v5915_v53, 0.0  ;;  %v1318_v33 = vadd.f32 -0.28449672, %v1254_v51  ;;  %3418 = vpow2.f32 %v1729_v38 }
 0x1f9   :  { %v1002_v36 = vmul.f32 1.0614054, %v4687_v30  ;;  %v3415_v19 = vpop.eup %3414  ;;  %v1255_v3 = vmul.f32 %v4607_v34, %v1191_v18  ;;  %v1577_v15 = vsub.f32 0.0, %v4551_v5  ;;  %v1064_v55 = vadd.f32 -1.4531521, %v1000_v49 }
 0x1fa   :  { %5914 = vst [vmem:[#allocation57_spill] sm:$0xff] %v4695_v28  ;;  %v812_v37 = vmul.f32 0.3275911, %v4692_v11  ;;  %v4702_v40 = vpop.eup %3416  ;;  %v4705_v60 = vmul.f32 %v2146_v29, %v4475_v43  ;;  %v1828_v26 = vmul.f32 %v3415_v19, %v1508_v8  ;;  %v1193_v21 = vadd.f32 1.4214138, %v1129_v27  ;;  %v4710_v28 = vpop.f32.mrb[27].mxu0 }
 0x1fb   :  { %3420 = vrcp.f32 %v877_v14  ;;  %v2083_v51 = vsel %vm1955_vm8, %v1891_v59, %v2019_v47  ;;  %v2021_v38 = vsub.f32 0.0, %v1893_v58  ;;  %v1731_v23 = vmul.f32 1.442695, %v1639_v46  ;;  %5917 = vst [vmem:[#allocation58_spill] sm:$0xff] %v4710_v28  ;;  %v5943_v28 = vld [vmem:[#allocation18_spill] sm:$0xff] }
 0x1fc   :  { %5916 = vst [vmem:[#allocation20_spill] sm:$0xff] %v4705_v60  ;;  %v1003_v18 = vmul.f32 1.0614054, %v4702_v40  ;;  %v1382_v49 = vmul.f32 %v4569_v1, %v1318_v33  ;;  %v1066_v6 = vadd.f32 -1.4531521, %v1002_v36  ;;  %v876_v63 = vadd.f32 1.0, %v812_v37 }
 0x1fd   :  { %v4715_v43 = vadd.f32 %v5918_v9, %v3760_v7  ;;  %vm1956_vm10 = vcmp.ge.f32.partialorder %v4429_v12, 0.0  ;;  %v1319_v29 = vadd.f32 -0.28449672, %v1255_v3  ;;  %v1641_v24 = vmul.f32 %v1577_v15, %v4551_v5 }
 0x1fe   :  { %v1128_v59 = vmul.f32 %v4664_v16, %v1064_v55  ;;  %v1067_v47 = vadd.f32 -1.4531521, %v1003_v18  ;;  %v1892_v8 = vsub.f32 1.0, %v1828_v26  ;;  %v1257_v27 = vmul.f32 %v4632_v20, %v1193_v21 }
 0x1ff   :  { %v1576_v46 = vsub.f32 0.0, %v4581_v56  ;;  %3422 = vrcp.f32 %v876_v63  ;;  %v2147_v14 = vadd.f32 1.0, %v2083_v51  ;;  %v4723_v33 = vmul.f32 0.5, %v4520_v52 }
 0x200   :  { %3424 = vpow2.f32 %v1731_v23  ;;  %v4726_v9 = vmul.f32 0.5, %v4548_v17  ;;  %v1446_v36 = vadd.f32 0.2548296, %v1382_v49  ;;  %v1130_v5 = vmul.f32 %v4687_v30, %v1066_v6 }
 0x201   :  { %v1578_v19 = vsub.f32 0.0, %v4605_v54  ;;  %v4731_v3 = vmul.f32 0.70710677, %v4715_v43  ;;  %v2085_v15 = vsel %vm1957_vm9, %v1893_v58, %v2021_v38  ;;  %v1383_v63 = vmul.f32 %v4607_v34, %v1319_v29  ;;  %v4748_v38 = vpop.f32.mrb[27].mxu1 }
 0x202   :  { %v1192_v23 = vadd.f32 1.4214138, %v1128_v59  ;;  %v1131_v52 = vmul.f32 %v4702_v40, %v1067_v47  ;;  %v3419_v55 = vpop.eup %3418  ;;  %v2020_v37 = vsub.f32 0.0, %v1892_v8  ;;  %v1321_v17 = vadd.f32 -0.28449672, %v1257_v27  ;;  %5920 = vst [vmem:[#allocation59_spill] sm:$0xff] %v4748_v38 }
 0x203   :  { %v1735_v26 = vmul.f32 1.442695, %v1641_v24  ;;  %v1640_v21 = vmul.f32 %v1576_v46, %v4581_v56  ;;  %v4739_v6 = vmul.f32 %v2147_v14, %v4498_v13  ;;  %v4742_v51 = vmul.f32 0.5, %v4576_v41 }
 0x204   :  { %v1579_v53 = vsub.f32 0.0, %v4622_v48  ;;  %v4746_v58 = vand.u32 2147483647, %v4731_v3  ;;  %v2149_v49 = vadd.f32 1.0, %v2085_v15  ;;  %v1510_v29 = vmul.f32 %v4569_v1, %v1446_v36 }
 0x205   :  { %5919 = vst [vmem:[#allocation36_spill] sm:$0xff] %v4739_v6  ;;  %v4750_v18 = vpop.eup %3420  ;;  %v1194_v24 = vadd.f32 1.4214138, %v1130_v5  ;;  %v1642_v56 = vmul.f32 %v1578_v19, %v4605_v54  ;;  %v1447_v13 = vadd.f32 0.2548296, %v1383_v63  ;;  %v1256_v59 = vmul.f32 %v4664_v16, %v1192_v23  ;;  %v5921_v54 = vld [vmem:[#allocation37_spill] sm:$0xff] }
 0x206   :  { %v1195_v41 = vadd.f32 1.4214138, %v1131_v52  ;;  %v814_v47 = vmul.f32 0.3275911, %v4746_v58  ;;  %v2084_v27 = vsel %vm1956_vm10, %v1892_v8, %v2020_v37  ;;  %v1385_v46 = vmul.f32 %v4632_v20, %v1321_v17 }
 0x207   :  { %3426 = vpow2.f32 %v1735_v26  ;;  %v1733_v14 = vmul.f32 1.442695, %v1640_v21  ;;  %v1643_v15 = vmul.f32 %v1579_v53, %v4622_v48  ;;  %v1005_v1 = vmul.f32 1.0614054, %v4750_v18 }
 0x208   :  { %v878_v36 = vadd.f32 1.0, %v814_v47  ;;  %v4763_v5 = vadd.f32 %v5921_v54, %v3748_v61  ;;  %v4768_v63 = vmul.f32 %v2149_v49, %v4506_v39  ;;  %v1830_v12 = vmul.f32 %v3419_v55, %v1510_v29  ;;  %v5923_v47 = vld [vmem:[#allocation42_spill] sm:$0xff] }
 0x209   :  { %v4765_v19 = vpop.eup %3422  ;;  %v1258_v8 = vmul.f32 %v4687_v30, %v1194_v24  ;;  %v1737_v23 = vmul.f32 1.442695, %v1642_v56  ;;  %v2148_v37 = vadd.f32 1.0, %v2084_v27  ;;  %v1511_v48 = vmul.f32 %v4607_v34, %v1447_v13  ;;  %v4785_v56 = vpop.f32.mrb[28].mxu0 }
 0x20a   :  { %5922 = vst [vmem:[#allocation37_spill] sm:$0xff] %v4768_v63  ;;  %v3425_v52 = vpop.eup %3424  ;;  %v1320_v17 = vadd.f32 -0.28449672, %v1256_v59  ;;  %v1259_v26 = vmul.f32 %v4702_v40, %v1195_v41  ;;  %v1449_v21 = vadd.f32 0.2548296, %v1385_v46  ;;  %3428 = vrcp.f32 %v878_v36  ;;  %5924 = vst [vmem:[#allocation42_spill] sm:$0xff] %v4785_v56 }
 0x20b   :  { %v1004_v53 = vmul.f32 1.0614054, %v4765_v19  ;;  %v4776_v54 = vadd.f32 %v5923_v47, %v3750_v62  ;;  %vm1958_vm11 = vcmp.ge.f32.partialorder %v4481_v25, 0.0  ;;  %3430 = vpow2.f32 %v1733_v14  ;;  %v4787_v13 = vpop.f32.mrb[28].mxu1  ;;  %v5927_v25 = vld [vmem:[#allocation43_spill] sm:$0xff] }
 0x20c   :  { %v1739_v39 = vmul.f32 1.442695, %v1643_v15  ;;  %v1069_v55 = vadd.f32 -1.4531521, %v1005_v1  ;;  %v4780_v49 = vmul.f32 0.70710677, %v4763_v5  ;;  %3432 = vpow2.f32 %v1737_v23 }
 0x20d   :  { %v1894_v34 = vsub.f32 1.0, %v1830_v12  ;;  %v1322_v29 = vadd.f32 -0.28449672, %v1258_v8  ;;  %v4783_v24 = vmul.f32 0.5, %v4597_v2  ;;  %5925 = vst [vmem:[#allocation60_spill] sm:$0xff] %v4787_v13  ;;  %v1831_v59 = vmul.f32 %v3425_v52, %v1511_v48 }
 0x20e   :  { %v1384_v41 = vmul.f32 %v4664_v16, %v1320_v17  ;;  %v1323_v27 = vadd.f32 -0.28449672, %v1259_v26  ;;  %v4791_v46 = vmul.f32 0.5, %v4638_v44  ;;  %v1513_v14 = vmul.f32 %v4632_v20, %v1449_v21 }
 0x20f   :  { %v1068_v15 = vadd.f32 -1.4531521, %v1004_v53  ;;  %v4795_v1 = vand.u32 2147483647, %v4780_v49  ;;  %v4798_v2 = vmul.f32 0.70710677, %v4776_v54  ;;  %v4801_v36 = vmul.f32 %v2148_v37, %v4564_v22 }
 0x210   :  { %3434 = vpow2.f32 %v1739_v39  ;;  %v1133_v12 = vmul.f32 %v4750_v18, %v1069_v55  ;;  %v1581_v8 = vsub.f32 0.0, %v4672_v10  ;;  %v2022_v44 = vsub.f32 0.0, %v1894_v34 }
 0x211   :  { %5926 = vst [vmem:[#allocation61_spill] sm:$0xff] %v4801_v36  ;;  %v3427_v23 = vpop.eup %3426  ;;  %vm1959_vm12 = vcmp.ge.f32.partialorder %v4511_v50, 0.0  ;;  %v1386_v20 = vmul.f32 %v4687_v30, %v1322_v29  ;;  %v815_v52 = vmul.f32 0.3275911, %v4795_v1  ;;  %v4809_v48 = vand.u32 2147483647, %v4798_v2 }
 0x212   :  { %v1895_v17 = vsub.f32 1.0, %v1831_v59  ;;  %v1448_v26 = vadd.f32 0.2548296, %v1384_v41  ;;  %v1387_v22 = vmul.f32 %v4702_v40, %v1323_v27  ;;  %v1580_v37 = vsub.f32 0.0, %v4692_v11 }
 0x213   :  { %v1833_v21 = vmul.f32 %v3427_v23, %v1513_v14  ;;  %v1132_v53 = vmul.f32 %v4765_v19, %v1068_v15  ;;  %v879_v47 = vadd.f32 1.0, %v815_v52  ;;  %v817_v39 = vmul.f32 0.3275911, %v4809_v48 }
 0x214   :  { %v1197_v55 = vadd.f32 1.4214138, %v1133_v12  ;;  %v1645_v29 = vmul.f32 %v1581_v8, %v4672_v10  ;;  %v4817_v63 = vmul.f32 0.5, %v4662_v35  ;;  %v4820_v6 = vmul.f32 0.5, %v4715_v43  ;;  %v4822_v59 = vpop.eup %3428 }
 0x215   :  { %v2086_v41 = vsel %vm1958_vm11, %v1894_v34, %v2022_v44  ;;  %v1450_v27 = vadd.f32 0.2548296, %v1386_v20  ;;  %3436 = vrcp.f32 %v879_v47  ;;  %v881_v14 = vadd.f32 1.0, %v817_v39  ;;  %v3431_v15 = vpop.eup %3430 }
 0x216   :  { %v2023_v23 = vsub.f32 0.0, %v1895_v17  ;;  %vm1961_vm13 = vcmp.ge.f32.partialorder %v4543_v57, 0.0  ;;  %v1512_v10 = vmul.f32 %v4664_v16, %v1448_v26  ;;  %v1451_v12 = vadd.f32 0.2548296, %v1387_v22  ;;  %v3433_v8 = vpop.eup %3432  ;;  %v5928_v22 = vld [vmem:[#allocation45_spill] sm:$0xff] }
 0x217   :  { %v1006_v35 = vmul.f32 1.0614054, %v4822_v59  ;;  %v1897_v43 = vsub.f32 1.0, %v1833_v21  ;;  %v1196_v52 = vadd.f32 1.4214138, %v1132_v53  ;;  %v1644_v36 = vmul.f32 %v1580_v37, %v4692_v11 }
 0x218   :  { %v4832_v34 = vadd.f32 %v5927_v25, %v3752_v0  ;;  %v1261_v44 = vmul.f32 %v4750_v18, %v1197_v55  ;;  %v1743_v20 = vmul.f32 1.442695, %v1645_v29  ;;  %3438 = vrcp.f32 %v881_v14  ;;  %v4847_v14 = vpop.f32.mrb[29].mxu0  ;;  %v4853_v25 = vpop.f32.mrb[29].mxu1 }
 0x219   :  { %v1070_v47 = vadd.f32 -1.4531521, %v1006_v35  ;;  %v2150_v39 = vadd.f32 1.0, %v2086_v41  ;;  %v1514_v16 = vmul.f32 %v4687_v30, %v1450_v27  ;;  %v4841_v21 = vadd.f32 %v5928_v22, %v3760_v7  ;;  %5929 = vst [vmem:[#allocation43_spill] sm:$0xff] %v4847_v14  ;;  %5930 = vst [vmem:[#allocation45_spill] sm:$0xff] %v4853_v25 }
 0x21a   :  { %v4837_v26 = vmul.f32 0.70710677, %v4832_v34  ;;  %v3435_v11 = vpop.eup %3434  ;;  %v2087_v37 = vsel %vm1959_vm12, %v1895_v17, %v2023_v23  ;;  %v1832_v53 = vmul.f32 %v3431_v15, %v1512_v10  ;;  %v1515_v55 = vmul.f32 %v4702_v40, %v1451_v12  ;;  %v5931_v40 = vld [vmem:[#allocation15_spill] sm:$0xff] }
 0x21b   :  { %v1134_v29 = vmul.f32 %v4822_v59, %v1070_v47  ;;  %v2025_v41 = vsub.f32 0.0, %v1897_v43  ;;  %v1260_v30 = vmul.f32 %v4765_v19, %v1196_v52  ;;  %v1741_v27 = vmul.f32 1.442695, %v1644_v36 }
 0x21c   :  { %v4851_v35 = vand.u32 2147483647, %v4837_v26  ;;  %v1325_v22 = vadd.f32 -0.28449672, %v1261_v44  ;;  %v1582_v50 = vsub.f32 0.0, %v4746_v58  ;;  %v4861_v15 = vadd.f32 %v5931_v40, %v3748_v61 }
 0x21d   :  { %v4857_v17 = vmul.f32 0.70710677, %v4841_v21  ;;  %v2151_v23 = vadd.f32 1.0, %v2087_v37  ;;  %vm1960_vm14 = vcmp.ge.f32.partialorder %v4567_v32, 0.0  ;;  %v1834_v10 = vmul.f32 %v3433_v8, %v1514_v16  ;;  %v5936_v32 = vld [vmem:[#allocation47_spill] sm:$0xff] }
 0x21e   :  { %3440 = vpow2.f32 %v1743_v20  ;;  %v816_v36 = vmul.f32 0.3275911, %v4851_v35  ;;  %v1896_v12 = vsub.f32 1.0, %v1832_v53  ;;  %v1835_v52 = vmul.f32 %v3435_v11, %v1515_v55 }
 0x21f   :  { %v1198_v47 = vadd.f32 1.4214138, %v1134_v29  ;;  %v4866_v44 = vand.u32 2147483647, %v4857_v17  ;;  %v4868_v60 = vpop.eup %3436  ;;  %v2089_v25 = vsel %vm1961_vm13, %v1897_v43, %v2025_v41  ;;  %v1324_v40 = vadd.f32 -0.28449672, %v1260_v30 }
 0x220   :  { %3442 = vpow2.f32 %v1741_v27  ;;  %v880_v37 = vadd.f32 1.0, %v816_v36  ;;  %vm1962_vm15 = vcmp.ge.f32.partialorder %v4593_v4, 0.0  ;;  %v1389_v8 = vmul.f32 %v4750_v18, %v1325_v22 }
 0x221   :  { %v1646_v20 = vmul.f32 %v1582_v50, %v4746_v58  ;;  %v1007_v16 = vmul.f32 1.0614054, %v4868_v60  ;;  %v4877_v11 = vmul.f32 0.70710677, %v4861_v15  ;;  %v4880_v53 = vmul.f32 %v2150_v39, %v4646_v31  ;;  %v4889_v39 = vpop.f32.mrb[30].mxu0 }
 0x222   :  { %v1898_v55 = vsub.f32 1.0, %v1834_v10  ;;  %vm1963_vm0 = vcmp.ge.f32.partialorder %v4614_v42, 0.0  ;;  %3444 = vrcp.f32 %v880_v37  ;;  %v818_v57 = vmul.f32 0.3275911, %v4866_v44  ;;  %v4884_v43 = vpop.eup %3438  ;;  %5933 = vst [vmem:[#allocation62_spill] sm:$0xff] %v4889_v39 }
 0x223   :  { %5932 = vst [vmem:[#allocation15_spill] sm:$0xff] %v4880_v53  ;;  %v2153_v29 = vadd.f32 1.0, %v2089_v25  ;;  %v2024_v41 = vsub.f32 0.0, %v1896_v12  ;;  %v1899_v30 = vsub.f32 1.0, %v1835_v52  ;;  %v1262_v58 = vmul.f32 %v4822_v59, %v1198_v47 }
 0x224   :  { %v1388_v27 = vmul.f32 %v4765_v19, %v1324_v40  ;;  %v1071_v22 = vadd.f32 -1.4531521, %v1007_v16  ;;  %v1009_v50 = vmul.f32 1.0614054, %v4884_v43  ;;  %v882_v31 = vadd.f32 1.0, %v818_v57 }
 0x225   :  { %v4892_v10 = vmul.f32 %v2151_v23, %v4653_v45  ;;  %v1453_v36 = vadd.f32 0.2548296, %v1389_v8  ;;  %v1745_v37 = vmul.f32 1.442695, %v1646_v20  ;;  %v4895_v53 = vand.u32 2147483647, %v4877_v11 }
 0x226   :  { %v2026_v25 = vsub.f32 0.0, %v1898_v55  ;;  %v4898_v52 = vmul.f32 0.5, %v4763_v5  ;;  %v1073_v47 = vadd.f32 -1.4531521, %v1009_v50  ;;  %3446 = vrcp.f32 %v882_v31 }
 0x227   :  { %5934 = vst [vmem:[#allocation63_spill] sm:$0xff] %v4892_v10  ;;  %v2088_v40 = vsel %vm1960_vm14, %v1896_v12, %v2024_v41  ;;  %v2027_v16 = vsub.f32 0.0, %v1899_v30  ;;  %v1326_v57 = vadd.f32 -0.28449672, %v1262_v58  ;;  %v819_v39 = vmul.f32 0.3275911, %v4895_v53 }
 0x228   :  { %v3441_v45 = vpop.eup %3440  ;;  %v1452_v23 = vadd.f32 0.2548296, %v1388_v27  ;;  %v1135_v8 = vmul.f32 %v4868_v60, %v1071_v22  ;;  %v1583_v20 = vsub.f32 0.0, %v4795_v1  ;;  %v5935_v10 = vld [vmem:[#allocation46_spill] sm:$0xff]  ;;  %v1517_v5 = vmul.f32 %v4750_v18, %v1453_v36 }
 0x229   :  { %v4907_v14 = vadd.f32 %v5935_v10, %v3750_v62  ;;  %3448 = vpow2.f32 %v1745_v37  ;;  %v883_v50 = vadd.f32 1.0, %v819_v39  ;;  %v4912_v12 = vadd.f32 %v5936_v32, %v3752_v0  ;;  %v4923_v10 = vpop.f32.mrb[30].mxu1 }
 0x22a   :  { %v3443_v41 = vpop.eup %3442  ;;  %v2090_v58 = vsel %vm1962_vm15, %v1898_v55, %v2026_v25  ;;  %v4917_v27 = vmul.f32 0.5, %v4776_v54  ;;  %v1137_v22 = vmul.f32 %v4884_v43, %v1073_v47  ;;  %5937 = vst [vmem:[#allocation46_spill] sm:$0xff] %v4923_v10  ;;  %v2152_v18 = vadd.f32 1.0, %v2088_v40  ;;  %v4951_v10 = vpop.f32.mrb[31].mxu0 }
 0x22b   :  { %v4921_v31 = vmul.f32 0.70710677, %v4907_v14  ;;  %v2091_v39 = vsel %vm1963_vm0, %v1899_v30, %v2027_v16  ;;  %v1390_v36 = vmul.f32 %v4822_v59, %v1326_v57  ;;  %3450 = vrcp.f32 %v883_v50 }
 0x22c   :  { %v4928_v37 = vpop.eup %3444  ;;  %v1516_v4 = vmul.f32 %v4765_v19, %v1452_v23  ;;  %v1199_v54 = vadd.f32 1.4214138, %v1135_v8  ;;  %v1647_v55 = vmul.f32 %v1583_v20, %v4795_v1  ;;  %v2154_v47 = vadd.f32 1.0, %v2090_v58  ;;  %v5939_v20 = vld [vmem:[#allocation32_spill] sm:$0xff] }
 0x22d   :  { %v4933_v25 = vand.u32 2147483647, %v4921_v31  ;;  %v1837_v32 = vmul.f32 %v3441_v45, %v1517_v5  ;;  %v1008_v40 = vmul.f32 1.0614054, %v4928_v37  ;;  %v4937_v42 = vmul.f32 0.70710677, %v4912_v12 }
 0x22e   :  { %v2155_v30 = vadd.f32 1.0, %v2091_v39  ;;  %v1201_v16 = vadd.f32 1.4214138, %v1137_v22  ;;  %v1585_v57 = vsub.f32 0.0, %v4809_v48  ;;  %v4942_v19 = vmul.f32 %v2153_v29, %v4723_v33  ;;  %5940 = vst [vmem:[#allocation32_spill] sm:$0xff] %v4951_v10 }
 0x22f   :  { %v821_v50 = vmul.f32 0.3275911, %v4933_v25  ;;  %v1454_v1 = vadd.f32 0.2548296, %v1390_v36  ;;  %v1072_v23 = vadd.f32 -1.4531521, %v1008_v40  ;;  %v1836_v5 = vmul.f32 %v3443_v41, %v1516_v4 }
 0x230   :  { %5938 = vst [vmem:[#allocation47_spill] sm:$0xff] %v4942_v19  ;;  %v4945_v8 = vand.u32 2147483647, %v4937_v42  ;;  %v4947_v45 = vpop.eup %3446  ;;  %vm1965_vm1 = vcmp.ge.f32.partialorder %v5939_v20, 0.0  ;;  %v1263_v58 = vmul.f32 %v4868_v60, %v1199_v54  ;;  %v1747_v22 = vmul.f32 1.442695, %v1647_v55 }
 0x231   :  { %v885_v39 = vadd.f32 1.0, %v821_v50  ;;  %v1901_v13 = vsub.f32 1.0, %v1837_v32  ;;  %v1136_v33 = vmul.f32 %v4928_v37, %v1072_v23  ;;  %v1010_v29 = vmul.f32 1.0614054, %v4947_v45  ;;  %v5941_v4 = vld [vmem:[#allocation56_spill] sm:$0xff] }
 0x232   :  { %v820_v36 = vmul.f32 0.3275911, %v4945_v8  ;;  %v1265_v40 = vmul.f32 %v4884_v43, %v1201_v16  ;;  %v1649_v19 = vmul.f32 %v1585_v57, %v4809_v48  ;;  %v1584_v56 = vsub.f32 0.0, %v4851_v35 }
 0x233   :  { %3452 = vrcp.f32 %v885_v39  ;;  %v3449_v41 = vpop.eup %3448  ;;  %vm1964_vm2 = vcmp.ge.f32.partialorder %v5941_v4, 0.0  ;;  %v1518_v54 = vmul.f32 %v4822_v59, %v1454_v1  ;;  %v1200_v55 = vadd.f32 1.4214138, %v1136_v33 }
 0x234   :  { %v1074_v32 = vadd.f32 -1.4531521, %v1010_v29  ;;  %v884_v50 = vadd.f32 1.0, %v820_v36  ;;  %v4962_v23 = vmul.f32 %v2152_v18, %v4726_v9  ;;  %v4965_v10 = vmul.f32 %v2154_v47, %v4742_v51 }
 0x235   :  { %v1900_v16 = vsub.f32 1.0, %v1836_v5  ;;  %v1327_v38 = vadd.f32 -0.28449672, %v1263_v58  ;;  %v4967_v48 = vpop.eup %3450  ;;  %v2029_v57 = vsub.f32 0.0, %v1901_v13  ;;  %v4972_v59 = vadd.f32 %v5943_v28, %v3760_v7 }
 0x236   :  { %5942 = vst [vmem:[#allocation56_spill] sm:$0xff] %v4965_v10  ;;  %v1138_v39 = vmul.f32 %v4947_v45, %v1074_v32  ;;  %3454 = vrcp.f32 %v884_v50  ;;  %v1329_v1 = vadd.f32 -0.28449672, %v1265_v40  ;;  %v1751_v33 = vmul.f32 1.442695, %v1649_v19  ;;  %v4984_v40 = vpop.f32.mrb[31].mxu1 }
 0x237   :  { %v1648_v9 = vmul.f32 %v1584_v56, %v4851_v35  ;;  %v1011_v18 = vmul.f32 1.0614054, %v4967_v48  ;;  %v4977_v51 = vmul.f32 %v2155_v30, %v4783_v24  ;;  %v1838_v47 = vmul.f32 %v3449_v41, %v1518_v54 }
 0x238   :  { %3456 = vpow2.f32 %v1747_v22  ;;  %v1264_v5 = vmul.f32 %v4928_v37, %v1200_v55  ;;  %v2028_v58 = vsub.f32 0.0, %v1900_v16  ;;  %v1391_v29 = vmul.f32 %v4868_v60, %v1327_v38 }
 0x239   :  { %5944 = vst [vmem:[#allocation18_spill] sm:$0xff] %v4977_v51  ;;  %v4982_v36 = vmul.f32 0.5, %v4832_v34  ;;  %v1075_v28 = vadd.f32 -1.4531521, %v1011_v18  ;;  %v2093_v56 = vsel %vm1965_vm1, %v1901_v13, %v2029_v57  ;;  %v1202_v35 = vadd.f32 1.4214138, %v1138_v39 }
 0x23a   :  { %v1586_v24 = vsub.f32 0.0, %v4866_v44  ;;  %v4990_v30 = vmul.f32 0.70710677, %v4972_v59  ;;  %vm1966_vm3 = vcmp.ge.f32.partialorder %v4731_v3, 0.0  ;;  %v1393_v19 = vmul.f32 %v4884_v43, %v1329_v1 }
 0x23b   :  { %3458 = vpow2.f32 %v1751_v33  ;;  %v1749_v38 = vmul.f32 1.442695, %v1648_v9  ;;  %v1139_v34 = vmul.f32 %v4967_v48, %v1075_v28  ;;  %v1902_v22 = vsub.f32 1.0, %v1838_v47  ;;  %v5945_v33 = vld [vmem:[#allocation34_spill] sm:$0xff] }
 0x23c   :  { %v1328_v41 = vadd.f32 -0.28449672, %v1264_v5  ;;  %v4996_v54 = vmul.f32 0.5, %v4841_v21  ;;  %v4999_v13 = vand.u32 2147483647, %v4990_v30  ;;  %v2157_v55 = vadd.f32 1.0, %v2093_v56 }
 0x23d   :  { %v5001_v20 = vpop.eup %3452  ;;  %v2092_v32 = vsel %vm1964_vm2, %v1900_v16, %v2028_v58  ;;  %v1455_v50 = vadd.f32 0.2548296, %v1391_v29  ;;  %v5006_v57 = vmul.f32 0.5, %v4861_v15  ;;  %v1266_v39 = vmul.f32 %v4947_v45, %v1202_v35 }
 0x23e   :  { %v1650_v1 = vmul.f32 %v1586_v24, %v4866_v44  ;;  %v1013_v21 = vmul.f32 1.0614054, %v5001_v20  ;;  %v5013_v9 = vadd.f32 %v5945_v33, %v3748_v61  ;;  %v1457_v18 = vadd.f32 0.2548296, %v1393_v19 }
 0x23f   :  { %3460 = vpow2.f32 %v1749_v38  ;;  %v1203_v47 = vadd.f32 1.4214138, %v1139_v34  ;;  %v822_v4 = vmul.f32 0.3275911, %v4999_v13  ;;  %v2030_v5 = vsub.f32 0.0, %v1902_v22 }
 0x240   :  { %v5016_v16 = vpop.eup %3454  ;;  %v1392_v15 = vmul.f32 %v4928_v37, %v1328_v41  ;;  %v1587_v58 = vsub.f32 0.0, %v4895_v53  ;;  %v1589_v44 = vsub.f32 0.0, %v4933_v25  ;;  %v1519_v29 = vmul.f32 %v4868_v60, %v1455_v50 }
 0x241   :  { %v1077_v28 = vadd.f32 -1.4531521, %v1013_v21  ;;  %v1012_v56 = vmul.f32 1.0614054, %v5016_v16  ;;  %v886_v35 = vadd.f32 1.0, %v822_v4  ;;  %v5024_v19 = vmul.f32 %v2157_v55, %v4791_v46 }
 0x242   :  { %v3457_v24 = vpop.eup %3456  ;;  %v2156_v38 = vadd.f32 1.0, %v2092_v32  ;;  %v1330_v34 = vadd.f32 -0.28449672, %v1266_v39  ;;  %v5027_v33 = vmul.f32 0.70710677, %v5013_v9  ;;  %v1521_v41 = vmul.f32 %v4884_v43, %v1457_v18 }
 0x243   :  { %5946 = vst [vmem:[#allocation34_spill] sm:$0xff] %v5024_v19  ;;  %v1753_v51 = vmul.f32 1.442695, %v1650_v1  ;;  %v1267_v10 = vmul.f32 %v4967_v48, %v1203_v47  ;;  %3462 = vrcp.f32 %v886_v35  ;;  %v2094_v60 = vsel %vm1966_vm3, %v1902_v22, %v2030_v5  ;;  %v5948_v22 = vld [vmem:[#allocation51_spill] sm:$0xff] }
 0x244   :  { %v1456_v50 = vadd.f32 0.2548296, %v1392_v15  ;;  %v1651_v21 = vmul.f32 %v1587_v58, %v4895_v53  ;;  %v5035_v46 = vand.u32 2147483647, %v5027_v33  ;;  %v1839_v32 = vmul.f32 %v3457_v24, %v1519_v29 }
 0x245   :  { %v3459_v55 = vpop.eup %3458  ;;  %v1141_v39 = vmul.f32 %v5001_v20, %v1077_v28  ;;  %v1653_v4 = vmul.f32 %v1589_v44, %v4933_v25  ;;  %v1076_v43 = vadd.f32 -1.4531521, %v1012_v56  ;;  %v5040_v1 = vmul.f32 %v2156_v38, %v4817_v63 }
 0x246   :  { %v1394_v18 = vmul.f32 %v4947_v45, %v1330_v34  ;;  %v823_v3 = vmul.f32 0.3275911, %v5035_v46  ;;  %v5046_v53 = vadd.f32 %v5948_v22, %v3750_v62  ;;  %v1841_v47 = vmul.f32 %v3459_v55, %v1521_v41  ;;  %v5949_v41 = vld [vmem:[#allocation52_spill] sm:$0xff] }
 0x247   :  { %5947 = vst [vmem:[#allocation64_spill] sm:$0xff] %v5040_v1  ;;  %3464 = vpow2.f32 %v1753_v51  ;;  %v1331_v5 = vadd.f32 -0.28449672, %v1267_v10  ;;  %v5049_v15 = vmul.f32 0.5, %v4907_v14  ;;  %v2158_v58 = vadd.f32 1.0, %v2094_v60 }
 0x248   :  { %vm1967_vm4 = vcmp.ge.f32.partialorder %v4780_v49, 0.0  ;;  %v1520_v63 = vmul.f32 %v4928_v37, %v1456_v50  ;;  %v1755_v25 = vmul.f32 1.442695, %v1651_v21  ;;  %v887_v44 = vadd.f32 1.0, %v823_v3 }
 0x249   :  { %v3461_v29 = vpop.eup %3460  ;;  %v1903_v28 = vsub.f32 1.0, %v1839_v32  ;;  %v1205_v56 = vadd.f32 1.4214138, %v1141_v39  ;;  %v1759_v35 = vmul.f32 1.442695, %v1653_v4  ;;  %v1140_v24 = vmul.f32 %v5016_v16, %v1076_v43 }
 0x24a   :  { %v1458_v38 = vadd.f32 0.2548296, %v1394_v18  ;;  %v1588_v51 = vsub.f32 0.0, %v4945_v8  ;;  %3466 = vrcp.f32 %v887_v44  ;;  %v5056_v14 = vmul.f32 0.70710677, %v5046_v53 }
 0x24b   :  { %v1905_v10 = vsub.f32 1.0, %v1841_v47  ;;  %vm1969_vm5 = vcmp.ge.f32.partialorder %v4798_v2, 0.0  ;;  %v1395_v37 = vmul.f32 %v4967_v48, %v1331_v5  ;;  %v5061_v34 = vmul.f32 0.5, %v4912_v12 }
 0x24c   :  { %v5065_v60 = vadd.f32 %v5949_v41, %v3752_v0  ;;  %v5068_v50 = vmul.f32 %v2158_v58, %v4820_v6  ;;  %v1840_v21 = vmul.f32 %v3461_v29, %v1520_v63  ;;  %3468 = vpow2.f32 %v1755_v25 }
 0x24d   :  { %v5071_v55 = vand.u32 2147483647, %v5056_v14  ;;  %v5073_v32 = vpop.eup %3462  ;;  %v2031_v39 = vsub.f32 0.0, %v1903_v28  ;;  %v1269_v4 = vmul.f32 %v5001_v20, %v1205_v56  ;;  %3470 = vpow2.f32 %v1759_v35 }
 0x24e   :  { %5950 = vst [vmem:[#allocation51_spill] sm:$0xff] %v5068_v50  ;;  %v1204_v12 = vadd.f32 1.4214138, %v1140_v24  ;;  %v1522_v43 = vmul.f32 %v4947_v45, %v1458_v38  ;;  %v1652_v18 = vmul.f32 %v1588_v51, %v4945_v8  ;;  %v1014_v3 = vmul.f32 1.0614054, %v5073_v32  ;;  %v5951_v45 = vld [vmem:[#allocation22_spill] sm:$0xff] }
 0x24f   :  { %v825_v6 = vmul.f32 0.3275911, %v5071_v55  ;;  %v2033_v22 = vsub.f32 0.0, %v1905_v10  ;;  %vm1968_vm6 = vcmp.ge.f32.partialorder %v4837_v26, 0.0  ;;  %v1459_v47 = vadd.f32 0.2548296, %v1395_v37 }
 0x250   :  { %v1590_v5 = vsub.f32 0.0, %v4999_v13  ;;  %v5083_v58 = vmul.f32 0.70710677, %v5065_v60  ;;  %v1904_v63 = vsub.f32 1.0, %v1840_v21  ;;  %v1078_v25 = vadd.f32 -1.4531521, %v1014_v3 }
 0x251   :  { %v889_v44 = vadd.f32 1.0, %v825_v6  ;;  %v5087_v29 = vadd.f32 %v5951_v45, %v3760_v7  ;;  %v3465_v8 = vpop.eup %3464  ;;  %v2095_v56 = vsel %vm1967_vm4, %v1903_v28, %v2031_v39  ;;  %v1333_v35 = vadd.f32 -0.28449672, %v1269_v4 }
 0x252   :  { %v1268_v24 = vmul.f32 %v5016_v16, %v1204_v12  ;;  %v5093_v38 = vand.u32 2147483647, %v5083_v58  ;;  %v1842_v51 = vmul.f32 %v3465_v8, %v1522_v43  ;;  %v1757_v37 = vmul.f32 1.442695, %v1652_v18 }
 0x253   :  { %v1142_v41 = vmul.f32 %v5073_v32, %v1078_v25  ;;  %3472 = vrcp.f32 %v889_v44  ;;  %v1523_v21 = vmul.f32 %v4967_v48, %v1459_v47  ;;  %v5098_v3 = vmul.f32 0.5, %v4972_v59 }
 0x254   :  { %v1654_v6 = vmul.f32 %v1590_v5, %v4999_v13  ;;  %v824_v49 = vmul.f32 0.3275911, %v5093_v38  ;;  %v5102_v28 = vpop.eup %3466  ;;  %v2159_v39 = vadd.f32 1.0, %v2095_v56  ;;  %v2097_v4 = vsel %vm1969_vm5, %v1905_v10, %v2033_v22 }
 0x255   :  { %v2032_v12 = vsub.f32 0.0, %v1904_v63  ;;  %v5107_v43 = vmul.f32 0.70710677, %v5087_v29  ;;  %vm1970_vm7 = vcmp.ge.f32.partialorder %v4857_v17, 0.0  ;;  %v1397_v48 = vmul.f32 %v5001_v20, %v1333_v35 }
 0x256   :  { %v1332_v59 = vadd.f32 -0.28449672, %v1268_v24  ;;  %v1015_v18 = vmul.f32 1.0614054, %v5102_v28  ;;  %v888_v13 = vadd.f32 1.0, %v824_v49  ;;  %v3469_v47 = vpop.eup %3468  ;;  %v1906_v5 = vsub.f32 1.0, %v1842_v51 }
 0x257   :  { %3474 = vpow2.f32 %v1757_v37  ;;  %v1206_v25 = vadd.f32 1.4214138, %v1142_v41  ;;  %v5113_v44 = vand.u32 2147483647, %v5107_v43  ;;  %v3471_v2 = vpop.eup %3470  ;;  %v1843_v10 = vmul.f32 %v3469_v47, %v1523_v21  ;;  %v5952_v24 = vld [vmem:[#allocation24_spill] sm:$0xff] }
 0x258   :  { %v1761_v22 = vmul.f32 1.442695, %v1654_v6  ;;  %v1079_v45 = vadd.f32 -1.4531521, %v1015_v18  ;;  %3476 = vrcp.f32 %v888_v13  ;;  %v2161_v8 = vadd.f32 1.0, %v2097_v4 }
 0x259   :  { %v2096_v56 = vsel %vm1968_vm6, %v1904_v63, %v2032_v12  ;;  %v826_v35 = vmul.f32 0.3275911, %v5113_v44  ;;  %v5120_v49 = vadd.f32 %v5952_v24, %v3748_v61  ;;  %v5123_v51 = vmul.f32 %v2159_v39, %v4898_v52 }
 0x25a   :  { %v1461_v37 = vadd.f32 0.2548296, %v1397_v48  ;;  %v1396_v41 = vmul.f32 %v5016_v16, %v1332_v59  ;;  %v1143_v21 = vmul.f32 %v5102_v28, %v1079_v45  ;;  %v2034_v6 = vsub.f32 0.0, %v1906_v5 }
 0x25b   :  { %5953 = vst [vmem:[#allocation52_spill] sm:$0xff] %v5123_v51  ;;  %vm1971_vm8 = vcmp.ge.f32.partialorder %v4877_v11, 0.0  ;;  %v1270_v26 = vmul.f32 %v5073_v32, %v1206_v25  ;;  %v1591_v63 = vsub.f32 0.0, %v5035_v46  ;;  %v890_v4 = vadd.f32 1.0, %v826_v35 }
 0x25c   :  { %v2160_v12 = vadd.f32 1.0, %v2096_v56  ;;  %v1907_v18 = vsub.f32 1.0, %v1843_v10  ;;  %3478 = vpow2.f32 %v1761_v22  ;;  %v5131_v13 = vmul.f32 0.5, %v5013_v9  ;;  %v5955_v10 = vld [vmem:[#allocation54_spill] sm:$0xff] }
 0x25d   :  { %v5133_v52 = vpop.eup %3472  ;;  %v5136_v39 = vmul.f32 %v2161_v8, %v4917_v27  ;;  %v1207_v48 = vadd.f32 1.4214138, %v1143_v21  ;;  %3480 = vrcp.f32 %v890_v4  ;;  %v5139_v59 = vmul.f32 0.70710677, %v5120_v49 }
 0x25e   :  { %v1525_v47 = vmul.f32 %v5001_v20, %v1461_v37  ;;  %v1460_v25 = vadd.f32 0.2548296, %v1396_v41  ;;  %v1017_v45 = vmul.f32 1.0614054, %v5133_v52  ;;  %v5145_v22 = vadd.f32 %v5955_v10, %v3750_v62 }
 0x25f   :  { %5954 = vst [vmem:[#allocation22_spill] sm:$0xff] %v5136_v39  ;;  %v2098_v9 = vsel %vm1970_vm7, %v1906_v5, %v2034_v6  ;;  %v1334_v56 = vadd.f32 -0.28449672, %v1270_v26  ;;  %v1655_v27 = vmul.f32 %v1591_v63, %v5035_v46  ;;  %v5151_v8 = vand.u32 2147483647, %v5139_v59  ;;  %v5957_v46 = vld [vmem:[#allocation14_spill] sm:$0xff] }
 0x260   :  { %v5154_v35 = vmul.f32 %v2160_v12, %v4982_v36  ;;  %v2035_v20 = vsub.f32 0.0, %v1907_v18  ;;  %v5157_v24 = vmul.f32 0.5, %v5046_v53  ;;  %v1081_v37 = vadd.f32 -1.4531521, %v1017_v45 }
 0x261   :  { %v3475_v41 = vpop.eup %3474  ;;  %v1271_v21 = vmul.f32 %v5102_v28, %v1207_v48  ;;  %v827_v17 = vmul.f32 0.3275911, %v5151_v8  ;;  %v5162_v5 = vmul.f32 0.70710677, %v5145_v22  ;;  %v5166_v6 = vadd.f32 %v5957_v46, %v3752_v0 }
 0x262   :  { %5956 = vst [vmem:[#allocation24_spill] sm:$0xff] %v5154_v35  ;;  %v5168_v26 = vpop.eup %3476  ;;  %v2162_v36 = vadd.f32 1.0, %v2098_v9  ;;  %v1845_v63 = vmul.f32 %v3471_v2, %v1525_v47  ;;  %v1524_v53 = vmul.f32 %v5016_v16, %v1460_v25  ;;  %v1145_v4 = vmul.f32 %v5133_v52, %v1081_v37 }
 0x263   :  { %v1398_v12 = vmul.f32 %v5073_v32, %v1334_v56  ;;  %v1763_v48 = vmul.f32 1.442695, %v1655_v27  ;;  %v1016_v45 = vmul.f32 1.0614054, %v5168_v26  ;;  %v891_v10 = vadd.f32 1.0, %v827_v17 }
 0x264   :  { %v2099_v39 = vsel %vm1971_vm8, %v1907_v18, %v2035_v20  ;;  %v1209_v19 = vadd.f32 1.4214138, %v1145_v4  ;;  %v1593_v46 = vsub.f32 0.0, %v5071_v55  ;;  %v5178_v51 = vand.u32 2147483647, %v5162_v5 }
 0x265   :  { %vm1973_vm9 = vcmp.ge.f32.partialorder %v4921_v31, 0.0  ;;  %v1335_v16 = vadd.f32 -0.28449672, %v1271_v21  ;;  %v1080_v2 = vadd.f32 -1.4531521, %v1016_v45  ;;  %3482 = vrcp.f32 %v891_v10 }
 0x266   :  { %v5182_v47 = vmul.f32 0.70710677, %v5166_v6  ;;  %v3479_v25 = vpop.eup %3478  ;;  %v1909_v9 = vsub.f32 1.0, %v1845_v63  ;;  %v1844_v56 = vmul.f32 %v3475_v41, %v1524_v53  ;;  %v1592_v11 = vsub.f32 0.0, %v5093_v38 }
 0x267   :  { %v829_v18 = vmul.f32 0.3275911, %v5178_v51  ;;  %v5186_v27 = vpop.eup %3480  ;;  %v1462_v20 = vadd.f32 0.2548296, %v1398_v12  ;;  %3484 = vpow2.f32 %v1763_v48  ;;  %v5189_v37 = vmul.f32 0.5, %v5065_v60 }
 0x268   :  { %v1144_v21 = vmul.f32 %v5168_v26, %v1080_v2  ;;  %v2163_v17 = vadd.f32 1.0, %v2099_v39  ;;  %v1273_v4 = vmul.f32 %v5133_v52, %v1209_v19  ;;  %v1657_v45 = vmul.f32 %v1593_v46, %v5071_v55 }
 0x269   :  { %v1018_v41 = vmul.f32 1.0614054, %v5186_v27  ;;  %vm1972_vm10 = vcmp.ge.f32.partialorder %v4937_v42, 0.0  ;;  %v1399_v63 = vmul.f32 %v5102_v28, %v1335_v16  ;;  %v893_v10 = vadd.f32 1.0, %v829_v18 }
 0x26a   :  { %v1208_v53 = vadd.f32 1.4214138, %v1144_v21  ;;  %v5198_v12 = vand.u32 2147483647, %v5182_v47  ;;  %v2037_v60 = vsub.f32 0.0, %v1909_v9  ;;  %v1908_v48 = vsub.f32 1.0, %v1844_v56 }
 0x26b   :  { %v1656_v2 = vmul.f32 %v1592_v11, %v5093_v38  ;;  %v1082_v39 = vadd.f32 -1.4531521, %v1018_v41  ;;  %v1526_v19 = vmul.f32 %v5073_v32, %v1462_v20  ;;  %3486 = vrcp.f32 %v893_v10  ;;  %v5958_v38 = vld [vmem:[#allocation28_spill] sm:$0xff] }
 0x26c   :  { %v1272_v55 = vmul.f32 %v5168_v26, %v1208_v53  ;;  %v828_v46 = vmul.f32 0.3275911, %v5198_v12  ;;  %v1337_v50 = vadd.f32 -0.28449672, %v1273_v4  ;;  %v1767_v35 = vmul.f32 1.442695, %v1657_v45 }
 0x26d   :  { %v1146_v16 = vmul.f32 %v5186_v27, %v1082_v39  ;;  %v1594_v18 = vsub.f32 0.0, %v5113_v44  ;;  %v5207_v21 = vmul.f32 %v2162_v36, %v4996_v54  ;;  %v1463_v56 = vadd.f32 0.2548296, %v1399_v63 }
 0x26e   :  { %v892_v1 = vadd.f32 1.0, %v828_v46  ;;  %v5211_v11 = vadd.f32 %v5958_v38, %v3760_v7  ;;  %v2101_v32 = vsel %vm1973_vm9, %v1909_v9, %v2037_v60  ;;  %v2036_v20 = vsub.f32 0.0, %v1908_v48 }
 0x26f   :  { %v1336_v41 = vadd.f32 -0.28449672, %v1272_v55  ;;  %v1210_v4 = vadd.f32 1.4214138, %v1146_v16  ;;  %v5215_v45 = vpop.eup %3482  ;;  %v5218_v53 = vmul.f32 %v2163_v17, %v5006_v57  ;;  %v1846_v10 = vmul.f32 %v3479_v25, %v1526_v19  ;;  %v5960_v57 = vld [vmem:[#allocation17_spill] sm:$0xff] }
 0x270   :  { %v1765_v54 = vmul.f32 1.442695, %v1656_v2  ;;  %3488 = vrcp.f32 %v892_v1  ;;  %v1401_v36 = vmul.f32 %v5133_v52, %v1337_v50  ;;  %v1658_v63 = vmul.f32 %v1594_v18, %v5113_v44 }
 0x271   :  { %5959 = vst [vmem:[#allocation54_spill] sm:$0xff] %v5218_v53  ;;  %3490 = vpow2.f32 %v1767_v35  ;;  %v1019_v39 = vmul.f32 1.0614054, %v5215_v45  ;;  %v3485_v31 = vpop.eup %3484  ;;  %v2165_v9 = vadd.f32 1.0, %v2101_v32  ;;  %v1527_v60 = vmul.f32 %v5102_v28, %v1463_v56 }
 0x272   :  { %v5225_v55 = vmul.f32 0.70710677, %v5211_v11  ;;  %v5229_v17 = vadd.f32 %v5960_v57, %v3748_v61  ;;  %v2100_v1 = vsel %vm1972_vm10, %v1908_v48, %v2036_v20  ;;  %vm1974_vm11 = vcmp.ge.f32.partialorder %v4990_v30, 0.0 }
 0x273   :  { %v1400_v50 = vmul.f32 %v5168_v26, %v1336_v41  ;;  %v1274_v44 = vmul.f32 %v5186_v27, %v1210_v4  ;;  %v1083_v35 = vadd.f32 -1.4531521, %v1019_v39  ;;  %v1910_v25 = vsub.f32 1.0, %v1846_v10 }
 0x274   :  { %3492 = vpow2.f32 %v1765_v54  ;;  %v5237_v28 = vmul.f32 0.5, %v5087_v29  ;;  %v5240_v2 = vand.u32 2147483647, %v5225_v55  ;;  %v1465_v19 = vadd.f32 0.2548296, %v1401_v36 }
 0x275   :  { %v1769_v46 = vmul.f32 1.442695, %v1658_v63  ;;  %v1147_v42 = vmul.f32 %v5215_v45, %v1083_v35  ;;  %v5244_v48 = vmul.f32 0.70710677, %v5229_v17  ;;  %v5246_v16 = vpop.eup %3486  ;;  %v2164_v18 = vadd.f32 1.0, %v2100_v1 }
 0x276   :  { %v1847_v56 = vmul.f32 %v3485_v31, %v1527_v60  ;;  %v1595_v38 = vsub.f32 0.0, %v5151_v8  ;;  %v830_v32 = vmul.f32 0.3275911, %v5240_v2  ;;  %v5251_v29 = vmul.f32 %v2165_v9, %v5049_v15 }
 0x277   :  { %v1464_v20 = vadd.f32 0.2548296, %v1400_v50  ;;  %v1338_v41 = vadd.f32 -0.28449672, %v1274_v44  ;;  %v1021_v4 = vmul.f32 1.0614054, %v5246_v16  ;;  %v1529_v39 = vmul.f32 %v5133_v52, %v1465_v19 }
 0x278   :  { %5961 = vst [vmem:[#allocation14_spill] sm:$0xff] %v5251_v29  ;;  %v2038_v10 = vsub.f32 0.0, %v1910_v25  ;;  %v1211_v54 = vadd.f32 1.4214138, %v1147_v42  ;;  %v1597_v36 = vsub.f32 0.0, %v5178_v51  ;;  %v894_v63 = vadd.f32 1.0, %v830_v32 }
 0x279   :  { %vm1975_vm12 = vcmp.ge.f32.partialorder %v5027_v33, 0.0  ;;  %3494 = vpow2.f32 %v1769_v46  ;;  %v1085_v31 = vadd.f32 -1.4531521, %v1021_v4  ;;  %v5258_v60 = vand.u32 2147483647, %v5244_v48  ;;  %v5962_v32 = vld [vmem:[#allocation33_spill] sm:$0xff] }
 0x27a   :  { %v5260_v15 = vpop.eup %3488  ;;  %v1911_v9 = vsub.f32 1.0, %v1847_v56  ;;  %v5263_v57 = vmul.f32 0.5, %v5120_v49  ;;  %v1659_v1 = vmul.f32 %v1595_v38, %v5151_v8  ;;  %3496 = vrcp.f32 %v894_v63 }
 0x27b   :  { %v3491_v50 = vpop.eup %3490  ;;  %v1528_v44 = vmul.f32 %v5168_v26, %v1464_v20  ;;  %v1402_v35 = vmul.f32 %v5186_v27, %v1338_v41  ;;  %v1149_v52 = vmul.f32 %v5246_v16, %v1085_v31  ;;  %v1020_v19 = vmul.f32 1.0614054, %v5260_v15 }
 0x27c   :  { %v2102_v46 = vsel %vm1974_vm11, %v1910_v25, %v2038_v10  ;;  %v1275_v42 = vmul.f32 %v5215_v45, %v1211_v54  ;;  %v1661_v49 = vmul.f32 %v1597_v36, %v5178_v51  ;;  %v831_v56 = vmul.f32 0.3275911, %v5258_v60 }
 0x27d   :  { %v5276_v8 = vmul.f32 %v2164_v18, %v5061_v34  ;;  %v1849_v38 = vmul.f32 %v3491_v50, %v1529_v39  ;;  %v1213_v26 = vadd.f32 1.4214138, %v1149_v52  ;;  %v5280_v20 = vadd.f32 %v5962_v32, %v3750_v62 }
 0x27e   :  { %v3493_v41 = vpop.eup %3492  ;;  %v2039_v4 = vsub.f32 0.0, %v1911_v9  ;;  %v1771_v63 = vmul.f32 1.442695, %v1659_v1  ;;  %v1084_v30 = vadd.f32 -1.4531521, %v1020_v19  ;;  %v895_v25 = vadd.f32 1.0, %v831_v56 }
 0x27f   :  { %v2166_v10 = vadd.f32 1.0, %v2102_v46  ;;  %v1848_v54 = vmul.f32 %v3493_v41, %v1528_v44  ;;  %v1466_v31 = vadd.f32 0.2548296, %v1402_v35  ;;  %v5283_v51 = vmul.f32 0.5, %v5145_v22  ;;  %v5963_v35 = vld [vmem:[#allocation58_spill] sm:$0xff] }
 0x280   :  { %vm1977_vm13 = vcmp.ge.f32.partialorder %v5056_v14, 0.0  ;;  %v1339_v34 = vadd.f32 -0.28449672, %v1275_v42  ;;  %v1775_v18 = vmul.f32 1.442695, %v1661_v49  ;;  %v1148_v36 = vmul.f32 %v5260_v15, %v1084_v30 }
 0x281   :  { %3498 = vrcp.f32 %v895_v25  ;;  %v1913_v39 = vsub.f32 1.0, %v1849_v38  ;;  %v1277_v50 = vmul.f32 %v5246_v16, %v1213_v26  ;;  %v5289_v1 = vmul.f32 0.5, %v5166_v6 }
 0x282   :  { %v5292_v52 = vmul.f32 0.70710677, %v5280_v20  ;;  %v2103_v22 = vsel %vm1975_vm12, %v1911_v9, %v2039_v4  ;;  %vm1976_vm14 = vcmp.ge.f32.partialorder %v5083_v58, 0.0  ;;  %3500 = vpow2.f32 %v1771_v63 }
 0x283   :  { %v1596_v44 = vsub.f32 0.0, %v5198_v12  ;;  %v5300_v19 = vadd.f32 %v5963_v35, %v3752_v0  ;;  %v3495_v46 = vpop.eup %3494  ;;  %v1912_v42 = vsub.f32 1.0, %v1848_v54  ;;  %v1530_v6 = vmul.f32 %v5186_v27, %v1466_v31 }
 0x284   :  { %v1212_v49 = vadd.f32 1.4214138, %v1148_v36  ;;  %v5304_v56 = vand.u32 2147483647, %v5292_v52  ;;  %v5306_v38 = vpop.eup %3496  ;;  %v5309_v33 = vmul.f32 %v2166_v10, %v5098_v3  ;;  %v1403_v9 = vmul.f32 %v5215_v45, %v1339_v34 }
 0x285   :  { %3502 = vpow2.f32 %v1775_v18  ;;  %v5313_v26 = vmul.f32 0.70710677, %v5300_v19  ;;  %v2041_v32 = vsub.f32 0.0, %v1913_v39  ;;  %v1341_v41 = vadd.f32 -0.28449672, %v1277_v50 }
 0x286   :  { %5964 = vst [vmem:[#allocation28_spill] sm:$0xff] %v5309_v33  ;;  %v1022_v4 = vmul.f32 1.0614054, %v5306_v38  ;;  %v1598_v27 = vsub.f32 0.0, %v5240_v2  ;;  %v2167_v63 = vadd.f32 1.0, %v2103_v22  ;;  %v1660_v30 = vmul.f32 %v1596_v44, %v5198_v12 }
 0x287   :  { %v833_v25 = vmul.f32 0.3275911, %v5304_v56  ;;  %v5320_v3 = vand.u32 2147483647, %v5313_v26  ;;  %v2040_v10 = vsub.f32 0.0, %v1912_v42  ;;  %v1850_v54 = vmul.f32 %v3495_v46, %v1530_v6 }
 0x288   :  { %v1276_v31 = vmul.f32 %v5260_v15, %v1212_v49  ;;  %v1086_v34 = vadd.f32 -1.4531521, %v1022_v4  ;;  %v1467_v18 = vadd.f32 0.2548296, %v1403_v9  ;;  %v5324_v36 = vmul.f32 0.5, %v5211_v11  ;;  %v5965_v49 = vld [vmem:[#allocation59_spill] sm:$0xff] }
 0x289   :  { %v897_v50 = vadd.f32 1.0, %v833_v25  ;;  %v832_v35 = vmul.f32 0.3275911, %v5320_v3  ;;  %v2105_v12 = vsel %vm1977_vm13, %v1913_v39, %v2041_v32  ;;  %v1405_v22 = vmul.f32 %v5246_v16, %v1341_v41 }
 0x28a   :  { %v1150_v44 = vmul.f32 %v5306_v38, %v1086_v34  ;;  %v1662_v29 = vmul.f32 %v1598_v27, %v5240_v2  ;;  %vm1978_vm15 = vcmp.ge.f32.partialorder %v5107_v43, 0.0  ;;  %v1599_v6 = vsub.f32 0.0, %v5258_v60 }
 0x28b   :  { %v5332_v46 = vpop.eup %3498  ;;  %3504 = vrcp.f32 %v897_v50  ;;  %v896_v11 = vadd.f32 1.0, %v832_v35  ;;  %v5338_v9 = vadd.f32 %v5965_v49, %v3760_v7  ;;  %v2104_v14 = vsel %vm1976_vm14, %v1912_v42, %v2040_v10 }
 0x28c   :  { %v1914_v39 = vsub.f32 1.0, %v1850_v54  ;;  %v1340_v32 = vadd.f32 -0.28449672, %v1276_v31  ;;  %v1023_v41 = vmul.f32 1.0614054, %v5332_v46  ;;  %v3501_v2 = vpop.eup %3500  ;;  %v2169_v4 = vadd.f32 1.0, %v2105_v12 }
 0x28d   :  { %v1531_v27 = vmul.f32 %v5215_v45, %v1467_v18  ;;  %v1773_v25 = vmul.f32 1.442695, %v1660_v30  ;;  %3506 = vrcp.f32 %v896_v11  ;;  %v5345_v34 = vmul.f32 %v2167_v63, %v5131_v13  ;;  %v5966_v30 = vld [vmem:[#allocation42_spill] sm:$0xff] }
 0x28e   :  { %v1469_v50 = vadd.f32 0.2548296, %v1405_v22  ;;  %v1214_v35 = vadd.f32 1.4214138, %v1150_v44  ;;  %v1087_v49 = vadd.f32 -1.4531521, %v1023_v41  ;;  %v1663_v42 = vmul.f32 %v1599_v6, %v5258_v60 }
 0x28f   :  { %v3503_v53 = vpop.eup %3502  ;;  %v2168_v33 = vadd.f32 1.0, %v2104_v14  ;;  %v1777_v58 = vmul.f32 1.442695, %v1662_v29  ;;  %v5349_v10 = vmul.f32 0.70710677, %v5338_v9  ;;  %v2042_v54 = vsub.f32 0.0, %v1914_v39 }
 0x290   :  { %v1404_v31 = vmul.f32 %v5260_v15, %v1340_v32  ;;  %v1151_v45 = vmul.f32 %v5332_v46, %v1087_v49  ;;  %v5355_v13 = vadd.f32 %v5966_v30, %v3748_v61  ;;  %v1851_v63 = vmul.f32 %v3501_v2, %v1531_v27  ;;  %v5969_v27 = vld [vmem:[#allocation41_spill] sm:$0xff]  ;;  %v5971_v30 = vld [vmem:[#allocation27_spill] sm:$0xff] }
 0x291   :  { %3508 = vpow2.f32 %v1773_v25  ;;  %v5358_v18 = vmul.f32 0.5, %v5229_v17  ;;  %v5361_v29 = vand.u32 2147483647, %v5349_v10  ;;  %v5364_v60 = vmul.f32 %v2169_v4, %v5157_v24  ;;  %v5968_v4 = vld [vmem:[#allocation39_spill] sm:$0xff] }
 0x292   :  { %v1533_v12 = vmul.f32 %v5246_v16, %v1469_v50  ;;  %v1278_v22 = vmul.f32 %v5306_v38, %v1214_v35  ;;  %v1215_v44 = vadd.f32 1.4214138, %v1151_v45  ;;  %v5369_v6 = vmul.f32 %v2168_v33, %v5189_v37 }
 0x293   :  { %5967 = vst [vmem:[#allocation17_spill] sm:$0xff] %v5364_v60  ;;  %3510 = vpow2.f32 %v1777_v58  ;;  %v1779_v11 = vmul.f32 1.442695, %v1663_v42  ;;  %v834_v14 = vmul.f32 0.3275911, %v5361_v29  ;;  %v2106_v17 = vsel %vm1978_vm15, %v1914_v39, %v2042_v54 }
 0x294   :  { %vm1979_vm0 = vcmp.ge.f32.partialorder %v5139_v59, 0.0  ;;  %v1468_v32 = vadd.f32 0.2548296, %v1404_v31  ;;  %v1601_v24 = vsub.f32 0.0, %v5304_v56  ;;  %v5377_v16 = vmul.f32 0.70710677, %v5355_v13 }
 0x295   :  { %v5379_v41 = vpop.eup %3504  ;;  %v1915_v2 = vsub.f32 1.0, %v1851_v63  ;;  %v5382_v37 = vmul.f32 0.5, %v5280_v20  ;;  %v898_v33 = vadd.f32 1.0, %v834_v14  ;;  %v2268_v25 = vpack.c.bf16 %v5969_v27, %v5968_v4  ;;  %v5970_v20 = vld [vmem:[#allocation60_spill] sm:$0xff]  ;;  %v5972_v63 = vld [vmem:[#allocation26_spill] sm:$0xff] }
 0x296   :  { %v1853_v43 = vmul.f32 %v3503_v53, %v1533_v12  ;;  %v1342_v39 = vadd.f32 -0.28449672, %v1278_v22  ;;  %v1279_v50 = vmul.f32 %v5332_v46, %v1215_v44  ;;  %v1025_v35 = vmul.f32 1.0614054, %v5379_v41 }
 0x297   :  { %v5388_v49 = vpop.eup %3506  ;;  %v2170_v58 = vadd.f32 1.0, %v2106_v17  ;;  %3512 = vrcp.f32 %v898_v33  ;;  %v5391_v42 = vand.u32 2147483647, %v5377_v16  ;;  %v5395_v54 = vadd.f32 %v5970_v20, %v3750_v62  ;;  %2587 = vmatprep.mubr.bf16.mxu0 %v2268_v25 }
 0x298   :  { %v1532_v31 = vmul.f32 %v5260_v15, %v1468_v32  ;;  %3514 = vpow2.f32 %v1779_v11  ;;  %v1089_v53 = vadd.f32 -1.4531521, %v1025_v35  ;;  %v1665_v45 = vmul.f32 %v1601_v24, %v5304_v56 }
 0x299   :  { %v5973_v12 = vpack.c.bf16 %v5971_v30, %v5972_v63  ;;  %v2043_v22 = vsub.f32 0.0, %v1915_v2  ;;  %vm1981_vm1 = vcmp.ge.f32.partialorder %v5162_v5, 0.0  ;;  %v1024_v44 = vmul.f32 1.0614054, %v5388_v49  ;;  %v5974_v63 = vld [vmem:[#allocation40_spill] sm:$0xff] }
 0x29a   :  { %v1600_v14 = vsub.f32 0.0, %v5320_v3  ;;  %v835_v17 = vmul.f32 0.3275911, %v5391_v42  ;;  %v1917_v33 = vsub.f32 1.0, %v1853_v43  ;;  %v1406_v15 = vmul.f32 %v5306_v38, %v1342_v39 }
 0x29b   :  { %2588 = vmatmul.mubr.bf16.vlgmr.msra.gmra.mrb[32].mxu0 %v5973_v12  ;;  %v1343_v11 = vadd.f32 -0.28449672, %v1279_v50  ;;  %v1153_v32 = vmul.f32 %v5379_v41, %v1089_v53  ;;  %v3509_v56 = vpop.eup %3508  ;;  %v5409_v24 = vmul.f32 %v2170_v58, %v5237_v28  ;;  %v1088_v4 = vadd.f32 -1.4531521, %v1024_v44  ;;  %v5975_v12 = vld [vmem:[#allocation13_spill] sm:$0xff] }
 0x29c   :  { %v899_v27 = vadd.f32 1.0, %v835_v17  ;;  %v5412_v25 = vmul.f32 0.70710677, %v5395_v54  ;;  %v1852_v35 = vmul.f32 %v3509_v56, %v1532_v31  ;;  %v1783_v30 = vmul.f32 1.442695, %v1665_v45  ;;  %v5976_v17 = vld [vmem:[#allocation30_spill] sm:$0xff] }
 0x29d   :  { %v1217_v20 = vadd.f32 1.4214138, %v1153_v32  ;;  %v2270_v43 = vpack.c.bf16 %v5975_v12, %v5974_v63  ;;  %v3511_v60 = vpop.eup %3510  ;;  %v2107_v39 = vsel %vm1979_vm0, %v1915_v2, %v2043_v22  ;;  %v1152_v50 = vmul.f32 %v5388_v49, %v1088_v4  ;;  %v5977_v32 = vld [vmem:[#allocation29_spill] sm:$0xff] }
 0x29e   :  { %3516 = vrcp.f32 %v899_v27  ;;  %v5420_v28 = vand.u32 2147483647, %v5412_v25  ;;  %v2045_v58 = vsub.f32 0.0, %v1917_v33  ;;  %v1470_v53 = vadd.f32 0.2548296, %v1406_v15 }
 0x29f   :  { %v1281_v44 = vmul.f32 %v5379_v41, %v1217_v20  ;;  %v1664_v31 = vmul.f32 %v1600_v14, %v5320_v3  ;;  %2684 = vmatprep.mubr.bf16.mxu1 %v2270_v43  ;;  %vm1980_vm2 = vcmp.ge.f32.partialorder %v5182_v47, 0.0  ;;  %v1407_v45 = vmul.f32 %v5332_v46, %v1343_v11  ;;  %v5979_v3 = vld [vmem:[#allocation43_spill] sm:$0xff] }
 0x2a0   :  { %v5427_v59 = vmul.f32 0.5, %v5300_v19  ;;  %v1216_v2 = vadd.f32 1.4214138, %v1152_v50  ;;  %v837_v22 = vmul.f32 0.3275911, %v5420_v28  ;;  %v5978_v56 = vpack.c.bf16 %v5976_v17, %v5977_v32 }
 0x2a1   :  { %v2171_v15 = vadd.f32 1.0, %v2107_v39  ;;  %v1916_v4 = vsub.f32 1.0, %v1852_v35  ;;  %3518 = vpow2.f32 %v1783_v30  ;;  %v5435_v14 = vadd.f32 %v5979_v3, %v3752_v0  ;;  %v5437_v27 = vpop.eup %3512 }
 0x2a2   :  { %2685 = vmatmul.mubr.bf16.vlgmr.msra.gmra.mrb[32].mxu1 %v5978_v56  ;;  %v1345_v11 = vadd.f32 -0.28449672, %v1281_v44  ;;  %v1280_v19 = vmul.f32 %v5388_v49, %v1216_v2  ;;  %v1602_v20 = vsub.f32 0.0, %v5361_v29  ;;  %v901_v63 = vadd.f32 1.0, %v837_v22  ;;  %v3515_v12 = vpop.eup %3514  ;;  %v5980_v56 = vld [vmem:[#allocation45_spill] sm:$0xff] }
 0x2a3   :  { %v2109_v43 = vsel %vm1981_vm1, %v1917_v33, %v2045_v58  ;;  %v1534_v39 = vmul.f32 %v5306_v38, %v1470_v53  ;;  %v1781_v35 = vmul.f32 1.442695, %v1664_v31  ;;  %v1026_v30 = vmul.f32 1.0614054, %v5437_v27 }
 0x2a4   :  { %v1471_v50 = vadd.f32 0.2548296, %v1407_v45  ;;  %v1344_v17 = vadd.f32 -0.28449672, %v1280_v19  ;;  %3520 = vrcp.f32 %v901_v63  ;;  %v5446_v32 = vmul.f32 0.70710677, %v5435_v14 }
 0x2a5   :  { %v5449_v44 = vmul.f32 %v2171_v15, %v5263_v57  ;;  %v2044_v2 = vsub.f32 0.0, %v1916_v4  ;;  %v1090_v22 = vadd.f32 -1.4531521, %v1026_v30  ;;  %v5453_v5 = vadd.f32 %v5980_v56, %v3760_v7 }
 0x2a6   :  { %v1409_v38 = vmul.f32 %v5379_v41, %v1345_v11  ;;  %v1666_v33 = vmul.f32 %v1602_v20, %v5361_v29  ;;  %v1603_v58 = vsub.f32 0.0, %v5391_v42  ;;  %v5459_v53 = vand.u32 2147483647, %v5446_v32 }
 0x2a7   :  { %5981 = vst [vmem:[#allocation33_spill] sm:$0xff] %v5453_v5  ;;  %v2173_v31 = vadd.f32 1.0, %v2109_v43  ;;  %v1408_v45 = vmul.f32 %v5388_v49, %v1344_v17  ;;  %v5463_v57 = vmul.f32 0.5, %v5338_v9  ;;  %v1154_v15 = vmul.f32 %v5437_v27, %v1090_v22 }
 0x2a8   :  { %v5466_v3 = vpop.eup %3516  ;;  %v1854_v19 = vmul.f32 %v3511_v60, %v1534_v39  ;;  %v1535_v11 = vmul.f32 %v5332_v46, %v1471_v50  ;;  %3522 = vpow2.f32 %v1781_v35  ;;  %v836_v29 = vmul.f32 0.3275911, %v5459_v53 }
 0x2a9   :  { %v2108_v20 = vsel %vm1980_vm2, %v1916_v4, %v2044_v2  ;;  %v1218_v63 = vadd.f32 1.4214138, %v1154_v15  ;;  %v1027_v43 = vmul.f32 1.0614054, %v5466_v3  ;;  %v5474_v30 = vmul.f32 0.70710677, %v5453_v5 }
 0x2aa   :  { %v1473_v9 = vadd.f32 0.2548296, %v1409_v38  ;;  %v1785_v17 = vmul.f32 1.442695, %v1666_v33  ;;  %v1667_v22 = vmul.f32 %v1603_v58, %v5391_v42  ;;  %v900_v56 = vadd.f32 1.0, %v836_v29  ;;  %v5983_v58 = vld [vmem:[#allocation62_spill] sm:$0xff] }
 0x2ab   :  { %5982 = vst [vmem:[#allocation58_spill] sm:$0xff] %v5474_v30  ;;  %v3519_v60 = vpop.eup %3518  ;;  %vm1982_vm3 = vcmp.ge.f32.partialorder %v5225_v55, 0.0  ;;  %v1472_v46 = vadd.f32 0.2548296, %v1408_v45  ;;  %v1282_v39 = vmul.f32 %v5437_v27, %v1218_v63  ;;  %v1091_v35 = vadd.f32 -1.4531521, %v1027_v43 }
 0x2ac   :  { %v5480_v47 = vand.u32 2147483647, %v5474_v30  ;;  %v1918_v4 = vsub.f32 1.0, %v1854_v19  ;;  %v1855_v50 = vmul.f32 %v3515_v12, %v1535_v11  ;;  %v5483_v2 = vmul.f32 0.5, %v5355_v13 }
 0x2ad   :  { %3524 = vrcp.f32 %v900_v56  ;;  %v1346_v38 = vadd.f32 -0.28449672, %v1282_v39  ;;  %v1155_v42 = vmul.f32 %v5466_v3, %v1091_v35  ;;  %v5489_v45 = vadd.f32 %v5983_v58, %v3748_v61 }
 0x2ae   :  { %v838_v33 = vmul.f32 0.3275911, %v5480_v47  ;;  %v5491_v15 = vpop.eup %3520  ;;  %v2172_v29 = vadd.f32 1.0, %v2108_v20  ;;  %v1537_v63 = vmul.f32 %v5379_v41, %v1473_v9  ;;  %3526 = vpow2.f32 %v1785_v17 }
 0x2af   :  { %v1787_v12 = vmul.f32 1.442695, %v1667_v22  ;;  %v1536_v13 = vmul.f32 %v5388_v49, %v1472_v46  ;;  %v1410_v19 = vmul.f32 %v5437_v27, %v1346_v38  ;;  %v1219_v11 = vadd.f32 1.4214138, %v1155_v42 }
 0x2b0   :  { %v1029_v43 = vmul.f32 1.0614054, %v5491_v15  ;;  %v2046_v56 = vsub.f32 0.0, %v1918_v4  ;;  %v1919_v39 = vsub.f32 1.0, %v1855_v50  ;;  %vm1983_vm4 = vcmp.ge.f32.partialorder %v5244_v48, 0.0 }
 0x2b1   :  { %v1605_v61 = vsub.f32 0.0, %v5420_v28  ;;  %v902_v35 = vadd.f32 1.0, %v838_v33  ;;  %v1474_v58 = vadd.f32 0.2548296, %v1410_v19  ;;  %v1283_v20 = vmul.f32 %v5466_v3, %v1219_v11 }
 0x2b2   :  { %v1093_v41 = vadd.f32 -1.4531521, %v1029_v43  ;;  %v5501_v9 = vmul.f32 0.70710677, %v5489_v45  ;;  %v3523_v49 = vpop.eup %3522  ;;  %v5504_v17 = vmul.f32 %v2173_v31, %v5283_v51  ;;  %v5507_v22 = vmul.f32 %v2172_v29, %v5289_v1  ;;  %v5984_v51 = vld [vmem:[#allocation46_spill] sm:$0xff] }
 0x2b3   :  { %v1857_v46 = vmul.f32 %v3519_v60, %v1537_v63  ;;  %3528 = vrcp.f32 %v902_v35  ;;  %v1856_v50 = vmul.f32 %v3523_v49, %v1536_v13  ;;  %v1347_v38 = vadd.f32 -0.28449672, %v1283_v20 }
 0x2b4   :  { %3530 = vpow2.f32 %v1787_v12  ;;  %v1157_v42 = vmul.f32 %v5491_v15, %v1093_v41  ;;  %v2110_v33 = vsel %vm1982_vm3, %v1918_v4, %v2046_v56  ;;  %v1669_v19 = vmul.f32 %v1605_v61, %v5420_v28 }
 0x2b5   :  { %v775_v11 = vand.u32 2147483647, %v5501_v9  ;;  %v5516_v31 = vadd.f32 %v5984_v51, %v3750_v62  ;;  %v2047_v1 = vsub.f32 0.0, %v1919_v39  ;;  %v1538_v60 = vmul.f32 %v5437_v27, %v1474_v58 }
 0x2b6   :  { %v1411_v29 = vmul.f32 %v5466_v3, %v1347_v38  ;;  %v1221_v63 = vadd.f32 1.4214138, %v1157_v42  ;;  %v1921_v13 = vsub.f32 1.0, %v1857_v46  ;;  %vm1985_vm5 = vcmp.ge.f32.partialorder %v5292_v52, 0.0 }
 0x2b7   :  { %v5520_v12 = vpop.eup %3524  ;;  %vm1984_vm6 = vcmp.ge.f32.partialorder %v5313_v26, 0.0  ;;  %v1604_v55 = vsub.f32 0.0, %v5459_v53  ;;  %v839_v28 = vmul.f32 0.3275911, %v775_v11  ;;  %v5526_v4 = vmul.f32 0.70710677, %v5516_v31 }
 0x2b8   :  { %v1920_v62 = vsub.f32 1.0, %v1856_v50  ;;  %v1475_v43 = vadd.f32 0.2548296, %v1411_v29  ;;  %v1285_v27 = vmul.f32 %v5491_v15, %v1221_v63  ;;  %v1028_v56 = vmul.f32 1.0614054, %v5520_v12  ;;  %v3527_v61 = vpop.eup %3526  ;;  %v5989_v26 = vld [vmem:[#allocation21_spill] sm:$0xff] }
 0x2b9   :  { %v2174_v35 = vadd.f32 1.0, %v2110_v33  ;;  %v1791_v58 = vmul.f32 1.442695, %v1669_v19  ;;  %v903_v20 = vadd.f32 1.0, %v839_v28  ;;  %v777_v41 = vand.u32 2147483647, %v5526_v4 }
 0x2ba   :  { %v2111_v49 = vsel %vm1983_vm4, %v1919_v39, %v2047_v1  ;;  %v1858_v46 = vmul.f32 %v3527_v61, %v1538_v60  ;;  %v1349_v38 = vadd.f32 -0.28449672, %v1285_v27  ;;  %v1092_v42 = vadd.f32 -1.4531521, %v1028_v56 }
 0x2bb   :  { %v1539_v51 = vmul.f32 %v5466_v3, %v1475_v43  ;;  %v1668_v50 = vmul.f32 %v1604_v55, %v5459_v53  ;;  %3532 = vrcp.f32 %v903_v20  ;;  %v841_v29 = vmul.f32 0.3275911, %v777_v41  ;;  %v5985_v43 = vld [vmem:[#allocation32_spill] sm:$0xff] }
 0x2bc   :  { %v2049_v63 = vsub.f32 0.0, %v1921_v13  ;;  %v2048_v5 = vsub.f32 0.0, %v1920_v62  ;;  %v1413_v33 = vmul.f32 %v5491_v15, %v1349_v38  ;;  %v1606_v19 = vsub.f32 0.0, %v5480_v47 }
 0x2bd   :  { %v5537_v28 = vpop.eup %3528  ;;  %v5540_v48 = vmul.f32 %v2174_v35, %v5324_v36  ;;  %vm1986_vm7 = vcmp.ge.f32.partialorder %v5349_v10, 0.0  ;;  %3534 = vpow2.f32 %v1791_v58  ;;  %v1156_v3 = vmul.f32 %v5520_v12, %v1092_v42 }
 0x2be   :  { %v905_v39 = vadd.f32 1.0, %v841_v29  ;;  %v3531_v53 = vpop.eup %3530  ;;  %v2175_v1 = vadd.f32 1.0, %v2111_v49  ;;  %v1922_v60 = vsub.f32 1.0, %v1858_v46  ;;  %v1607_v55 = vsub.f32 0.0, %v775_v11 }
 0x2bf   :  { %v5546_v27 = vadd.f32 %v5985_v43, %v3752_v0  ;;  %v1859_v56 = vmul.f32 %v3531_v53, %v1539_v51  ;;  %v1789_v61 = vmul.f32 1.442695, %v1668_v50  ;;  %v1030_v20 = vmul.f32 1.0614054, %v5537_v28  ;;  %v5988_v50 = vld [vmem:[#allocation48_spill] sm:$0xff] }
 0x2c0   :  { %3536 = vrcp.f32 %v905_v39  ;;  %v2113_v36 = vsel %vm1985_vm5, %v1921_v13, %v2049_v63  ;;  %v2112_v35 = vsel %vm1984_vm6, %v1920_v62, %v2048_v5  ;;  %v1477_v58 = vadd.f32 0.2548296, %v1413_v33 }
 0x2c1   :  { %5986 = vst [vmem:[#allocation59_spill] sm:$0xff] %v5546_v27  ;;  %v1670_v49 = vmul.f32 %v1606_v19, %v5480_v47  ;;  %v1220_v46 = vadd.f32 1.4214138, %v1156_v3  ;;  %v1094_v38 = vadd.f32 -1.4531521, %v1030_v20  ;;  %v5559_v0 = vadd.f32 %v4984_v40, %v3760_v7 }
 0x2c2   :  { %v5555_v42 = vmul.f32 0.70710677, %v5546_v27  ;;  %v2050_v51 = vsub.f32 0.0, %v1922_v60  ;;  %vm1987_vm8 = vcmp.ge.f32.partialorder %v5377_v16, 0.0  ;;  %v1671_v52 = vmul.f32 %v1607_v55, %v775_v11 }
 0x2c3   :  { %5987 = vst [vmem:[#allocation42_spill] sm:$0xff] %v5559_v0  ;;  %v1609_v13 = vsub.f32 0.0, %v777_v41  ;;  %v2272_v5 = vpack.c.bf16 %v5989_v26, %v5988_v50  ;;  %v5565_v62 = vmul.f32 %v2175_v1, %v5358_v18  ;;  %v1923_v47 = vsub.f32 1.0, %v1859_v56 }
 0x2c4   :  { %v1158_v29 = vmul.f32 %v5537_v28, %v1094_v38  ;;  %v5569_v63 = vand.u32 2147483647, %v5555_v42  ;;  %v1541_v7 = vmul.f32 %v5491_v15, %v1477_v58  ;;  %3538 = vpow2.f32 %v1789_v61 }
 0x2c5   :  { %v1793_v40 = vmul.f32 1.442695, %v1670_v49  ;;  %v5573_v33 = vmul.f32 0.70710677, %v5559_v0  ;;  %2595 = vmatprep.mubr.bf16.mxu0 %v2272_v5  ;;  %v5575_v11 = vpop.eup %3532  ;;  %v2177_v19 = vadd.f32 1.0, %v2113_v36  ;;  %v2176_v3 = vadd.f32 1.0, %v2112_v35 }
 0x2c6   :  { %v1284_v18 = vmul.f32 %v5520_v12, %v1220_v46  ;;  %v840_v39 = vmul.f32 0.3275911, %v5569_v63  ;;  %v2114_v53 = vsel %vm1986_vm7, %v1922_v60, %v2050_v51  ;;  %v1031_v1 = vmul.f32 1.0614054, %v5575_v11  ;;  %v5991_v49 = vld [vmem:[#allocation49_spill] sm:$0xff]  ;;  %v5992_v46 = vld [vmem:[#allocation38_spill] sm:$0xff] }
 0x2c7   :  { %5990 = vst [vmem:[#allocation39_spill] sm:$0xff] %v5573_v33  ;;  %v1795_v15 = vmul.f32 1.442695, %v1671_v52  ;;  %v1673_v55 = vmul.f32 %v1609_v13, %v777_v41  ;;  %v3535_v43 = vpop.eup %3534  ;;  %v2051_v56 = vsub.f32 0.0, %v1923_v47  ;;  %v1222_v61 = vadd.f32 1.4214138, %v1158_v29 }
 0x2c8   :  { %v904_v20 = vadd.f32 1.0, %v840_v39  ;;  %v5583_v58 = vand.u32 2147483647, %v5573_v33  ;;  %v5585_v36 = vmul.f32 %v3535_v43, %v1541_v7  ;;  %3540 = vpow2.f32 %v1793_v40  ;;  %v5993_v39 = vld [vmem:[#allocation44_spill] sm:$0xff]  ;;  %v5995_v43 = vld [vmem:[#allocation19_spill] sm:$0xff]  ;;  %v6015_v0 = vld [vmem:[#allocation18_spill] sm:$0xff] }
 0x2c9   :  { %v1095_v35 = vadd.f32 -1.4531521, %v1031_v1  ;;  %v2274_v38 = vpack.c.bf16 %v5992_v46, %v5991_v49  ;;  %v5592_v60 = vmul.f32 %v2177_v19, %v5382_v37  ;;  %v5595_v41 = vmul.f32 %v2176_v3, %v5427_v59  ;;  %v5998_v49 = vld [vmem:[#allocation57_spill] sm:$0xff]  ;;  %v6017_v33 = vld [vmem:[#allocation34_spill] sm:$0xff] }
 0x2ca   :  { %v5589_v10 = vpop.eup %3536  ;;  %v1348_v51 = vadd.f32 -0.28449672, %v1284_v18  ;;  %3542 = vrcp.f32 %v904_v20  ;;  %v2178_v52 = vadd.f32 1.0, %v2114_v53  ;;  %v842_v26 = vmul.f32 0.3275911, %v5583_v58  ;;  %v5994_v53 = vld [vmem:[#allocation35_spill] sm:$0xff] }
 0x2cb   :  { %v1159_v13 = vmul.f32 %v5575_v11, %v1095_v35  ;;  %v1033_v50 = vmul.f32 1.0614054, %v5589_v10  ;;  %2692 = vmatprep.mubr.bf16.mxu1 %v2274_v38  ;;  %v2115_v5 = vsel %vm1987_vm8, %v1923_v47, %v2051_v56  ;;  %v1286_v29 = vmul.f32 %v5537_v28, %v1222_v61  ;;  %v5996_v20 = vld [vmem:[#allocation50_spill] sm:$0xff]  ;;  %v5997_v35 = vld [vmem:[#allocation25_spill] sm:$0xff]  ;;  %v5999_v38 = vld [vmem:[#allocation16_spill] sm:$0xff] }
 0x2cc   :  { %3544 = vpow2.f32 %v1795_v15  ;;  %v1799_v37 = vmul.f32 1.442695, %v1673_v55  ;;  %v5819_v59 = vsub.f32 1.0, %v5585_v36  ;;  %v906_v19 = vadd.f32 1.0, %v842_v26 }
 0x2cd   :  { %v1223_v7 = vadd.f32 1.4214138, %v1159_v13  ;;  %v1097_v40 = vadd.f32 -1.4531521, %v1033_v50  ;;  %v1412_v3 = vmul.f32 %v5520_v12, %v1348_v51  ;;  %v1608_v18 = vsub.f32 0.0, %v5569_v63  ;;  %v6000_v51 = vld [vmem:[#allocation20_spill] sm:$0xff] }
 0x2ce   :  { %v2271_v1 = vpack.c.bf16 %v5994_v53, %v5993_v39  ;;  %v2273_v16 = vpack.c.bf16 %v5996_v20, %v5995_v43  ;;  %v5610_v47 = vpop.eup %3538  ;;  %v5613_v15 = vmul.f32 %v2178_v52, %v5463_v57  ;;  %3546 = vrcp.f32 %v906_v19  ;;  %v6001_v52 = vld [vmem:[#allocation53_spill] sm:$0xff]  ;;  %v6002_v39 = vld [vmem:[#allocation31_spill] sm:$0xff] }
 0x2cf   :  { %v1287_v55 = vmul.f32 %v5575_v11, %v1223_v7  ;;  %v1161_v56 = vmul.f32 %v5589_v10, %v1097_v40  ;;  %v1350_v61 = vadd.f32 -0.28449672, %v1286_v29  ;;  %3548 = vpow2.f32 %v1799_v37  ;;  %v6003_v19 = vld [vmem:[#allocation23_spill] sm:$0xff] }
 0x2d0   :  { %2596 = vmatmul.mubr.bf16.gmra.mrb[36].mxu0 %v2271_v1  ;;  %2693 = vmatmul.mubr.bf16.gmra.mrb[36].mxu1 %v2273_v16  ;;  %v2276_v46 = vpack.c.bf16 %v5998_v49, %v5997_v35  ;;  %v2278_v13 = vpack.c.bf16 %v6000_v51, %v5999_v38  ;;  %v5621_v50 = vadd.f32 1.0, %v2115_v5  ;;  %v2275_v7 = vpack.c.bf16 %v6002_v39, %v6001_v52  ;;  %v6004_v53 = vld [vmem:[#allocation55_spill] sm:$0xff]  ;;  %v6005_v16 = vld [vmem:[#allocation61_spill] sm:$0xff]  ;;  %v6007_v35 = vld [vmem:[#allocation56_spill] sm:$0xff] }
 0x2d1   :  { %v1351_v26 = vadd.f32 -0.28449672, %v1287_v55  ;;  %v1225_v57 = vadd.f32 1.4214138, %v1161_v56  ;;  %v5627_v40 = vsub.f32 0.0, %v5819_v59  ;;  %v1672_v37 = vmul.f32 %v1608_v18, %v5569_v63  ;;  %v6006_v56 = vld [vmem:[#allocation15_spill] sm:$0xff] }
 0x2d2   :  { %v1476_v29 = vadd.f32 0.2548296, %v1412_v3  ;;  %2603 = vmatprep.mubr.bf16.mxu0 %v2276_v46  ;;  %2700 = vmatprep.mubr.bf16.mxu1 %v2278_v13  ;;  %v2277_v1 = vpack.c.bf16 %v6004_v53, %v6003_v19  ;;  %v5632_v43 = vpop.eup %3540  ;;  %v2280_v55 = vpack.c.bf16 %v4962_v23, %v6005_v16  ;;  %v2282_v49 = vpack.c.bf16 %v6007_v35, %v6006_v56  ;;  %v6008_v46 = vld [vmem:[#allocation36_spill] sm:$0xff]  ;;  %v6009_v38 = vld [vmem:[#allocation63_spill] sm:$0xff]  ;;  %v6010_v13 = vld [vmem:[#allocation37_spill] sm:$0xff] }
 0x2d3   :  { %v1415_v5 = vmul.f32 %v5575_v11, %v1351_v26  ;;  %v1289_v20 = vmul.f32 %v5589_v10, %v1225_v57  ;;  %v1414_v63 = vmul.f32 %v5537_v28, %v1350_v61  ;;  %v1610_v18 = vsub.f32 0.0, %v5583_v58  ;;  %v6011_v52 = vld [vmem:[#allocation47_spill] sm:$0xff]  ;;  %v6012_v23 = vld [vmem:[#allocation64_spill] sm:$0xff] }
 0x2d4   :  { %v5640_v3 = vpop.eup %3542  ;;  %v2279_v51 = vpack.c.bf16 %v6009_v38, %v6008_v46  ;;  %v2281_v26 = vpack.c.bf16 %v6011_v52, %v6010_v13  ;;  %v6013_v53 = vld [vmem:[#allocation24_spill] sm:$0xff]  ;;  %vm1989_vm9 = vcmp.ge.f32.partialorder %v5412_v25, 0.0  ;;  %v1540_v61 = vmul.f32 %v5520_v12, %v1476_v29  ;;  %v6014_v35 = vld [vmem:[#allocation51_spill] sm:$0xff]  ;;  %v6018_v13 = vld [vmem:[#allocation22_spill] sm:$0xff] }
 0x2d5   :  { %v1479_v39 = vadd.f32 0.2548296, %v1415_v5  ;;  %v1353_v57 = vadd.f32 -0.28449672, %v1289_v20  ;;  %v1032_v19 = vmul.f32 1.0614054, %v5640_v3  ;;  %v2284_v16 = vpack.c.bf16 %v6013_v53, %v6012_v23 }
 0x2d6   :  { %v3545_v56 = vpop.eup %3544  ;;  %v2286_v59 = vpack.c.bf16 %v5207_v21, %v6014_v35  ;;  %v6016_v46 = vld [vmem:[#allocation52_spill] sm:$0xff]  ;;  %v1478_v53 = vadd.f32 0.2548296, %v1414_v63  ;;  %v1797_v30 = vmul.f32 1.442695, %v1672_v37  ;;  %v6020_v29 = vld [vmem:[#allocation54_spill] sm:$0xff] }
 0x2d7   :  { %v1543_v20 = vmul.f32 %v5575_v11, %v1479_v39  ;;  %v1417_v52 = vmul.f32 %v5589_v10, %v1353_v57  ;;  %v1096_v27 = vadd.f32 -1.4531521, %v1032_v19  ;;  %v6019_v12 = vld [vmem:[#allocation28_spill] sm:$0xff]  ;;  %v1674_v57 = vmul.f32 %v1610_v18, %v5583_v58  ;;  %v6021_v37 = vld [vmem:[#allocation14_spill] sm:$0xff] }
 0x2d8   :  { %2604 = vmatmul.mubr.bf16.gmra.mrb[40].mxu0 %v2275_v7  ;;  %2701 = vmatmul.mubr.bf16.gmra.mrb[40].mxu1 %v2277_v1  ;;  %v5667_v38 = vpop.eup %3546  ;;  %v6022_v1 = vld [vmem:[#allocation17_spill] sm:$0xff]  ;;  %3550 = vpow2.f32 %v1797_v30  ;;  %v2293_v18 = vpack.c.bf16 %v5592_v60, %v5504_v17  ;;  %v1542_v35 = vmul.f32 %v5537_v28, %v1478_v53  ;;  %vm1991_vm10 = vcmp.ge.f32.partialorder %v5501_v9, 0.0 }
 0x2d9   :  { %v1863_v5 = vmul.f32 %v3545_v56, %v1543_v20  ;;  %v1481_v11 = vadd.f32 0.2548296, %v1417_v52  ;;  %v1160_v39 = vmul.f32 %v5640_v3, %v1096_v27  ;;  %2611 = vmatprep.mubr.bf16.mxu0 %v2280_v55  ;;  %2708 = vmatprep.mubr.bf16.mxu1 %v2282_v49  ;;  %v3549_v63 = vpop.eup %3548  ;;  %v1034_v7 = vmul.f32 1.0614054, %v5667_v38  ;;  %v5749_v17 = vld [vmem:[%s5786_s4] ss:$0 sm:$0xff] }
 0x2da   :  { %v1860_v56 = vmul.f32 %v5610_v47, %v1540_v61  ;;  %v2291_v49 = vpack.c.bf16 %v5565_v62, %v5449_v44  ;;  %v1801_v23 = vmul.f32 1.442695, %v1674_v57  ;;  %v647_v47 = vmul.f32 0.5, %v5489_v45  ;;  %s3656_s4 = smov [#allocation9]  }
 0x2db   :  { %v1927_v20 = vsub.f32 1.0, %v1863_v5  ;;  %v1545_v27 = vmul.f32 %v5589_v10, %v1481_v11  ;;  %v1224_v58 = vadd.f32 1.4214138, %v1160_v39  ;;  %v1098_v55 = vadd.f32 -1.4531521, %v1034_v7  ;;  %s2908_s8 = sshll.u32 %s3656_s4, 4  ;;  %s2909_s8 = int_to_ptr.vmem [resolvable:$true] %s2908_s8 }
 0x2dc   :  { %v6023_v10 = vsub.f32 1.0, %v5585_v36  ;;  %v5696_v57 = vmul.f32 %v5621_v50, %v5483_v2  ;;  %vm1993_vm11 = vcmp.ge.f32.partialorder %v5526_v4, 0.0  ;;  %v1924_v9 = vsub.f32 1.0, %v1860_v56  ;;  %s3620_s9 = scalar_lea.vmem %s2909_s8, 1024  ;;  %p3625_p11 = scmp.lt.s32.totalorder %s2909_s8, %s2909_s8 }
 0x2dd   :  { %v2055_v52 = vsub.f32 0.0, %v1927_v20  ;;  %v1865_v19 = vmul.f32 %v3549_v63, %v1545_v27  ;;  %v1288_v21 = vmul.f32 %v5640_v3, %v1224_v58  ;;  %v1162_v30 = vmul.f32 %v5667_v38, %v1098_v55  ;;  %p3621_p10 = scmp.ne.s32.totalorder %s2909_s8, %s3620_s9  ;;  %p3626_p12 = scmp.lt.s32.totalorder %s3620_s9, %s3620_s9 }
 0x2de   :  { %v2117_v61 = vsel %vm1989_vm9, %v6023_v10, %v5627_v40  ;;  %3552 = vpow2.f32 %v1801_v23  ;;  %v1862_v40 = vmul.f32 %v5632_v43, %v1542_v35  ;;  %v645_v50 = vmul.f32 0.5, %v5395_v54 }
 0x2df   :  { %v2119_v5 = vsel %vm1991_vm10, %v1927_v20, %v2055_v52  ;;  %v1929_v11 = vsub.f32 1.0, %v1865_v19  ;;  %v1352_v39 = vadd.f32 -0.28449672, %v1288_v21  ;;  %v1226_v45 = vadd.f32 1.4214138, %v1162_v30  ;;  %p3627_p13 = por %p3626_p12, %p3625_p11 }
 0x2e0   :  { %v2183_v28 = vadd.f32 1.0, %v2119_v5  ;;  %2612 = vmatmul.mubr.bf16.gmra.mrb[44].mxu0 %v2279_v51  ;;  %2709 = vmatmul.mubr.bf16.gmra.mrb[44].mxu1 %v2281_v26  ;;  %v2181_v25 = vadd.f32 1.0, %v2117_v61  ;;  %v649_v51 = vmul.f32 0.5, %v5516_v31  ;;  %v2052_v56 = vsub.f32 0.0, %v1924_v9  ;;  %v6028_v5 = vld [vmem:[#allocation58_spill] sm:$0xff] }
 0x2e1   :  { %v2057_v53 = vsub.f32 0.0, %v1929_v11  ;;  %v1416_v36 = vmul.f32 %v5640_v3, %v1352_v39  ;;  %2619 = vmatprep.mubr.bf16.mxu0 %v2284_v16  ;;  %2716 = vmatprep.mubr.bf16.mxu1 %v2286_v59  ;;  %v1290_v2 = vmul.f32 %v5667_v38, %v1226_v45  ;;  %v1926_v20 = vsub.f32 1.0, %v1862_v40  ;;  %p3628_p0 = pnand %p3627_p13, %p3621_p10 }
 0x2e2   :  { %v2247_v21 = vmul.f32 %v2183_v28, %v647_v47  ;;  %v3551_v59 = vpop.eup %3550  ;;  %v2245_v23 = vmul.f32 %v2181_v25, %v645_v50  ;;  %vm1988_vm12 = vcmp.ge.f32.partialorder %v5446_v32, 0.0  ;;  %v6024_v31 = vpack.c.bf16 %v6016_v46, %v6015_v0 }
 0x2e3   :  { %v2121_v63 = vsel %vm1993_vm11, %v1929_v11, %v2057_v53  ;;  %v1480_v4 = vadd.f32 0.2548296, %v1416_v36  ;;  %v1354_v7 = vadd.f32 -0.28449672, %v1290_v2  ;;  %v6025_v58 = vpack.c.bf16 %v6018_v13, %v6017_v33 }
 0x2e4   :  { %v2185_v26 = vadd.f32 1.0, %v2121_v63  ;;  %v2295_v19 = vpack.c.bf16 %v2247_v21, %v5696_v57  ;;  %v6026_v47 = vpack.c.bf16 %v5369_v6, %v5276_v8  ;;  %v6027_v30 = vpack.c.bf16 %v5409_v24, %v6019_v12  ;;  %v6029_v6 = vld [vmem:[#allocation59_spill] sm:$0xff]  ;;  %v6035_v21 = vld [vmem:[#allocation33_spill] sm:$0xff] }
 0x2e5   :  { %v1544_v16 = vmul.f32 %v5640_v3, %v1480_v4  ;;  %v1418_v35 = vmul.f32 %v5667_v38, %v1354_v7  ;;  %v2116_v3 = vsel %vm1988_vm12, %v1924_v9, %v2052_v56  ;;  %v2054_v32 = vsub.f32 0.0, %v1926_v20  ;;  %v6032_v9 = vld [vmem:[#allocation39_spill] sm:$0xff] }
 0x2e6   :  { %v2249_v43 = vmul.f32 %v2185_v26, %v649_v51  ;;  %v2180_v61 = vadd.f32 1.0, %v2116_v3  ;;  %vm1992_vm13 = vcmp.ge.f32.partialorder %v5555_v42, 0.0  ;;  %v644_v13 = vmul.f32 0.5, %v5435_v14 }
 0x2e7   :  { %v1864_v27 = vmul.f32 %v3551_v59, %v1544_v16  ;;  %v1482_v54 = vadd.f32 0.2548296, %v1418_v35  ;;  %vm1990_vm14 = vcmp.ge.f32.partialorder %v6028_v5, 0.0  ;;  %v648_v39 = vmul.f32 0.5, %v6029_v6 }
 0x2e8   :  { %2620 = vmatmul.mubr.bf16.gmra.mrb[48].mxu0 %v6024_v31  ;;  %2717 = vmatmul.mubr.bf16.gmra.mrb[48].mxu1 %v6025_v58  ;;  %v2297_v55 = vpack.c.bf16 %v2249_v43, %v2245_v23  ;;  %v3553_v0 = vpop.eup %3552  ;;  %v2118_v8 = vsel %vm1990_vm14, %v1926_v20, %v2054_v32  ;;  %v2244_v12 = vmul.f32 %v2180_v61, %v644_v13  ;;  %vm1994_vm15 = vcmp.ge.f32.partialorder %v6032_v9, 0.0 }
 0x2e9   :  { %v1928_v52 = vsub.f32 1.0, %v1864_v27  ;;  %2627 = vmatprep.mubr.bf16.mxu0 %v6026_v47  ;;  %2724 = vmatprep.mubr.bf16.mxu1 %v6027_v30  ;;  %v1546_v10 = vmul.f32 %v5667_v38, %v1482_v54  ;;  %v6030_v38 = vpack.c.bf16 %v5345_v34, %v6020_v29  ;;  %v6031_v42 = vpack.c.bf16 %v6022_v1, %v6021_v37  ;;  %v6036_v29 = vld [vmem:[#allocation42_spill] sm:$0xff] }
 0x2ea   :  { %v2182_v14 = vadd.f32 1.0, %v2118_v8  ;;  %v6033_v53 = vpack.c.bf16 %v5595_v41, %v5507_v22  ;;  %v6034_v36 = vpack.c.bf16 %v5613_v15, %v5540_v48  ;;  %v646_v34 = vmul.f32 0.5, %v6035_v21 }
 0x2eb   :  { %v2056_v46 = vsub.f32 0.0, %v1928_v52  ;;  %v1866_v33 = vmul.f32 %v3553_v0, %v1546_v10  ;;  %v650_v2 = vmul.f32 0.5, %v6036_v29 }
 0x2ec   :  { %v2246_v37 = vmul.f32 %v2182_v14, %v646_v34 }
 0x2ed   :  { %v2120_v11 = vsel %vm1992_vm13, %v1928_v52, %v2056_v46  ;;  %v1930_v24 = vsub.f32 1.0, %v1866_v33 }
 0x2ee   :  { %v2184_v57 = vadd.f32 1.0, %v2120_v11 }
 0x2ef   :  { %v2058_v45 = vsub.f32 0.0, %v1930_v24 }
 0x2f0   :  { %v2248_v28 = vmul.f32 %v2184_v57, %v648_v39  ;;  %2628 = vmatmul.mubr.bf16.gmra.mrb[52].mxu0 %v6030_v38  ;;  %2725 = vmatmul.mubr.bf16.gmra.mrb[52].mxu1 %v6031_v42 }
 0x2f1   :  { %2635 = vmatprep.mubr.bf16.mxu0 %v6033_v53  ;;  %2732 = vmatprep.mubr.bf16.mxu1 %v6034_v36  ;;  %v2122_v25 = vsel %vm1994_vm15, %v1930_v24, %v2058_v45 }
 0x2f2   :  { %v2296_v40 = vpack.c.bf16 %v2248_v28, %v2244_v12  ;;  %v2186_v50 = vadd.f32 1.0, %v2122_v25 }
 0x2f4   :  { %v2250_v1 = vmul.f32 %v2186_v50, %v650_v2 }
 0x2f6   :  { %v2298_v63 = vpack.c.bf16 %v2250_v1, %v2246_v37 }
 0x2f8   :  { %2636 = vmatmul.mubr.bf16.gmra.mrb[56].mxu0 %v2291_v49  ;;  %2733 = vmatmul.mubr.bf16.gmra.mrb[56].mxu1 %v2293_v18 }
 0x2f9   :  { %2643 = vmatprep.mubr.bf16.mxu0 %v2296_v40  ;;  %2740 = vmatprep.mubr.bf16.mxu1 %v2298_v63 }
 0x300   :  { %2644 = vmatmul.mubr.bf16.gmra.mrb[60].mxu0 %v2295_v19  ;;  %2741 = vmatmul.mubr.bf16.gmra.mrb[60].mxu1 %v2297_v55 }
 0x36e   :  { %v3089_v22 = vpop.f32.mrb[32].mxu0 }
 0x36f   :  { %v3090_v48 = vpop.f32.mrb[33].mxu0 }
 0x370   :  { %v3091_v41 = vadd.f32 %v3090_v48, %v3089_v22  ;;  %v3092_v15 = vpop.f32.mrb[34].mxu0 }
 0x371   :  { %v3093_v4 = vpop.f32.mrb[35].mxu0 }
 0x372   :  { %v3094_v51 = vadd.f32 %v3093_v4, %v3092_v15 }
 0x375   :  { %v3153_v26 = vpop.f32.mrb[32].mxu1 }
 0x376   :  { %v3154_v7 = vpop.f32.mrb[33].mxu1 }
 0x377   :  { %v3155_v56 = vadd.f32 %v3154_v7, %v3153_v26  ;;  %v3156_v16 = vpop.f32.mrb[34].mxu1 }
 0x378   :  { %v3157_v44 = vpop.f32.mrb[35].mxu1 }
 0x379   :  { %v2687_v62 = vadd.f32 %v3155_v56, %v3091_v41  ;;  %v3158_v49 = vadd.f32 %v3157_v44, %v3156_v16 }
 0x37b   :  { %v2690_v60 = vadd.f32 %v3158_v49, %v3094_v51  ;;  %v2807_v18 = vadd.f32 %v5749_v17, %v2687_v62 }
 0x37d   :  { %v2808_v19 = vadd.f32 %v5749_v17, %v2690_v60 }
 0x37f   :  { %v3029_v59 = vpack.c.bf16 %v2808_v19, %v2807_v18 }
 0x381   :  { %3030 = vst [vmem:[#allocation9] sm:$0xff] %v3029_v59  }
 0x3a3   :  { %v3095_v23 = vpop.f32.mrb[36].mxu0  ;;  %v3159_v20 = vpop.f32.mrb[36].mxu1 }
 0x3a4   :  { %v3096_v43 = vpop.f32.mrb[37].mxu0  ;;  %v3160_v35 = vpop.f32.mrb[37].mxu1 }
 0x3a5   :  { %v3097_v27 = vadd.f32 %v3096_v43, %v3095_v23  ;;  %v3161_v54 = vadd.f32 %v3160_v35, %v3159_v20  ;;  %v3098_v31 = vpop.f32.mrb[38].mxu0  ;;  %v3162_v58 = vpop.f32.mrb[38].mxu1 }
 0x3a6   :  { %v3099_v55 = vpop.f32.mrb[39].mxu0  ;;  %v3163_v3 = vpop.f32.mrb[39].mxu1 }
 0x3a7   :  { %v2695_v52 = vadd.f32 %v3161_v54, %v3097_v27  ;;  %v3100_v47 = vadd.f32 %v3099_v55, %v3098_v31  ;;  %v3164_v30 = vadd.f32 %v3163_v3, %v3162_v58 }
 0x3a9   :  { %v2698_v32 = vadd.f32 %v3164_v30, %v3100_v47  ;;  %v2809_v10 = vadd.f32 %v5749_v17, %v2695_v52 }
 0x3ab   :  { %v2810_v0 = vadd.f32 %v5749_v17, %v2698_v32  ;;  %v3101_v46 = vpop.f32.mrb[40].mxu0  ;;  %v3165_v61 = vpop.f32.mrb[40].mxu1 }
 0x3ac   :  { %v3102_v33 = vpop.f32.mrb[41].mxu0  ;;  %v3166_v13 = vpop.f32.mrb[41].mxu1 }
 0x3ad   :  { %v3034_v5 = vpack.c.bf16 %v2810_v0, %v2809_v10  ;;  %v3103_v11 = vadd.f32 %v3102_v33, %v3101_v46  ;;  %v3167_v8 = vadd.f32 %v3166_v13, %v3165_v61  ;;  %v3104_v6 = vpop.f32.mrb[42].mxu0  ;;  %v3168_v39 = vpop.f32.mrb[42].mxu1 }
 0x3ae   :  { %v3105_v57 = vpop.f32.mrb[43].mxu0  ;;  %v3169_v24 = vpop.f32.mrb[43].mxu1 }
 0x3af   :  { %3066 = vst [vmem:[#allocation9 + $0x8] sm:$0xff] %v3034_v5   ;;  %v2703_v12 = vadd.f32 %v3167_v8, %v3103_v11  ;;  %v3106_v28 = vadd.f32 %v3105_v57, %v3104_v6  ;;  %v3170_v45 = vadd.f32 %v3169_v24, %v3168_v39 }
 0x3b1   :  { %v2706_v38 = vadd.f32 %v3170_v45, %v3106_v28  ;;  %v2811_v42 = vadd.f32 %v5749_v17, %v2703_v12 }
 0x3b3   :  { %v2812_v14 = vadd.f32 %v5749_v17, %v2706_v38  ;;  %v3107_v9 = vpop.f32.mrb[44].mxu0  ;;  %v3171_v53 = vpop.f32.mrb[44].mxu1 }
 0x3b4   :  { %v3108_v36 = vpop.f32.mrb[45].mxu0  ;;  %v3172_v25 = vpop.f32.mrb[45].mxu1 }
 0x3b5   :  { %v3039_v40 = vpack.c.bf16 %v2812_v14, %v2811_v42  ;;  %v3109_v21 = vadd.f32 %v3108_v36, %v3107_v9  ;;  %v3173_v34 = vadd.f32 %v3172_v25, %v3171_v53  ;;  %v3110_v29 = vpop.f32.mrb[46].mxu0  ;;  %v3174_v2 = vpop.f32.mrb[46].mxu1 }
 0x3b6   :  { %v3111_v50 = vpop.f32.mrb[47].mxu0  ;;  %v3175_v37 = vpop.f32.mrb[47].mxu1 }
 0x3b7   :  { %3067 = vst [vmem:[#allocation9 + $0x10] sm:$0xff] %v3039_v40   ;;  %v2711_v1 = vadd.f32 %v3173_v34, %v3109_v21  ;;  %v3112_v63 = vadd.f32 %v3111_v50, %v3110_v29  ;;  %v3176_v22 = vadd.f32 %v3175_v37, %v3174_v2 }
 0x3b9   :  { %v2714_v48 = vadd.f32 %v3176_v22, %v3112_v63  ;;  %v2813_v41 = vadd.f32 %v5749_v17, %v2711_v1 }
 0x3bb   :  { %v2814_v15 = vadd.f32 %v5749_v17, %v2714_v48  ;;  %v3113_v4 = vpop.f32.mrb[48].mxu0  ;;  %v3177_v51 = vpop.f32.mrb[48].mxu1 }
 0x3bc   :  { %v3114_v26 = vpop.f32.mrb[49].mxu0  ;;  %v3178_v7 = vpop.f32.mrb[49].mxu1 }
 0x3bd   :  { %v3044_v56 = vpack.c.bf16 %v2814_v15, %v2813_v41  ;;  %v3115_v16 = vadd.f32 %v3114_v26, %v3113_v4  ;;  %v3179_v44 = vadd.f32 %v3178_v7, %v3177_v51  ;;  %v3116_v62 = vpop.f32.mrb[50].mxu0  ;;  %v3180_v49 = vpop.f32.mrb[50].mxu1 }
 0x3be   :  { %v3117_v60 = vpop.f32.mrb[51].mxu0  ;;  %v3181_v18 = vpop.f32.mrb[51].mxu1 }
 0x3bf   :  { %3068 = vst [vmem:[#allocation9 + $0x18] sm:$0xff] %v3044_v56   ;;  %v2719_v19 = vadd.f32 %v3179_v44, %v3115_v16  ;;  %v3118_v59 = vadd.f32 %v3117_v60, %v3116_v62  ;;  %v3182_v23 = vadd.f32 %v3181_v18, %v3180_v49 }
 0x3c1   :  { %v2722_v20 = vadd.f32 %v3182_v23, %v3118_v59  ;;  %v2815_v43 = vadd.f32 %v5749_v17, %v2719_v19 }
 0x3c3   :  { %v2816_v35 = vadd.f32 %v5749_v17, %v2722_v20  ;;  %v3119_v27 = vpop.f32.mrb[52].mxu0  ;;  %v3183_v54 = vpop.f32.mrb[52].mxu1 }
 0x3c4   :  { %v3120_v31 = vpop.f32.mrb[53].mxu0  ;;  %v3184_v58 = vpop.f32.mrb[53].mxu1 }
 0x3c5   :  { %v3049_v55 = vpack.c.bf16 %v2816_v35, %v2815_v43  ;;  %v3121_v3 = vadd.f32 %v3120_v31, %v3119_v27  ;;  %v3185_v52 = vadd.f32 %v3184_v58, %v3183_v54  ;;  %v3122_v47 = vpop.f32.mrb[54].mxu0  ;;  %v3186_v30 = vpop.f32.mrb[54].mxu1 }
 0x3c6   :  { %v3123_v32 = vpop.f32.mrb[55].mxu0  ;;  %v3187_v10 = vpop.f32.mrb[55].mxu1 }
 0x3c7   :  { %3069 = vst [vmem:[#allocation9 + $0x20] sm:$0xff] %v3049_v55   ;;  %v2727_v0 = vadd.f32 %v3185_v52, %v3121_v3  ;;  %v3124_v46 = vadd.f32 %v3123_v32, %v3122_v47  ;;  %v3188_v61 = vadd.f32 %v3187_v10, %v3186_v30 }
 0x3c9   :  { %v2730_v33 = vadd.f32 %v3188_v61, %v3124_v46  ;;  %v2817_v13 = vadd.f32 %v5749_v17, %v2727_v0 }
 0x3cb   :  { %v2818_v5 = vadd.f32 %v5749_v17, %v2730_v33  ;;  %v3125_v11 = vpop.f32.mrb[56].mxu0  ;;  %v3189_v8 = vpop.f32.mrb[56].mxu1 }
 0x3cc   :  { %v3126_v6 = vpop.f32.mrb[57].mxu0  ;;  %v3190_v39 = vpop.f32.mrb[57].mxu1 }
 0x3cd   :  { %v3054_v57 = vpack.c.bf16 %v2818_v5, %v2817_v13  ;;  %v3127_v24 = vadd.f32 %v3126_v6, %v3125_v11  ;;  %v3191_v12 = vadd.f32 %v3190_v39, %v3189_v8  ;;  %v3128_v28 = vpop.f32.mrb[58].mxu0  ;;  %v3192_v45 = vpop.f32.mrb[58].mxu1 }
 0x3ce   :  { %v3129_v38 = vpop.f32.mrb[59].mxu0  ;;  %v3193_v42 = vpop.f32.mrb[59].mxu1 }
 0x3cf   :  { %3070 = vst [vmem:[#allocation9 + $0x28] sm:$0xff] %v3054_v57   ;;  %v2735_v14 = vadd.f32 %v3191_v12, %v3127_v24  ;;  %v3130_v9 = vadd.f32 %v3129_v38, %v3128_v28  ;;  %v3194_v53 = vadd.f32 %v3193_v42, %v3192_v45 }
 0x3d1   :  { %v2738_v36 = vadd.f32 %v3194_v53, %v3130_v9  ;;  %v2819_v25 = vadd.f32 %v5749_v17, %v2735_v14 }
 0x3d3   :  { %v2820_v40 = vadd.f32 %v5749_v17, %v2738_v36  ;;  %v3131_v21 = vpop.f32.mrb[60].mxu0  ;;  %v3195_v34 = vpop.f32.mrb[60].mxu1 }
 0x3d4   :  { %v3132_v29 = vpop.f32.mrb[61].mxu0  ;;  %v3196_v2 = vpop.f32.mrb[61].mxu1 }
 0x3d5   :  { %v3059_v50 = vpack.c.bf16 %v2820_v40, %v2819_v25  ;;  %v3133_v37 = vadd.f32 %v3132_v29, %v3131_v21  ;;  %v3197_v1 = vadd.f32 %v3196_v2, %v3195_v34  ;;  %v3134_v63 = vpop.f32.mrb[62].mxu0  ;;  %v3198_v22 = vpop.f32.mrb[62].mxu1 }
 0x3d6   :  { %v3135_v48 = vpop.f32.mrb[63].mxu0  ;;  %v3199_v41 = vpop.f32.mrb[63].mxu1 }
 0x3d7   :  { %3071 = vst [vmem:[#allocation9 + $0x30] sm:$0xff] %v3059_v50   ;;  %v2743_v15 = vadd.f32 %v3197_v1, %v3133_v37  ;;  %v3136_v4 = vadd.f32 %v3135_v48, %v3134_v63  ;;  %v3200_v51 = vadd.f32 %v3199_v41, %v3198_v22 }
 0x3d9   :  { %v2746_v26 = vadd.f32 %v3200_v51, %v3136_v4  ;;  %v2821_v7 = vadd.f32 %v5749_v17, %v2743_v15 }
 0x3db   :  { %v2822_v56 = vadd.f32 %v5749_v17, %v2746_v26 }
 0x3dd   :  { %v3064_v16 = vpack.c.bf16 %v2822_v56, %v2821_v7 }
 0x3df   :  { %3072 = vst [vmem:[#allocation9 + $0x38] sm:$0xff] %v3064_v16  }
 0x3e0   :  { %3631 = shalt.err (!%p3628_p0)
}
 0x3e1   :  { %s3632_s12 = scalar_lea.hbm %s5787_s5, 1024 }
 0x3e2   :  { %p3633_p1 = scmp.ne.s32.totalorder %s5787_s5, %s3632_s12  ;;  %p3636_p2 = scmp.lt.u32.totalorder %s3632_s12, %s5787_s5 }
 0x3e4   :  { %p3638_p3 = pnand %p3636_p2, %p3633_p1 }
 0x3e6   :  { %3641 = shalt.err (!%p3638_p3)
}
 0x3e7   :  { %2914 = dma.vmem_to_hbm [thread:$0]  %s2909_s8, 1024, %s5787_s5, [#allocation5], %s3652_s1, %s3652_s1, %s3653_s17  }
 0x3e8   :  { %3646 = dma.done.wait [#allocation5], 1024  }
 0x3e9   :  { %3647 = vsyncadd [#allocation5], 4294966272 }
 0x3ea   :  { %2918 = vsyncpa [#allocation4], 1 }
 0x3eb   :  { %2919 = vsyncpa [#allocation7], 1 }
 0x3ec   :  { %2920 = vsyncpa [#allocation5], 1 }

</bundles_post_ra>
